<compile_context>
chip_gen: v7x
topology: tpu7x:2x2x1
jax: 0.10.0
libtpu: 0.0.40
codegen_flags: <defaults>
</compile_context>

<pallas_src>
import math

import jax
import jax.numpy as jnp
from jax.experimental import pallas as pl
from jax.experimental.pallas import tpu as pltpu

_H1, _H2, _H3 = 1024, 512, 256


def _round_up(v, m):
    return (v + m - 1) // m * m


def _pick_batch_tile(batch):
    # Small batches: one grid step, rounded to the 16-sublane bf16 packing unit.
    if batch <= 128:
        return _round_up(max(batch, 16), 16)
    # Larger batches: >= 2 grid steps so megacore ("parallel") can shard over
    # both v7x TensorCores; multiple of 128 keeps the x / out blocks lane- and
    # sublane-aligned; cap at 512 rows to stay well inside v7x's 64 MiB VMEM.
    return min(512, _round_up(-(-batch // 2), 128))


def _disc_mlp_kernel(x_ref,
                     w1_ref, b1_ref,
                     w2_ref, b2_ref,
                     w3_ref, b3_ref,
                     w4t_ref, b4_ref,
                     out_ref):
    # x arrives pre-cast to bf16 (half the DMA, no in-kernel cast needed).
    x = x_ref[...]

    # Layer 1: Linear(Kp, 1024) + ReLU   (f32 accumulation on the MXU)
    h1 = jnp.dot(x, w1_ref[...], preferred_element_type=jnp.float32) + b1_ref[...]
    h1 = jnp.maximum(h1, 0.0)

    # Layer 2: Linear(1024, 512) + ReLU
    h2 = jnp.dot(h1.astype(jnp.bfloat16), w2_ref[...],
                 preferred_element_type=jnp.float32) + b2_ref[...]
    h2 = jnp.maximum(h2, 0.0)

    # Layer 3: Linear(512, 256) + ReLU
    h3 = jnp.dot(h2.astype(jnp.bfloat16), w3_ref[...],
                 preferred_element_type=jnp.float32) + b3_ref[...]
    h3 = jnp.maximum(h3, 0.0)

    # Layer 4: Linear(256, 1) + Sigmoid.
    # N=1 would burn a full MXU pass for one column -> VPU multiply + lane
    # reduce against the pre-transposed (1, 256) weight row; emit the result
    # as a lane-dense (1, TB) row (no width-1 masked column store).
    logits = jnp.sum(h3 * w4t_ref[...], axis=-1)[None, :] + b4_ref[...]
    out_ref[...] = jax.nn.sigmoid(logits).astype(out_ref.dtype)


def prepare_params(params):
    """One-time weight prep: bf16 cast, zero-pad K to a multiple of 128, and
    pre-transpose the final (256, 1) weight to a lane-dense (1, 256) row."""
    (w1, b1), (w2, b2), (w3, b3), (w4, b4) = params
    K = w1.shape[0]
    Kp = _round_up(K, 128)   # 128 (not 256): MNIST 784 -> 896, not 1024
    w1p = jnp.zeros((Kp, _H1), jnp.bfloat16).at[:K, :].set(w1.astype(jnp.bfloat16))
    return {
        "K": K, "Kp": Kp,
        "w1": w1p, "b1": b1.astype(jnp.float32),
        "w2": w2.astype(jnp.bfloat16), "b2": b2.astype(jnp.float32),
        "w3": w3.astype(jnp.bfloat16), "b3": b3.astype(jnp.float32),
        "w4t": w4.T.astype(jnp.float32), "b4": b4.astype(jnp.float32),
    }
    # TODO(synk): optional int8 (v6e) / fp8 (v7x) weight quantization for w1/w2
    # with per-column scales — left out pending accuracy validation.


def discriminator_forward(x_nchw, prepped):
    """x_nchw: (B, C, H, W).  Returns (B, 1) float32 probabilities."""
    B = x_nchw.shape[0]
    K = math.prod(x_nchw.shape[1:])
    Kp = prepped["Kp"]
    assert K == prepped["K"]

    TB = _pick_batch_tile(B)
    B_pad = _round_up(B, TB)

    # == _x.view(_x.size(0), -1); cast to bf16 *before* padding so the single
    # fused XLA reshape+convert+pad writes half the bytes, and the kernel
    # consumes bf16 directly.  Padded rows/cols are zeros -> mathematically
    # inert; padded output rows are sliced off below.
    x_flat = x_nchw.reshape(B, K).astype(jnp.bfloat16)
    if (B_pad, Kp) != (B, K):
        x_flat = jnp.pad(x_flat, ((0, B_pad - B), (0, Kp - K)))

    num_tiles = B_pad // TB

    flops = 2 * B_pad * (Kp * _H1 + _H1 * _H2 + _H2 * _H3 + _H3 * 1)
    bytes_accessed = (
        B_pad * Kp * 2                                                    # x (bf16)
        + (prepped["w1"].size + prepped["w2"].size + prepped["w3"].size) * 2
        + (_H1 + _H2 + _H3 + _H3 + 1) * 4                                 # biases + w4t
        + B_pad * 4                                                       # output
    )
    cost = pl.CostEstimate(flops=flops, transcendentals=2 * B_pad,
                           bytes_accessed=bytes_accessed)

    resident = dict(pipeline_mode=pl.Buffered(1))   # weights never re-DMA

    out_row = pl.pallas_call(
        _disc_mlp_kernel,
        out_shape=jax.ShapeDtypeStruct((1, B_pad), jnp.float32),
        grid=(num_tiles,),
        in_specs=[
            pl.BlockSpec((TB, Kp), lambda i: (i, 0)),            # x: tiled over batch
            pl.BlockSpec((Kp, _H1), lambda i: (0, 0), **resident),
            pl.BlockSpec((1, _H1), lambda i: (0, 0), **resident),
            pl.BlockSpec((_H1, _H2), lambda i: (0, 0), **resident),
            pl.BlockSpec((1, _H2), lambda i: (0, 0), **resident),
            pl.BlockSpec((_H2, _H3), lambda i: (0, 0), **resident),
            pl.BlockSpec((1, _H3), lambda i: (0, 0), **resident),
            pl.BlockSpec((1, _H3), lambda i: (0, 0), **resident),  # w4^T (1, 256)
            pl.BlockSpec((1, 1), lambda i: (0, 0), **resident),
        ],
        out_specs=pl.BlockSpec((1, TB), lambda i: (0, i)),        # lane-dense row
        compiler_params=pltpu.CompilerParams(
            dimension_semantics=("parallel",),   # megacore sharding of batch tiles
            vmem_limit_bytes=32 << 20,           # ample at TB<=512, safe on v7x
        ),
        cost_estimate=cost,
    )(x_flat,
      prepped["w1"], prepped["b1"],
      prepped["w2"], prepped["b2"],
      prepped["w3"], prepped["b3"],
      prepped["w4t"], prepped["b4"])

    return out_row.reshape(B_pad, 1)[:B]


def init_params(key, in_features):
    """Deterministic PyTorch-style (uniform +-1/sqrt(fan_in)) init.
    Weights are (in, out); biases are (1, out) for a clean 2-D TPU layout."""
    dims = [in_features, _H1, _H2, _H3, 1]
    params = []
    for i in range(4):
        key, kw, kb = jax.random.split(key, 3)
        fan_in, fan_out = dims[i], dims[i + 1]
        bound = 1.0 / jnp.sqrt(float(fan_in))
        w = jax.random.uniform(kw, (fan_in, fan_out), jnp.float32, -bound, bound)
        b = jax.random.uniform(kb, (1, fan_out), jnp.float32, -bound, bound)
        params.append((w, b))
    return params


def reference_forward(x_nchw, params):
    """Pure-JAX f32 reference matching the PyTorch module."""
    x = x_nchw.reshape(x_nchw.shape[0], -1).astype(jnp.float32)
    (w1, b1), (w2, b2), (w3, b3), (w4, b4) = params
    h = jnp.maximum(x @ w1 + b1, 0.0)
    h = jnp.maximum(h @ w2 + b2, 0.0)
    h = jnp.maximum(h @ w3 + b3, 0.0)
    return jax.nn.sigmoid(h @ w4 + b4)


if __name__ == "__main__":
    key = jax.random.PRNGKey(0)
    k_x, k_p = jax.random.split(key)

    # MNIST-consistent small shapes: batch=2, channels=1, 28x28 (K=784 -> Kp=896).
    B, C, H, W = 2, 1, 28, 28
    x = jax.random.normal(k_x, (B, C, H, W), dtype=jnp.float32)

    params = init_params(k_p, C * H * W)
    prepped = prepare_params(params)

    out = discriminator_forward(x, prepped)
    out = jax.block_until_ready(out)

    ref = reference_forward(x, params)

    assert out.shape == (B, 1)
    assert bool(jnp.all(jnp.isfinite(out)))
    assert bool(jnp.all((out >= 0.0) & (out <= 1.0)))
    # bf16 weights/activations -> ~1e-2 relative deviation vs f32 reference.
    assert bool(jnp.allclose(out, ref, atol=3e-2, rtol=3e-2))
    print("KERNEL_OK")
</pallas_src>

<mosaic_0001>
module attributes {stable_mosaic.version = 11 : i64} {
  func.func @_disc_mlp_kernel(%arg0: i32, %arg1: memref<16x896xbf16, #tpu.memory_space<vmem>>, %arg2: memref<896x1024xbf16, #tpu.memory_space<vmem>>, %arg3: memref<1x1024xf32, #tpu.memory_space<vmem>>, %arg4: memref<1024x512xbf16, #tpu.memory_space<vmem>>, %arg5: memref<1x512xf32, #tpu.memory_space<vmem>>, %arg6: memref<512x256xbf16, #tpu.memory_space<vmem>>, %arg7: memref<1x256xf32, #tpu.memory_space<vmem>>, %arg8: memref<1x256xf32, #tpu.memory_space<vmem>>, %arg9: memref<1x1xf32, #tpu.memory_space<vmem>>, %arg10: memref<1x16xf32, #tpu.memory_space<vmem>>) attributes {dimension_semantics = [#tpu.dimension_semantics<parallel>], iteration_bounds = array<i64: 1>, scalar_prefetch = 0 : i64, scratch_operands = 0 : i64, tpu.core_type = #tpu.core_type<tc>, window_params = [{transform_indices = @transform_0, window_bounds = array<i64: 16, 896>}, {pipeline_mode = #tpu.pipeline_mode<synchronous>, transform_indices = @transform_1, window_bounds = array<i64: 896, 1024>}, {pipeline_mode = #tpu.pipeline_mode<synchronous>, transform_indices = @transform_2, window_bounds = array<i64: 1, 1024>}, {pipeline_mode = #tpu.pipeline_mode<synchronous>, transform_indices = @transform_3, window_bounds = array<i64: 1024, 512>}, {pipeline_mode = #tpu.pipeline_mode<synchronous>, transform_indices = @transform_4, window_bounds = array<i64: 1, 512>}, {pipeline_mode = #tpu.pipeline_mode<synchronous>, transform_indices = @transform_5, window_bounds = array<i64: 512, 256>}, {pipeline_mode = #tpu.pipeline_mode<synchronous>, transform_indices = @transform_6, window_bounds = array<i64: 1, 256>}, {pipeline_mode = #tpu.pipeline_mode<synchronous>, transform_indices = @transform_7, window_bounds = array<i64: 1, 256>}, {pipeline_mode = #tpu.pipeline_mode<synchronous>, transform_indices = @transform_8, window_bounds = array<i64: 1, 1>}, {transform_indices = @transform_9, window_bounds = array<i64: 1, 16>}]} {
    %c0 = arith.constant 0 : index
    %c0_0 = arith.constant 0 : index
    %0 = vector.load %arg1[%c0, %c0_0] : memref<16x896xbf16, #tpu.memory_space<vmem>>, vector<16x896xbf16>
    %c0_1 = arith.constant 0 : index
    %c0_2 = arith.constant 0 : index
    %1 = vector.load %arg2[%c0_1, %c0_2] : memref<896x1024xbf16, #tpu.memory_space<vmem>>, vector<896x1024xbf16>
    %cst = arith.constant dense<0.000000e+00> : vector<16x1024xf32>
    %2 = tpu.matmul %0, %1, %cst {dimension_numbers = #tpu.dot_dimension_numbers<[1], [0], [0], [1], [0, 0, 1, 1], [], []>} : vector<16x896xbf16>, vector<896x1024xbf16>, vector<16x1024xf32> -> vector<16x1024xf32>
    %c0_3 = arith.constant 0 : index
    %c0_4 = arith.constant 0 : index
    %3 = vector.load %arg3[%c0_3, %c0_4] : memref<1x1024xf32, #tpu.memory_space<vmem>>, vector<1x1024xf32>
    %4 = vector.broadcast %3 : vector<1x1024xf32> to vector<16x1024xf32>
    %5 = arith.addf %2, %4 : vector<16x1024xf32>
    %cst_5 = arith.constant 0.000000e+00 : f32
    %6 = vector.broadcast %cst_5 : f32 to vector<16x1024xf32>
    %7 = arith.maximumf %5, %6 : vector<16x1024xf32>
    %8 = arith.truncf %7 : vector<16x1024xf32> to vector<16x1024xbf16>
    %c0_6 = arith.constant 0 : index
    %c0_7 = arith.constant 0 : index
    %9 = vector.load %arg4[%c0_6, %c0_7] : memref<1024x512xbf16, #tpu.memory_space<vmem>>, vector<1024x512xbf16>
    %cst_8 = arith.constant dense<0.000000e+00> : vector<16x512xf32>
    %10 = tpu.matmul %8, %9, %cst_8 {dimension_numbers = #tpu.dot_dimension_numbers<[1], [0], [0], [1], [0, 0, 1, 1], [], []>} : vector<16x1024xbf16>, vector<1024x512xbf16>, vector<16x512xf32> -> vector<16x512xf32>
    %c0_9 = arith.constant 0 : index
    %c0_10 = arith.constant 0 : index
    %11 = vector.load %arg5[%c0_9, %c0_10] : memref<1x512xf32, #tpu.memory_space<vmem>>, vector<1x512xf32>
    %12 = vector.broadcast %11 : vector<1x512xf32> to vector<16x512xf32>
    %13 = arith.addf %10, %12 : vector<16x512xf32>
    %cst_11 = arith.constant 0.000000e+00 : f32
    %14 = vector.broadcast %cst_11 : f32 to vector<16x512xf32>
    %15 = arith.maximumf %13, %14 : vector<16x512xf32>
    %16 = arith.truncf %15 : vector<16x512xf32> to vector<16x512xbf16>
    %c0_12 = arith.constant 0 : index
    %c0_13 = arith.constant 0 : index
    %17 = vector.load %arg6[%c0_12, %c0_13] : memref<512x256xbf16, #tpu.memory_space<vmem>>, vector<512x256xbf16>
    %cst_14 = arith.constant dense<0.000000e+00> : vector<16x256xf32>
    %18 = tpu.matmul %16, %17, %cst_14 {dimension_numbers = #tpu.dot_dimension_numbers<[1], [0], [0], [1], [0, 0, 1, 1], [], []>} : vector<16x512xbf16>, vector<512x256xbf16>, vector<16x256xf32> -> vector<16x256xf32>
    %c0_15 = arith.constant 0 : index
    %c0_16 = arith.constant 0 : index
    %19 = vector.load %arg7[%c0_15, %c0_16] : memref<1x256xf32, #tpu.memory_space<vmem>>, vector<1x256xf32>
    %20 = vector.broadcast %19 : vector<1x256xf32> to vector<16x256xf32>
    %21 = arith.addf %18, %20 : vector<16x256xf32>
    %cst_17 = arith.constant 0.000000e+00 : f32
    %22 = vector.broadcast %cst_17 : f32 to vector<16x256xf32>
    %23 = arith.maximumf %21, %22 : vector<16x256xf32>
    %c0_18 = arith.constant 0 : index
    %c0_19 = arith.constant 0 : index
    %24 = vector.load %arg8[%c0_18, %c0_19] : memref<1x256xf32, #tpu.memory_space<vmem>>, vector<1x256xf32>
    %25 = vector.broadcast %24 : vector<1x256xf32> to vector<16x256xf32>
    %26 = arith.mulf %23, %25 : vector<16x256xf32>
    %cst_20 = arith.constant dense<0.000000e+00> : vector<16xf32>
    %27 = vector.multi_reduction <add>, %26, %cst_20 [1] : vector<16x256xf32> to vector<16xf32>
    %28 = vector.shape_cast %27 : vector<16xf32> to vector<1x16xf32>
    %c0_21 = arith.constant 0 : index
    %c0_22 = arith.constant 0 : index
    %29 = vector.load %arg9[%c0_21, %c0_22] : memref<1x1xf32, #tpu.memory_space<vmem>>, vector<1x1xf32>
    %30 = vector.broadcast %29 : vector<1x1xf32> to vector<1x16xf32>
    %31 = arith.addf %28, %30 : vector<1x16xf32>
    %32 = arith.negf %31 : vector<1x16xf32>
    %33 = math.exp %32 : vector<1x16xf32>
    %cst_23 = arith.constant 1.000000e+00 : f32
    %34 = vector.broadcast %cst_23 : f32 to vector<1x16xf32>
    %35 = arith.addf %34, %33 : vector<1x16xf32>
    %36 = arith.divf %34, %35 : vector<1x16xf32>
    %c0_24 = arith.constant 0 : index
    %c0_25 = arith.constant 0 : index
    %37 = vector.load %arg10[%c0_24, %c0_25] : memref<1x16xf32, #tpu.memory_space<vmem>>, vector<1x16xf32>
    tpu.vector_store %arg10[%c0_24, %c0_25], %36 {strides = array<i32>} : memref<1x16xf32, #tpu.memory_space<vmem>>, vector<1x16xf32>,
    return
  }
  func.func @transform_0(%arg0: i32) -> (i32, i32) {
    %c0_i32 = arith.constant 0 : i32
    %c0_i32_0 = arith.constant 0 : i32
    return %arg0, %c0_i32 : i32, i32
  }
  func.func @transform_1(%arg0: i32) -> (i32, i32) {
    %c0_i32 = arith.constant 0 : i32
    %c0_i32_0 = arith.constant 0 : i32
    %c0_i32_1 = arith.constant 0 : i32
    return %c0_i32, %c0_i32_0 : i32, i32
  }
  func.func @transform_2(%arg0: i32) -> (i32, i32) {
    %c0_i32 = arith.constant 0 : i32
    %c0_i32_0 = arith.constant 0 : i32
    %c0_i32_1 = arith.constant 0 : i32
    return %c0_i32, %c0_i32_0 : i32, i32
  }
  func.func @transform_3(%arg0: i32) -> (i32, i32) {
    %c0_i32 = arith.constant 0 : i32
    %c0_i32_0 = arith.constant 0 : i32
    %c0_i32_1 = arith.constant 0 : i32
    return %c0_i32, %c0_i32_0 : i32, i32
  }
  func.func @transform_4(%arg0: i32) -> (i32, i32) {
    %c0_i32 = arith.constant 0 : i32
    %c0_i32_0 = arith.constant 0 : i32
    %c0_i32_1 = arith.constant 0 : i32
    return %c0_i32, %c0_i32_0 : i32, i32
  }
  func.func @transform_5(%arg0: i32) -> (i32, i32) {
    %c0_i32 = arith.constant 0 : i32
    %c0_i32_0 = arith.constant 0 : i32
    %c0_i32_1 = arith.constant 0 : i32
    return %c0_i32, %c0_i32_0 : i32, i32
  }
  func.func @transform_6(%arg0: i32) -> (i32, i32) {
    %c0_i32 = arith.constant 0 : i32
    %c0_i32_0 = arith.constant 0 : i32
    %c0_i32_1 = arith.constant 0 : i32
    return %c0_i32, %c0_i32_0 : i32, i32
  }
  func.func @transform_7(%arg0: i32) -> (i32, i32) {
    %c0_i32 = arith.constant 0 : i32
    %c0_i32_0 = arith.constant 0 : i32
    %c0_i32_1 = arith.constant 0 : i32
    return %c0_i32, %c0_i32_0 : i32, i32
  }
  func.func @transform_8(%arg0: i32) -> (i32, i32) {
    %c0_i32 = arith.constant 0 : i32
    %c0_i32_0 = arith.constant 0 : i32
    %c0_i32_1 = arith.constant 0 : i32
    return %c0_i32, %c0_i32_0 : i32, i32
  }
  func.func @transform_9(%arg0: i32) -> (i32, i32) {
    %c0_i32 = arith.constant 0 : i32
    %c0_i32_0 = arith.constant 0 : i32
    return %c0_i32, %arg0 : i32, i32
  }
}

</mosaic_0001>

<bundles_post_ra>
// kernel: tpu_custom_call.1
= control target key start
LH: loop header
LB: loop body
LE: loop exit
PB: predicated region body
PF: predicated region fallthrough
CT: control target
= control target key end

     0   :  { %s8036_s0 = inlined_call_operand.hbm [shape: bf16[16,896], index: 0, kind: input, shape index: {}]   ;;  %s8037_s1 = inlined_call_operand.hbm [shape: bf16[896,1024], index: 1, kind: input, shape index: {}]   ;;  %s8038_s2 = inlined_call_operand.hbm [shape: f32[1,1024], index: 2, kind: input, shape index: {}]   ;;  %s8039_s3 = inlined_call_operand.hbm [shape: bf16[1024,512], index: 3, kind: input, shape index: {}]   ;;  %s8040_s4 = inlined_call_operand.hbm [shape: f32[1,512], index: 4, kind: input, shape index: {}]   ;;  %s8041_s5 = inlined_call_operand.hbm [shape: bf16[512,256], index: 5, kind: input, shape index: {}]   ;;  %s8042_s6 = inlined_call_operand.hbm [shape: f32[1,256], index: 6, kind: input, shape index: {}]   ;;  %s8043_s7 = inlined_call_operand.hbm [shape: f32[1,256], index: 7, kind: input, shape index: {}]   ;;  %s8044_s8 = inlined_call_operand.<no memory space> [shape: f32[1,1], index: 8, kind: input, shape index: {}]   ;;  %s8045_s9 = inlined_call_operand.hbm [shape: f32[1,16], index: 9, kind: output, shape index: {}]  }
   0x1   :  { %v14_v0 = vstv %s8044_s8 }
   0x2   :  { %15 = vst [vmem:[#allocation2] sm:$0x1] %v14_v0 }
   0x3   :  { %16 = vsyncpa [#allocation4], 0 }
   0x4   :  { %17 = vsyncpa [#allocation7], 0 }
   0x5   :  { %18 = vsyncpa [#allocation10], 0 }
   0x6   :  { %19 = vsyncpa [#allocation13], 0 }
   0x7   :  { %20 = vsyncpa [#allocation16], 0 }
   0x8   :  { %21 = vsyncpa [#allocation5], 0  ;;  %s7728_s11 = smov [#allocation6]   ;;  %s7518_s15 = scalar_lea.hbm %s8037_s1, 57344 }
   0x9   :  { %s39_s12 = sshll.u32 %s7728_s11, 4  ;;  %p7519_p0 = scmp.ne.s32.totalorder %s8037_s1, %s7518_s15  ;;  %s40_s12 = int_to_ptr.vmem [resolvable:$true] %s39_s12 }
   0xa   :  { %p7522_p1 = scmp.lt.u32.totalorder %s7518_s15, %s8037_s1 }
   0xc   :  { %p7524_p2 = pnand %p7522_p1, %p7519_p0 }
   0xe   :  { %7527 = shalt.err (!%p7524_p2)
}
   0xf   :  { %s7528_s19 = scalar_lea.vmem %s40_s12, 57344  ;;  %p7533_p4 = scmp.lt.s32.totalorder %s40_s12, %s40_s12 }
  0x10   :  { %p7529_p3 = scmp.ne.s32.totalorder %s40_s12, %s7528_s19  ;;  %p7534_p5 = scmp.lt.s32.totalorder %s7528_s19, %s7528_s19 }
  0x12   :  { %p7535_p6 = por %p7534_p5, %p7533_p4 }
  0x14   :  { %p7536_p7 = pnand %p7535_p6, %p7529_p3 }
  0x16   :  { %7539 = shalt.err (!%p7536_p7)
}
  0x17   :  { %s7729_s20 = smov 512   ;;  %s7730_s21 = smov 32  }
  0x18   :  { %45 = dma.hbm_to_vmem [thread:$0]  %s8037_s1, 57344, %s40_s12, [#allocation7], %s7729_s20, %s7729_s20, %s7730_s21  }
  0x19   :  { %s7731_s24 = smov [#allocation9]   ;;  %s7540_s28 = scalar_lea.hbm %s8039_s3, 32768 }
  0x1a   :  { %s61_s25 = sshll.u32 %s7731_s24, 4  ;;  %p7541_p8 = scmp.ne.s32.totalorder %s8039_s3, %s7540_s28  ;;  %s62_s25 = int_to_ptr.vmem [resolvable:$true] %s61_s25 }
  0x1b   :  { %p7544_p9 = scmp.lt.u32.totalorder %s7540_s28, %s8039_s3 }
  0x1d   :  { %p7546_p10 = pnand %p7544_p9, %p7541_p8 }
  0x1f   :  { %7549 = shalt.err (!%p7546_p10)
}
  0x20   :  { %s7550_s13 = scalar_lea.vmem %s62_s25, 32768  ;;  %p7555_p12 = scmp.lt.s32.totalorder %s62_s25, %s62_s25 }
  0x21   :  { %p7551_p11 = scmp.ne.s32.totalorder %s62_s25, %s7550_s13  ;;  %p7556_p13 = scmp.lt.s32.totalorder %s7550_s13, %s7550_s13 }
  0x23   :  { %p7557_p0 = por %p7556_p13, %p7555_p12 }
  0x25   :  { %p7558_p1 = pnand %p7557_p0, %p7551_p11 }
  0x27   :  { %7561 = shalt.err (!%p7558_p1)
}
  0x28   :  { %s7732_s1 = smov 256   ;;  %s7733_s12 = smov 16  }
  0x29   :  { %67 = dma.hbm_to_vmem [thread:$0]  %s8039_s3, 32768, %s62_s25, [#allocation10], %s7732_s1, %s7732_s1, %s7733_s12  }
  0x2a   :  { %s7734_s16 = smov [#allocation12]   ;;  %s7562_s19 = scalar_lea.hbm %s8041_s5, 8192 }
  0x2b   :  { %s83_s17 = sshll.u32 %s7734_s16, 4  ;;  %p7563_p2 = scmp.ne.s32.totalorder %s8041_s5, %s7562_s19  ;;  %s84_s17 = int_to_ptr.vmem [resolvable:$true] %s83_s17 }
  0x2c   :  { %p7566_p3 = scmp.lt.u32.totalorder %s7562_s19, %s8041_s5 }
  0x2e   :  { %p7568_p4 = pnand %p7566_p3, %p7563_p2 }
  0x30   :  { %7571 = shalt.err (!%p7568_p4)
}
  0x31   :  { %s7572_s24 = scalar_lea.vmem %s84_s17, 8192  ;;  %p7577_p6 = scmp.lt.s32.totalorder %s84_s17, %s84_s17 }
  0x32   :  { %p7573_p5 = scmp.ne.s32.totalorder %s84_s17, %s7572_s24  ;;  %p7578_p7 = scmp.lt.s32.totalorder %s7572_s24, %s7572_s24 }
  0x34   :  { %p7579_p8 = por %p7578_p7, %p7577_p6 }
  0x36   :  { %p7580_p9 = pnand %p7579_p8, %p7573_p5 }
  0x38   :  { %7583 = shalt.err (!%p7580_p9)
}
  0x39   :  { %s7735_s3 = smov 128   ;;  %s7736_s25 = smov 8  }
  0x3a   :  { %89 = dma.hbm_to_vmem [thread:$0]  %s8041_s5, 8192, %s84_s17, [#allocation13], %s7735_s3, %s7735_s3, %s7736_s25  }
  0x3b   :  { %s7737_s28 = smov [#allocation3]   ;;  %s7584_s11 = scalar_lea.hbm %s8036_s0, 896 }
  0x3c   :  { %s27_s29 = sshll.u32 %s7737_s28, 4  ;;  %p7585_p10 = scmp.ne.s32.totalorder %s8036_s0, %s7584_s11  ;;  %s28_s29 = int_to_ptr.vmem [resolvable:$true] %s27_s29 }
  0x3d   :  { %p7588_p11 = scmp.lt.u32.totalorder %s7584_s11, %s8036_s0 }
  0x3f   :  { %p7590_p12 = pnand %p7588_p11, %p7585_p10 }
  0x41   :  { %7593 = shalt.err (!%p7590_p12)
}
  0x42   :  { %s7594_s15 = scalar_lea.vmem %s28_s29, 896  ;;  %p7599_p0 = scmp.lt.s32.totalorder %s28_s29, %s28_s29 }
  0x43   :  { %p7595_p13 = scmp.ne.s32.totalorder %s28_s29, %s7594_s15  ;;  %p7600_p1 = scmp.lt.s32.totalorder %s7594_s15, %s7594_s15 }
  0x45   :  { %p7601_p2 = por %p7600_p1, %p7599_p0 }
  0x47   :  { %p7602_p3 = pnand %p7601_p2, %p7595_p13 }
  0x49   :  { %7605 = shalt.err (!%p7602_p3)
}
  0x4a   :  { %s7738_s5 = smov 448   ;;  %s7739_s16 = smov 28  }
  0x4b   :  { %33 = dma.hbm_to_vmem [thread:$0]  %s8036_s0, 896, %s28_s29, [#allocation4], %s7738_s5, %s7738_s5, %s7739_s16  }
  0x4c   :  { %s7740_s8 = smov [#allocation8]   ;;  %s7741_s20 = smov [#allocation11]  }
  0x4d   :  { %s52_s19 = sshll.u32 %s7740_s8, 4  ;;  %s74_s21 = sshll.u32 %s7741_s20, 4  ;;  %s53_s19 = int_to_ptr.vmem [resolvable:$true] %s52_s19  ;;  %s75_s21 = int_to_ptr.vmem [resolvable:$true] %s74_s21 }
  0x4e   :  { %s7606_s24 = scalar_lea.hbm %s8038_s2, 128 }
  0x4f   :  { %p7607_p4 = scmp.ne.s32.totalorder %s8038_s2, %s7606_s24  ;;  %p7610_p5 = scmp.lt.u32.totalorder %s7606_s24, %s8038_s2 }
  0x51   :  { %p7612_p6 = pnand %p7610_p5, %p7607_p4 }
  0x53   :  { %7615 = shalt.err (!%p7612_p6)
}
  0x54   :  { %s7616_s0 = scalar_lea.vmem %s53_s19, 128  ;;  %p7621_p8 = scmp.lt.s32.totalorder %s53_s19, %s53_s19 }
  0x55   :  { %p7617_p7 = scmp.ne.s32.totalorder %s53_s19, %s7616_s0  ;;  %p7622_p9 = scmp.lt.s32.totalorder %s7616_s0, %s7616_s0 }
  0x57   :  { %p7623_p10 = por %p7622_p9, %p7621_p8 }
  0x59   :  { %p7624_p11 = pnand %p7623_p10, %p7617_p7 }
  0x5b   :  { %7627 = shalt.err (!%p7624_p11)
}
  0x5c   :  { %55 = dma.hbm_to_vmem [thread:$0]  %s8038_s2, 128, %s53_s19, [#allocation7]  }
  0x5d   :  { %s7628_s11 = scalar_lea.hbm %s8040_s4, 64 }
  0x5e   :  { %p7629_p12 = scmp.ne.s32.totalorder %s8040_s4, %s7628_s11  ;;  %p7632_p13 = scmp.lt.u32.totalorder %s7628_s11, %s8040_s4 }
  0x60   :  { %p7634_p0 = pnand %p7632_p13, %p7629_p12 }
  0x62   :  { %7637 = shalt.err (!%p7634_p0)
}
  0x63   :  { %s7638_s15 = scalar_lea.vmem %s75_s21, 64  ;;  %p7643_p2 = scmp.lt.s32.totalorder %s75_s21, %s75_s21 }
  0x64   :  { %p7639_p1 = scmp.ne.s32.totalorder %s75_s21, %s7638_s15  ;;  %p7644_p3 = scmp.lt.s32.totalorder %s7638_s15, %s7638_s15 }
  0x66   :  { %p7645_p4 = por %p7644_p3, %p7643_p2 }
  0x68   :  { %p7646_p5 = pnand %p7645_p4, %p7639_p1 }
  0x6a   :  { %7649 = shalt.err (!%p7646_p5)
}
  0x6b   :  { %77 = dma.hbm_to_vmem [thread:$0]  %s8040_s4, 64, %s75_s21, [#allocation10]  }
  0x6c   :  { %s7742_s16 = smov [#allocation14]   ;;  %s7743_s18 = smov [#allocation15]  }
  0x6d   :  { %s96_s17 = sshll.u32 %s7742_s16, 4  ;;  %s106_s8 = sshll.u32 %s7743_s18, 4  ;;  %s97_s17 = int_to_ptr.vmem [resolvable:$true] %s96_s17  ;;  %s107_s8 = int_to_ptr.vmem [resolvable:$true] %s106_s8 }
  0x6e   :  { %s7650_s22 = scalar_lea.hbm %s8042_s6, 32 }
  0x6f   :  { %p7651_p6 = scmp.ne.s32.totalorder %s8042_s6, %s7650_s22  ;;  %p7654_p7 = scmp.lt.u32.totalorder %s7650_s22, %s8042_s6 }
  0x71   :  { %p7656_p8 = pnand %p7654_p7, %p7651_p6 }
  0x73   :  { %7659 = shalt.err (!%p7656_p8)
}
  0x74   :  { %s7660_s4 = scalar_lea.vmem %s97_s17, 32  ;;  %p7665_p10 = scmp.lt.s32.totalorder %s97_s17, %s97_s17 }
  0x75   :  { %p7661_p9 = scmp.ne.s32.totalorder %s97_s17, %s7660_s4  ;;  %p7666_p11 = scmp.lt.s32.totalorder %s7660_s4, %s7660_s4 }
  0x77   :  { %p7667_p12 = por %p7666_p11, %p7665_p10 }
  0x79   :  { %p7668_p13 = pnand %p7667_p12, %p7661_p9 }
  0x7b   :  { %7671 = shalt.err (!%p7668_p13)
}
  0x7c   :  { %99 = dma.hbm_to_vmem [thread:$0]  %s8042_s6, 32, %s97_s17, [#allocation13]  }
  0x7d   :  { %s7672_s28 = scalar_lea.hbm %s8043_s7, 32 }
  0x7e   :  { %p7673_p0 = scmp.ne.s32.totalorder %s8043_s7, %s7672_s28  ;;  %p7676_p1 = scmp.lt.u32.totalorder %s7672_s28, %s8043_s7 }
  0x80   :  { %p7678_p2 = pnand %p7676_p1, %p7673_p0 }
  0x82   :  { %7681 = shalt.err (!%p7678_p2)
}
  0x83   :  { %s7682_s13 = scalar_lea.vmem %s107_s8, 32  ;;  %p7687_p4 = scmp.lt.s32.totalorder %s107_s8, %s107_s8 }
  0x84   :  { %p7683_p3 = scmp.ne.s32.totalorder %s107_s8, %s7682_s13  ;;  %p7688_p5 = scmp.lt.s32.totalorder %s7682_s13, %s7682_s13 }
  0x86   :  { %p7689_p6 = por %p7688_p5, %p7687_p4 }
  0x88   :  { %p7690_p7 = pnand %p7689_p6, %p7683_p3 }
  0x8a   :  { %7693 = shalt.err (!%p7690_p7)
}
  0x8b   :  { %109 = dma.hbm_to_vmem [thread:$0]  %s8043_s7, 32, %s107_s8, [#allocation16]  }
  0x8c   :  { %7716 = dma.done.wait [#allocation4], 896  }
  0x8d   :  { %7717 = vsyncadd [#allocation4], 4294966400 }
  0x8e   :  { %7718 = dma.done.wait [#allocation7], 57472  }
  0x8f   :  { %7719 = vsyncadd [#allocation7], 4294909824 }
  0x90   :  { %7720 = dma.done.wait [#allocation10], 32832  }
  0x91   :  { %7721 = vsyncadd [#allocation10], 4294934464 }
  0x92   :  { %7722 = dma.done.wait [#allocation13], 8224  }
  0x93   :  { %7723 = vsyncadd [#allocation13], 4294959072 }
  0x94   :  { %7724 = dma.done.wait [#allocation16], 32  }
  0x95   :  { %7725 = vsyncadd [#allocation16], 4294967264  ;;  %v145_v1 = vld [vmem:[#allocation6] sm:$0xff]  ;;  %v7895_v58 = vld [vmem:[#allocation3 + $0x4] ss:$28 sps:$4 sm:$0xff]   ;;  %s7745_s7 = smov [#allocation17]  }
  0x96   :  { %v149_v2 = vld [vmem:[#allocation6 + $0x20] sm:$0xff]  ;;  %v7897_v60 = vld [vmem:[#allocation3 + $0xc] ss:$28 sps:$4 sm:$0xff]   ;;  %2943 = vmatprep.mubr.bf16.mxu1 %v7895_v58  ;;  %s6093_s12 = sshll.u32 %s7745_s7, 4  ;;  %vm6082_vm0 = vcmask 130112   ;;  %vm6085_vm1 = vcmask 122880   ;;  %s6094_s12 = int_to_ptr.vmem [resolvable:$true] %s6093_s12 }
  0x97   :  { %v273_v3 = vld [vmem:[#allocation6 + $0x400] sm:$0xff]  ;;  %v6114_v4 = vcombine.high %v145_v1, %v149_v2  ;;  %v6113_v6 = vcombine.low %v145_v1, %v149_v2  ;;  %2986 = vmatprep.mubr.bf16.mxu0 %v7897_v60  ;;  %s7694_s14 = scalar_lea.vmem %s6094_s12, 16  ;;  %s7698_s15 = scalar_lea.vmem %s6094_s12, 32 }
  0x98   :  { %v277_v5 = vld [vmem:[#allocation6 + $0x420] sm:$0xff]  ;;  %p7695_p8 = scmp.ne.s32.totalorder %s6094_s12, %s7694_s14  ;;  %p7699_p9 = scmp.lt.s32.totalorder %s6094_s12, %s6094_s12 }
  0x99   :  { %v153_v7 = vld [vmem:[#allocation6 + $0x40] sm:$0xff]  ;;  %v6242_v9 = vcombine.high %v273_v3, %v277_v5  ;;  %v6241_v10 = vcombine.low %v273_v3, %v277_v5  ;;  %2911 = vmatprep.subr.bf16.mxu1 %v6114_v4  ;;  %p7700_p10 = scmp.lt.s32.totalorder %s7698_s15, %s7694_s14 }
  0x9a   :  { %v157_v8 = vld [vmem:[#allocation6 + $0x60] sm:$0xff]  ;;  %2912 = vmatpush1.bf16.msra.mxu1 %v6113_v6 }
  0x9b   :  { %v6122_v11 = vcombine.high %v153_v7, %v157_v8  ;;  %v281_v12 = vld [vmem:[#allocation6 + $0x440] sm:$0xff]  ;;  %2954 = vmatprep.subr.bf16.mxu0 %v6242_v9  ;;  %v6121_v19 = vcombine.low %v153_v7, %v157_v8  ;;  %p7701_p11 = por %p7700_p10, %p7699_p9 }
  0x9c   :  { %v285_v13 = vld [vmem:[#allocation6 + $0x460] sm:$0xff]  ;;  %2955 = vmatpush1.bf16.msra.mxu0 %v6241_v10 }
  0x9d   :  { %v161_v14 = vld [vmem:[#allocation6 + $0x80] sm:$0xff]  ;;  %v6250_v15 = vcombine.high %v281_v12, %v285_v13  ;;  %2913 = vmatprep.subr.bf16.mxu1 %v6122_v11  ;;  %v6249_v20 = vcombine.low %v281_v12, %v285_v13  ;;  %p7702_p12 = pnand %p7701_p11, %p7695_p8 }
  0x9e   :  { %v165_v16 = vld [vmem:[#allocation6 + $0xa0] sm:$0xff]  ;;  %2914 = vmatpush1.bf16.msra.mxu1 %v6121_v19 }
  0x9f   :  { %v289_v17 = vld [vmem:[#allocation6 + $0x480] sm:$0xff]  ;;  %v6130_v21 = vcombine.high %v161_v14, %v165_v16  ;;  %2956 = vmatprep.subr.bf16.mxu0 %v6250_v15  ;;  %v6129_v27 = vcombine.low %v161_v14, %v165_v16 }
  0xa0   :  { %v293_v18 = vld [vmem:[#allocation6 + $0x4a0] sm:$0xff]  ;;  %2957 = vmatpush1.bf16.msra.mxu0 %v6249_v20 }
  0xa1   :  { %v6258_v22 = vcombine.high %v289_v17, %v293_v18  ;;  %v169_v23 = vld [vmem:[#allocation6 + $0xc0] sm:$0xff]  ;;  %2915 = vmatprep.subr.bf16.mxu1 %v6130_v21  ;;  %v6257_v28 = vcombine.low %v289_v17, %v293_v18  ;;  %v7744_v21 = vmov 0  }
  0xa2   :  { %v173_v24 = vld [vmem:[#allocation6 + $0xe0] sm:$0xff]  ;;  %2916 = vmatpush1.bf16.msra.mxu1 %v6129_v27  ;;  %7005 = vset.pattern.permute.xlu1 %v7744_v21 }
  0xa3   :  { %v297_v25 = vld [vmem:[#allocation6 + $0x4c0] sm:$0xff]  ;;  %v6138_v29 = vcombine.high %v169_v23, %v173_v24  ;;  %2958 = vmatprep.subr.bf16.mxu0 %v6258_v22  ;;  %v6137_v35 = vcombine.low %v169_v23, %v173_v24  ;;  %7006 = vset.pattern.permute.xlu0 %v7744_v21 }
  0xa4   :  { %v301_v26 = vld [vmem:[#allocation6 + $0x4e0] sm:$0xff]  ;;  %2959 = vmatpush1.bf16.msra.mxu0 %v6257_v28 }
  0xa5   :  { %v6266_v30 = vcombine.high %v297_v25, %v301_v26  ;;  %v177_v31 = vld [vmem:[#allocation6 + $0x100] sm:$0xff]  ;;  %2917 = vmatprep.subr.bf16.mxu1 %v6138_v29  ;;  %v6265_v36 = vcombine.low %v297_v25, %v301_v26 }
  0xa6   :  { %v181_v32 = vld [vmem:[#allocation6 + $0x120] sm:$0xff]  ;;  %2918 = vmatpush1.bf16.msra.mxu1 %v6137_v35 }
  0xa7   :  { %v305_v33 = vld [vmem:[#allocation6 + $0x500] sm:$0xff]  ;;  %v6146_v37 = vcombine.high %v177_v31, %v181_v32  ;;  %2960 = vmatprep.subr.bf16.mxu0 %v6266_v30  ;;  %v6145_v43 = vcombine.low %v177_v31, %v181_v32 }
  0xa8   :  { %v309_v34 = vld [vmem:[#allocation6 + $0x520] sm:$0xff]  ;;  %2961 = vmatpush1.bf16.msra.mxu0 %v6265_v36 }
  0xa9   :  { %v6274_v38 = vcombine.high %v305_v33, %v309_v34  ;;  %v185_v39 = vld [vmem:[#allocation6 + $0x140] sm:$0xff]  ;;  %2919 = vmatprep.subr.bf16.mxu1 %v6146_v37  ;;  %v6273_v44 = vcombine.low %v305_v33, %v309_v34 }
  0xaa   :  { %v189_v40 = vld [vmem:[#allocation6 + $0x160] sm:$0xff]  ;;  %2920 = vmatpush1.bf16.msra.mxu1 %v6145_v43 }
  0xab   :  { %v313_v41 = vld [vmem:[#allocation6 + $0x540] sm:$0xff]  ;;  %v6154_v45 = vcombine.high %v185_v39, %v189_v40  ;;  %2962 = vmatprep.subr.bf16.mxu0 %v6274_v38  ;;  %v6153_v51 = vcombine.low %v185_v39, %v189_v40 }
  0xac   :  { %v317_v42 = vld [vmem:[#allocation6 + $0x560] sm:$0xff]  ;;  %2963 = vmatpush1.bf16.msra.mxu0 %v6273_v44 }
  0xad   :  { %v6282_v46 = vcombine.high %v313_v41, %v317_v42  ;;  %v193_v47 = vld [vmem:[#allocation6 + $0x180] sm:$0xff]  ;;  %2921 = vmatprep.subr.bf16.mxu1 %v6154_v45  ;;  %v6281_v53 = vcombine.low %v313_v41, %v317_v42 }
  0xae   :  { %v197_v48 = vld [vmem:[#allocation6 + $0x1a0] sm:$0xff]  ;;  %2922 = vmatpush1.bf16.msra.mxu1 %v6153_v51 }
  0xaf   :  { %v321_v49 = vld [vmem:[#allocation6 + $0x580] sm:$0xff]  ;;  %v6162_v54 = vcombine.high %v193_v47, %v197_v48  ;;  %2964 = vmatprep.subr.bf16.mxu0 %v6282_v46  ;;  %v6161_v61 = vcombine.low %v193_v47, %v197_v48 }
  0xb0   :  { %v325_v50 = vld [vmem:[#allocation6 + $0x5a0] sm:$0xff]  ;;  %2965 = vmatpush1.bf16.msra.mxu0 %v6281_v53 }
  0xb1   :  { %v201_v52 = vld [vmem:[#allocation6 + $0x1c0] sm:$0xff]  ;;  %v6290_v56 = vcombine.high %v321_v49, %v325_v50  ;;  %2923 = vmatprep.subr.bf16.mxu1 %v6162_v54  ;;  %v6289_v62 = vcombine.low %v321_v49, %v325_v50 }
  0xb2   :  { %v205_v55 = vld [vmem:[#allocation6 + $0x1e0] sm:$0xff]  ;;  %2924 = vmatpush1.bf16.msra.mxu1 %v6161_v61 }
  0xb3   :  { %v329_v57 = vld [vmem:[#allocation6 + $0x5c0] sm:$0xff]  ;;  %v6170_v63 = vcombine.high %v201_v52, %v205_v55  ;;  %2966 = vmatprep.subr.bf16.mxu0 %v6290_v56  ;;  %v6169_v5 = vcombine.low %v201_v52, %v205_v55 }
  0xb4   :  { %v333_v59 = vld [vmem:[#allocation6 + $0x5e0] sm:$0xff]  ;;  %2967 = vmatpush1.bf16.msra.mxu0 %v6289_v62 }
  0xb5   :  { %v6298_v0 = vcombine.high %v329_v57, %v333_v59  ;;  %v209_v1 = vld [vmem:[#allocation6 + $0x200] sm:$0xff]  ;;  %2925 = vmatprep.subr.bf16.mxu1 %v6170_v63  ;;  %v6297_v6 = vcombine.low %v329_v57, %v333_v59 }
  0xb6   :  { %v213_v2 = vld [vmem:[#allocation6 + $0x220] sm:$0xff]  ;;  %2926 = vmatpush1.bf16.msra.mxu1 %v6169_v5  ;;  %v150_v5 = vld [vmem:[#allocation6 + $0x28] sm:$0xff] }
  0xb7   :  { %v337_v3 = vld [vmem:[#allocation6 + $0x600] sm:$0xff]  ;;  %v6178_v7 = vcombine.high %v209_v1, %v213_v2  ;;  %2968 = vmatprep.subr.bf16.mxu0 %v6298_v0  ;;  %v6177_v13 = vcombine.low %v209_v1, %v213_v2 }
  0xb8   :  { %v341_v4 = vld [vmem:[#allocation6 + $0x620] sm:$0xff]  ;;  %2969 = vmatpush1.bf16.msra.mxu0 %v6297_v6 }
  0xb9   :  { %v6306_v8 = vcombine.high %v337_v3, %v341_v4  ;;  %v217_v9 = vld [vmem:[#allocation6 + $0x240] sm:$0xff]  ;;  %2927 = vmatprep.subr.bf16.mxu1 %v6178_v7  ;;  %v6305_v14 = vcombine.low %v337_v3, %v341_v4  ;;  %v146_v4 = vld [vmem:[#allocation6 + $0x8] sm:$0xff] }
  0xba   :  { %v221_v10 = vld [vmem:[#allocation6 + $0x260] sm:$0xff]  ;;  %2928 = vmatpush1.bf16.msra.mxu1 %v6177_v13  ;;  %v158_v13 = vld [vmem:[#allocation6 + $0x68] sm:$0xff] }
  0xbb   :  { %v345_v11 = vld [vmem:[#allocation6 + $0x640] sm:$0xff]  ;;  %v6186_v15 = vcombine.high %v217_v9, %v221_v10  ;;  %2970 = vmatprep.subr.bf16.mxu0 %v6306_v8  ;;  %v6185_v22 = vcombine.low %v217_v9, %v221_v10  ;;  %v6116_v10 = vcombine.high %v146_v4, %v150_v5 }
  0xbc   :  { %v349_v12 = vld [vmem:[#allocation6 + $0x660] sm:$0xff]  ;;  %2971 = vmatpush1.bf16.msra.mxu0 %v6305_v14 }
  0xbd   :  { %v6314_v16 = vcombine.high %v345_v11, %v349_v12  ;;  %v225_v17 = vld [vmem:[#allocation6 + $0x280] sm:$0xff]  ;;  %2929 = vmatprep.subr.bf16.mxu1 %v6186_v15  ;;  %v6313_v23 = vcombine.low %v345_v11, %v349_v12  ;;  %v154_v12 = vld [vmem:[#allocation6 + $0x48] sm:$0xff] }
  0xbe   :  { %v229_v18 = vld [vmem:[#allocation6 + $0x2a0] sm:$0xff]  ;;  %2930 = vmatpush1.bf16.msra.mxu1 %v6185_v22 }
  0xbf   :  { %v353_v19 = vld [vmem:[#allocation6 + $0x680] sm:$0xff]  ;;  %v6194_v24 = vcombine.high %v225_v17, %v229_v18  ;;  %2972 = vmatprep.subr.bf16.mxu0 %v6314_v16  ;;  %v6193_v30 = vcombine.low %v225_v17, %v229_v18  ;;  %v6115_v17 = vcombine.low %v146_v4, %v150_v5  ;;  %v7012_v18 = vld [vmem:[#allocation3 + $0x8] ss:$28 sps:$4 sm:$0xff]  }
  0xc0   :  { %v357_v20 = vld [vmem:[#allocation6 + $0x6a0] sm:$0xff]  ;;  %2973 = vmatpush1.bf16.msra.mxu0 %v6313_v23  ;;  %v162_v23 = vld [vmem:[#allocation6 + $0x88] sm:$0xff] }
  0xc1   :  { %v6322_v25 = vcombine.high %v353_v19, %v357_v20  ;;  %v233_v26 = vld [vmem:[#allocation6 + $0x2c0] sm:$0xff]  ;;  %2931 = vmatprep.subr.bf16.mxu1 %v6194_v24  ;;  %v6321_v31 = vcombine.low %v353_v19, %v357_v20  ;;  %v6124_v20 = vcombine.high %v154_v12, %v158_v13  ;;  %v166_v24 = vld [vmem:[#allocation6 + $0xa8] sm:$0xff] }
  0xc2   :  { %v237_v27 = vld [vmem:[#allocation6 + $0x2e0] sm:$0xff]  ;;  %2932 = vmatpush1.bf16.msra.mxu1 %v6193_v30  ;;  %v6132_v30 = vcombine.high %v162_v23, %v166_v24  ;;  %v206_v4 = vld [vmem:[#allocation6 + $0x1e8] sm:$0xff] }
  0xc3   :  { %v361_v28 = vld [vmem:[#allocation6 + $0x6c0] sm:$0xff]  ;;  %v6202_v32 = vcombine.high %v233_v26, %v237_v27  ;;  %2974 = vmatprep.subr.bf16.mxu0 %v6322_v25  ;;  %v6201_v38 = vcombine.low %v233_v26, %v237_v27  ;;  %v7013_v25 = vld [vmem:[#allocation3 + $0x14] ss:$28 sps:$4 sm:$0xff]  }
  0xc4   :  { %v365_v29 = vld [vmem:[#allocation6 + $0x6e0] sm:$0xff]  ;;  %2975 = vmatpush1.bf16.msra.mxu0 %v6321_v31 }
  0xc5   :  { %v6330_v33 = vcombine.high %v361_v28, %v365_v29  ;;  %v241_v34 = vld [vmem:[#allocation6 + $0x300] sm:$0xff]  ;;  %2933 = vmatprep.subr.bf16.mxu1 %v6202_v32  ;;  %v6329_v39 = vcombine.low %v361_v28, %v365_v29  ;;  %v6123_v28 = vcombine.low %v154_v12, %v158_v13  ;;  %v170_v32 = vld [vmem:[#allocation6 + $0xc8] sm:$0xff] }
  0xc6   :  { %v245_v35 = vld [vmem:[#allocation6 + $0x320] sm:$0xff]  ;;  %2934 = vmatpush1.bf16.msra.mxu1 %v6201_v38  ;;  %v214_v12 = vld [vmem:[#allocation6 + $0x228] sm:$0xff] }
  0xc7   :  { %v369_v36 = vld [vmem:[#allocation6 + $0x700] sm:$0xff]  ;;  %v6210_v40 = vcombine.high %v241_v34, %v245_v35  ;;  %2976 = vmatprep.subr.bf16.mxu0 %v6330_v33  ;;  %v6209_v46 = vcombine.low %v241_v34, %v245_v35  ;;  %v174_v33 = vld [vmem:[#allocation6 + $0xe8] sm:$0xff] }
  0xc8   :  { %v373_v37 = vld [vmem:[#allocation6 + $0x720] sm:$0xff]  ;;  %2977 = vmatpush1.bf16.msra.mxu0 %v6329_v39  ;;  %v6140_v38 = vcombine.high %v170_v32, %v174_v33 }
  0xc9   :  { %v6338_v41 = vcombine.high %v369_v36, %v373_v37  ;;  %v249_v42 = vld [vmem:[#allocation6 + $0x340] sm:$0xff]  ;;  %2935 = vmatprep.subr.bf16.mxu1 %v6210_v40  ;;  %v6337_v47 = vcombine.low %v369_v36, %v373_v37  ;;  %v6131_v36 = vcombine.low %v162_v23, %v166_v24 }
  0xca   :  { %v253_v43 = vld [vmem:[#allocation6 + $0x360] sm:$0xff]  ;;  %2936 = vmatpush1.bf16.msra.mxu1 %v6209_v46 }
  0xcb   :  { %v377_v44 = vld [vmem:[#allocation6 + $0x740] sm:$0xff]  ;;  %v6218_v48 = vcombine.high %v249_v42, %v253_v43  ;;  %2978 = vmatprep.subr.bf16.mxu0 %v6338_v41  ;;  %v6217_v54 = vcombine.low %v249_v42, %v253_v43  ;;  %v178_v41 = vld [vmem:[#allocation6 + $0x108] sm:$0xff] }
  0xcc   :  { %v381_v45 = vld [vmem:[#allocation6 + $0x760] sm:$0xff]  ;;  %2979 = vmatpush1.bf16.msra.mxu0 %v6337_v47  ;;  %v182_v43 = vld [vmem:[#allocation6 + $0x128] sm:$0xff] }
  0xcd   :  { %v6346_v49 = vcombine.high %v377_v44, %v381_v45  ;;  %v257_v50 = vld [vmem:[#allocation6 + $0x380] sm:$0xff]  ;;  %2937 = vmatprep.subr.bf16.mxu1 %v6218_v48  ;;  %v6345_v55 = vcombine.low %v377_v44, %v381_v45  ;;  %v6139_v44 = vcombine.low %v170_v32, %v174_v33  ;;  %v6148_v46 = vcombine.high %v178_v41, %v182_v43  ;;  %v186_v48 = vld [vmem:[#allocation6 + $0x148] sm:$0xff] }
  0xce   :  { %v261_v51 = vld [vmem:[#allocation6 + $0x3a0] sm:$0xff]  ;;  %2938 = vmatpush1.bf16.msra.mxu1 %v6217_v54 }
  0xcf   :  { %v385_v52 = vld [vmem:[#allocation6 + $0x780] sm:$0xff]  ;;  %v6226_v56 = vcombine.high %v257_v50, %v261_v51  ;;  %2980 = vmatprep.subr.bf16.mxu0 %v6346_v49  ;;  %v6225_v0 = vcombine.low %v257_v50, %v261_v51  ;;  %v190_v50 = vld [vmem:[#allocation6 + $0x168] sm:$0xff]  ;;  %v6147_v51 = vcombine.low %v178_v41, %v182_v43 }
  0xd0   :  { %v389_v53 = vld [vmem:[#allocation6 + $0x7a0] sm:$0xff]  ;;  %2981 = vmatpush1.bf16.msra.mxu0 %v6345_v55 }
  0xd1   :  { %v6354_v57 = vcombine.high %v385_v52, %v389_v53  ;;  %v265_v59 = vld [vmem:[#allocation6 + $0x3c0] sm:$0xff]  ;;  %2939 = vmatprep.subr.bf16.mxu1 %v6226_v56  ;;  %v6353_v1 = vcombine.low %v385_v52, %v389_v53  ;;  %v6156_v53 = vcombine.high %v186_v48, %v190_v50  ;;  %v194_v56 = vld [vmem:[#allocation6 + $0x188] sm:$0xff] }
  0xd2   :  { %v269_v61 = vld [vmem:[#allocation6 + $0x3e0] sm:$0xff]  ;;  %2940 = vmatpush1.bf16.msra.mxu1 %v6225_v0 }
  0xd3   :  { %v393_v62 = vld [vmem:[#allocation6 + $0x7c0] sm:$0xff]  ;;  %v6234_v2 = vcombine.high %v265_v59, %v269_v61  ;;  %2982 = vmatprep.subr.bf16.mxu0 %v6354_v57  ;;  %v6233_v8 = vcombine.low %v265_v59, %v269_v61  ;;  %v198_v59 = vld [vmem:[#allocation6 + $0x1a8] sm:$0xff]  ;;  %v6155_v61 = vcombine.low %v186_v48, %v190_v50 }
  0xd4   :  { %v397_v63 = vld [vmem:[#allocation6 + $0x7e0] sm:$0xff]  ;;  %2983 = vmatpush1.bf16.msra.mxu0 %v6353_v1  ;;  %v6163_v5 = vcombine.low %v194_v56, %v198_v59 }
  0xd5   :  { %v6362_v3 = vcombine.high %v393_v62, %v397_v63  ;;  %v401_v6 = vld [vmem:[#allocation6 + $0x800] sm:$0xff]  ;;  %2941 = vmatprep.subr.bf16.mxu1 %v6234_v2  ;;  %v6361_v9 = vcombine.low %v393_v62, %v397_v63  ;;  %v6164_v63 = vcombine.high %v194_v56, %v198_v59  ;;  %v202_v2 = vld [vmem:[#allocation6 + $0x1c8] sm:$0xff] }
  0xd6   :  { %v405_v7 = vld [vmem:[#allocation6 + $0x820] sm:$0xff]  ;;  %2942 = vmatpush1.bf16.msra.mxu1 %v6233_v8  ;;  %v6171_v13 = vcombine.low %v202_v2, %v206_v4 }
  0xd7   :  { %2984 = vmatprep.subr.bf16.mxu0 %v6362_v3  ;;  %v6370_v11 = vcombine.high %v401_v6, %v405_v7  ;;  %v7903_v14 = vld [vmem:[#allocation3] ss:$28 sps:$4 sm:$0xff]   ;;  %v6369_v19 = vcombine.low %v401_v6, %v405_v7  ;;  %3083 = vmatprep.subr.bf16.mxu1 %v6116_v10  ;;  %v6172_v7 = vcombine.high %v202_v2, %v206_v4 }
  0xd8   :  { %v409_v15 = vld [vmem:[#allocation6 + $0x840] sm:$0xff]  ;;  %2985 = vmatpush1.bf16.msra.mxu0 %v6361_v9  ;;  %v210_v10 = vld [vmem:[#allocation6 + $0x208] sm:$0xff] }
  0xd9   :  { %v413_v16 = vld [vmem:[#allocation6 + $0x860] sm:$0xff]  ;;  %2997 = vmatprep.subr.bf16.mxu0 %v6370_v11  ;;  %2944 = vmatmul.mubr.bf16.vlgmr.msra.gmra.mrb[0].mxu1 %v7903_v14  ;;  %v6179_v23 = vcombine.low %v210_v10, %v214_v12 }
  0xda   :  { %v6378_v22 = vcombine.high %v409_v15, %v413_v16  ;;  %v417_v26 = vld [vmem:[#allocation6 + $0x880] sm:$0xff]  ;;  %3084 = vmatpush1.bf16.msra.mxu1 %v6115_v17  ;;  %v6377_v29 = vcombine.low %v409_v15, %v413_v16  ;;  %3115 = vmatprep.mubr.bf16.mxu1 %v7895_v58  ;;  %v6180_v16 = vcombine.high %v210_v10, %v214_v12 }
  0xdb   :  { %v421_v27 = vld [vmem:[#allocation6 + $0x8a0] sm:$0xff]  ;;  %2987 = vmatmul.mubr.bf16.vlgmr.msra.gmra.mrb[0].mxu0 %v7012_v18  ;;  %3085 = vmatprep.subr.bf16.mxu1 %v6124_v20 }
  0xdc   :  { %2998 = vmatpush1.bf16.msra.mxu0 %v6369_v19  ;;  %v6386_v31 = vcombine.high %v417_v26, %v421_v27  ;;  %3029 = vmatprep.mubr.bf16.mxu0 %v7013_v25  ;;  %v425_v34 = vld [vmem:[#allocation6 + $0x8c0] sm:$0xff]  ;;  %v6385_v37 = vcombine.low %v417_v26, %v421_v27  ;;  %v218_v19 = vld [vmem:[#allocation6 + $0x248] sm:$0xff] }
  0xdd   :  { %2999 = vmatprep.subr.bf16.mxu0 %v6378_v22  ;;  %v429_v35 = vld [vmem:[#allocation6 + $0x8e0] sm:$0xff]  ;;  %v222_v22 = vld [vmem:[#allocation6 + $0x268] sm:$0xff] }
  0xde   :  { %3086 = vmatpush1.bf16.msra.mxu1 %v6123_v28  ;;  %v433_v39 = vld [vmem:[#allocation6 + $0x900] sm:$0xff]  ;;  %v6394_v42 = vcombine.high %v425_v34, %v429_v35  ;;  %v6393_v45 = vcombine.low %v425_v34, %v429_v35  ;;  %v6188_v25 = vcombine.high %v218_v19, %v222_v22  ;;  %v226_v28 = vld [vmem:[#allocation6 + $0x288] sm:$0xff] }
  0xdf   :  { %3087 = vmatprep.subr.bf16.mxu1 %v6132_v30  ;;  %v437_v40 = vld [vmem:[#allocation6 + $0x920] sm:$0xff]  ;;  %v230_v30 = vld [vmem:[#allocation6 + $0x2a8] sm:$0xff] }
  0xe0   :  { %3000 = vmatpush1.bf16.msra.mxu0 %v6377_v29  ;;  %v441_v47 = vld [vmem:[#allocation6 + $0x940] sm:$0xff]  ;;  %v6402_v49 = vcombine.high %v433_v39, %v437_v40  ;;  %v6401_v52 = vcombine.low %v433_v39, %v437_v40  ;;  %v6196_v33 = vcombine.high %v226_v28, %v230_v30  ;;  %v6195_v39 = vcombine.low %v226_v28, %v230_v30 }
  0xe1   :  { %3001 = vmatprep.subr.bf16.mxu0 %v6386_v31  ;;  %v445_v58 = vld [vmem:[#allocation6 + $0x960] sm:$0xff]  ;;  %v6187_v31 = vcombine.low %v218_v19, %v222_v22 }
  0xe2   :  { %3088 = vmatpush1.bf16.msra.mxu1 %v6131_v36  ;;  %v449_v54 = vld [vmem:[#allocation6 + $0x980] sm:$0xff]  ;;  %v6410_v57 = vcombine.high %v441_v47, %v445_v58  ;;  %v6409_v62 = vcombine.low %v441_v47, %v445_v58  ;;  %v234_v36 = vld [vmem:[#allocation6 + $0x2c8] sm:$0xff] }
  0xe3   :  { %3089 = vmatprep.subr.bf16.mxu1 %v6140_v38  ;;  %v453_v55 = vld [vmem:[#allocation6 + $0x9a0] sm:$0xff]  ;;  %v238_v38 = vld [vmem:[#allocation6 + $0x2e8] sm:$0xff] }
  0xe4   :  { %3002 = vmatpush1.bf16.msra.mxu0 %v6385_v37  ;;  %v457_v0 = vld [vmem:[#allocation6 + $0x9c0] sm:$0xff]  ;;  %v6418_v3 = vcombine.high %v449_v54, %v453_v55  ;;  %v6417_v6 = vcombine.low %v449_v54, %v453_v55  ;;  %v6204_v41 = vcombine.high %v234_v36, %v238_v38  ;;  %v6203_v47 = vcombine.low %v234_v36, %v238_v38 }
  0xe5   :  { %3003 = vmatprep.subr.bf16.mxu0 %v6394_v42  ;;  %v461_v1 = vld [vmem:[#allocation6 + $0x9e0] sm:$0xff] }
  0xe6   :  { %3090 = vmatpush1.bf16.msra.mxu1 %v6139_v44  ;;  %v465_v8 = vld [vmem:[#allocation6 + $0xa00] sm:$0xff]  ;;  %v6426_v11 = vcombine.high %v457_v0, %v461_v1  ;;  %v6425_v15 = vcombine.low %v457_v0, %v461_v1  ;;  %v242_v44 = vld [vmem:[#allocation6 + $0x308] sm:$0xff] }
  0xe7   :  { %3091 = vmatprep.subr.bf16.mxu1 %v6148_v46  ;;  %v469_v9 = vld [vmem:[#allocation6 + $0xa20] sm:$0xff]  ;;  %v246_v46 = vld [vmem:[#allocation6 + $0x328] sm:$0xff] }
  0xe8   :  { %3004 = vmatpush1.bf16.msra.mxu0 %v6393_v45  ;;  %v473_v17 = vld [vmem:[#allocation6 + $0xa40] sm:$0xff]  ;;  %v6434_v20 = vcombine.high %v465_v8, %v469_v9  ;;  %v6433_v24 = vcombine.low %v465_v8, %v469_v9  ;;  %v6212_v48 = vcombine.high %v242_v44, %v246_v46  ;;  %v6211_v54 = vcombine.low %v242_v44, %v246_v46 }
  0xe9   :  { %3005 = vmatprep.subr.bf16.mxu0 %v6402_v49  ;;  %v477_v18 = vld [vmem:[#allocation6 + $0xa60] sm:$0xff] }
  0xea   :  { %3092 = vmatpush1.bf16.msra.mxu1 %v6147_v51  ;;  %v481_v26 = vld [vmem:[#allocation6 + $0xa80] sm:$0xff]  ;;  %v6442_v29 = vcombine.high %v473_v17, %v477_v18  ;;  %v6441_v32 = vcombine.low %v473_v17, %v477_v18  ;;  %v250_v51 = vld [vmem:[#allocation6 + $0x348] sm:$0xff] }
  0xeb   :  { %3093 = vmatprep.subr.bf16.mxu1 %v6156_v53  ;;  %v485_v27 = vld [vmem:[#allocation6 + $0xaa0] sm:$0xff]  ;;  %v254_v53 = vld [vmem:[#allocation6 + $0x368] sm:$0xff] }
  0xec   :  { %3006 = vmatpush1.bf16.msra.mxu0 %v6401_v52  ;;  %v489_v34 = vld [vmem:[#allocation6 + $0xac0] sm:$0xff]  ;;  %v6450_v37 = vcombine.high %v481_v26, %v485_v27  ;;  %v6449_v40 = vcombine.low %v481_v26, %v485_v27  ;;  %v6220_v56 = vcombine.high %v250_v51, %v254_v53  ;;  %v6219_v0 = vcombine.low %v250_v51, %v254_v53  ;;  %v286_v26 = vld [vmem:[#allocation6 + $0x468] sm:$0xff] }
  0xed   :  { %3007 = vmatprep.subr.bf16.mxu0 %v6410_v57  ;;  %v493_v35 = vld [vmem:[#allocation6 + $0xae0] sm:$0xff]  ;;  %v314_v53 = vld [vmem:[#allocation6 + $0x548] sm:$0xff] }
  0xee   :  { %3094 = vmatpush1.bf16.msra.mxu1 %v6155_v61  ;;  %v497_v42 = vld [vmem:[#allocation6 + $0xb00] sm:$0xff]  ;;  %v6458_v45 = vcombine.high %v489_v34, %v493_v35  ;;  %v6457_v58 = vcombine.low %v489_v34, %v493_v35  ;;  %v258_v61 = vld [vmem:[#allocation6 + $0x388] sm:$0xff] }
  0xef   :  { %3095 = vmatprep.subr.bf16.mxu1 %v6164_v63  ;;  %v501_v43 = vld [vmem:[#allocation6 + $0xb20] sm:$0xff]  ;;  %v262_v63 = vld [vmem:[#allocation6 + $0x3a8] sm:$0xff] }
  0xf0   :  { %3008 = vmatpush1.bf16.msra.mxu0 %v6409_v62  ;;  %v505_v49 = vld [vmem:[#allocation6 + $0xb40] sm:$0xff]  ;;  %v6466_v52 = vcombine.high %v497_v42, %v501_v43  ;;  %v6465_v55 = vcombine.low %v497_v42, %v501_v43  ;;  %v6228_v2 = vcombine.high %v258_v61, %v262_v63  ;;  %v6227_v8 = vcombine.low %v258_v61, %v262_v63  ;;  %v294_v34 = vld [vmem:[#allocation6 + $0x4a8] sm:$0xff] }
  0xf1   :  { %3009 = vmatprep.subr.bf16.mxu0 %v6418_v3  ;;  %v509_v50 = vld [vmem:[#allocation6 + $0xb60] sm:$0xff]  ;;  %v302_v42 = vld [vmem:[#allocation6 + $0x4e8] sm:$0xff] }
  0xf2   :  { %3096 = vmatpush1.bf16.msra.mxu1 %v6163_v5  ;;  %v513_v57 = vld [vmem:[#allocation6 + $0xb80] sm:$0xff]  ;;  %v6474_v62 = vcombine.high %v505_v49, %v509_v50  ;;  %v6473_v1 = vcombine.low %v505_v49, %v509_v50  ;;  %v266_v5 = vld [vmem:[#allocation6 + $0x3c8] sm:$0xff] }
  0xf3   :  { %3097 = vmatprep.subr.bf16.mxu1 %v6172_v7  ;;  %v517_v59 = vld [vmem:[#allocation6 + $0xba0] sm:$0xff]  ;;  %v270_v7 = vld [vmem:[#allocation6 + $0x3e8] sm:$0xff] }
  0xf4   :  { %3010 = vmatpush1.bf16.msra.mxu0 %v6417_v6  ;;  %v521_v3 = vld [vmem:[#allocation6 + $0xbc0] sm:$0xff]  ;;  %v6482_v6 = vcombine.high %v513_v57, %v517_v59  ;;  %v6481_v9 = vcombine.low %v513_v57, %v517_v59  ;;  %v6236_v10 = vcombine.high %v266_v5, %v270_v7  ;;  %v6235_v17 = vcombine.low %v266_v5, %v270_v7  ;;  %v322_v63 = vld [vmem:[#allocation6 + $0x588] sm:$0xff] }
  0xf5   :  { %3011 = vmatprep.subr.bf16.mxu0 %v6426_v11  ;;  %v525_v4 = vld [vmem:[#allocation6 + $0xbe0] sm:$0xff] }
  0xf6   :  { %3098 = vmatpush1.bf16.msra.mxu1 %v6171_v13  ;;  %v529_v11 = vld [vmem:[#allocation6 + $0xc00] sm:$0xff]  ;;  %v274_v13 = vld [vmem:[#allocation6 + $0x408] sm:$0xff]  ;;  %v6489_v18 = vcombine.low %v521_v3, %v525_v4 }
  0xf7   :  { %3099 = vmatprep.subr.bf16.mxu1 %v6180_v16  ;;  %v533_v12 = vld [vmem:[#allocation6 + $0xc20] sm:$0xff]  ;;  %v278_v16 = vld [vmem:[#allocation6 + $0x428] sm:$0xff] }
  0xf8   :  { %3012 = vmatpush1.bf16.msra.mxu0 %v6425_v15  ;;  %v6490_v15 = vcombine.high %v521_v3, %v525_v4  ;;  %v6244_v19 = vcombine.high %v274_v13, %v278_v16  ;;  %v541_v22 = vld [vmem:[#allocation6 + $0xc60] sm:$0xff]  ;;  %v6243_v27 = vcombine.low %v274_v13, %v278_v16  ;;  %v6497_v28 = vcombine.low %v529_v11, %v533_v12  ;;  %v338_v13 = vld [vmem:[#allocation6 + $0x608] sm:$0xff]  ;;  %v147_v16 = vld [vmem:[#allocation6 + $0x10] sm:$0xff] }
  0xf9   :  { %3013 = vmatprep.subr.bf16.mxu0 %v6434_v20  ;;  %v537_v20 = vld [vmem:[#allocation6 + $0xc40] sm:$0xff] }
  0xfa   :  { %3100 = vmatpush1.bf16.msra.mxu1 %v6179_v23  ;;  %v282_v23 = vld [vmem:[#allocation6 + $0x448] sm:$0xff]  ;;  %v545_v30 = vld [vmem:[#allocation6 + $0xc80] sm:$0xff]  ;;  %v6505_v36 = vcombine.low %v537_v20, %v541_v22 }
  0xfb   :  { %3101 = vmatprep.subr.bf16.mxu1 %v6188_v25  ;;  %v7015_v25 = vld [vmem:[#allocation3 + $0x10] ss:$28 sps:$4 sm:$0xff]   ;;  %v6251_v35 = vcombine.low %v282_v23, %v286_v26  ;;  %v553_v38 = vld [vmem:[#allocation6 + $0xcc0] sm:$0xff] }
  0xfc   :  { %3014 = vmatpush1.bf16.msra.mxu0 %v6433_v24  ;;  %v6498_v24 = vcombine.high %v529_v11, %v533_v12  ;;  %v565_v46 = vld [vmem:[#allocation6 + $0xd20] sm:$0xff] }
  0xfd   :  { %3015 = vmatprep.subr.bf16.mxu0 %v6442_v29  ;;  %v6252_v29 = vcombine.high %v282_v23, %v286_v26  ;;  %v577_v61 = vld [vmem:[#allocation6 + $0xd80] sm:$0xff]  ;;  %v346_v23 = vld [vmem:[#allocation6 + $0x648] sm:$0xff] }
  0xfe   :  { %3102 = vmatpush1.bf16.msra.mxu1 %v6187_v31  ;;  %v549_v31 = vld [vmem:[#allocation6 + $0xca0] sm:$0xff] }
  0xff   :  { %3103 = vmatprep.subr.bf16.mxu1 %v6196_v33  ;;  %v6506_v33 = vcombine.high %v537_v20, %v541_v22  ;;  %v585_v5 = vld [vmem:[#allocation6 + $0xdc0] sm:$0xff] }
 0x100   :  { %3016 = vmatpush1.bf16.msra.mxu0 %v6441_v32  ;;  %v290_v32 = vld [vmem:[#allocation6 + $0x488] sm:$0xff]  ;;  %v7016_v26 = vld [vmem:[#allocation3 + $0x18] ss:$28 sps:$4 sm:$0xff]  }
 0x101   :  { %3017 = vmatprep.subr.bf16.mxu0 %v6450_v37  ;;  %v6260_v37 = vcombine.high %v290_v32, %v294_v34  ;;  %v6259_v43 = vcombine.low %v290_v32, %v294_v34  ;;  %v354_v32 = vld [vmem:[#allocation6 + $0x688] sm:$0xff]  ;;  %v163_v34 = vld [vmem:[#allocation6 + $0x90] sm:$0xff] }
 0x102   :  { %3104 = vmatpush1.bf16.msra.mxu1 %v6195_v39  ;;  %v557_v39 = vld [vmem:[#allocation6 + $0xce0] sm:$0xff] }
 0x103   :  { %3105 = vmatprep.subr.bf16.mxu1 %v6204_v41  ;;  %v6514_v41 = vcombine.high %v545_v30, %v549_v31  ;;  %v6521_v50 = vcombine.low %v553_v38, %v557_v39 }
 0x104   :  { %3018 = vmatpush1.bf16.msra.mxu0 %v6449_v40  ;;  %v298_v40 = vld [vmem:[#allocation6 + $0x4c8] sm:$0xff] }
 0x105   :  { %3019 = vmatprep.subr.bf16.mxu0 %v6458_v45  ;;  %v6268_v44 = vcombine.high %v298_v40, %v302_v42  ;;  %v561_v45 = vld [vmem:[#allocation6 + $0xd00] sm:$0xff]  ;;  %v6267_v49 = vcombine.low %v298_v40, %v302_v42  ;;  %v362_v40 = vld [vmem:[#allocation6 + $0x6c8] sm:$0xff]  ;;  %v171_v42 = vld [vmem:[#allocation6 + $0xd0] sm:$0xff] }
 0x106   :  { %3106 = vmatpush1.bf16.msra.mxu1 %v6203_v47  ;;  %v306_v47 = vld [vmem:[#allocation6 + $0x508] sm:$0xff]  ;;  %v6529_v57 = vcombine.low %v561_v45, %v565_v46 }
 0x107   :  { %3107 = vmatprep.subr.bf16.mxu1 %v6212_v48  ;;  %v310_v48 = vld [vmem:[#allocation6 + $0x528] sm:$0xff] }
 0x108   :  { %3020 = vmatpush1.bf16.msra.mxu0 %v6457_v58  ;;  %v6522_v58 = vcombine.high %v553_v38, %v557_v39  ;;  %v6276_v51 = vcombine.high %v306_v47, %v310_v48 }
 0x109   :  { %3021 = vmatprep.subr.bf16.mxu0 %v6466_v52  ;;  %v569_v52 = vld [vmem:[#allocation6 + $0xd40] sm:$0xff] }
 0x10a   :  { %3108 = vmatpush1.bf16.msra.mxu1 %v6211_v54  ;;  %v6530_v54 = vcombine.high %v561_v45, %v565_v46 }
 0x10b   :  { %3109 = vmatprep.subr.bf16.mxu1 %v6220_v56  ;;  %v6275_v56 = vcombine.low %v306_v47, %v310_v48  ;;  %v374_v48 = vld [vmem:[#allocation6 + $0x728] sm:$0xff] }
 0x10c   :  { %3022 = vmatpush1.bf16.msra.mxu0 %v6465_v55  ;;  %v318_v55 = vld [vmem:[#allocation6 + $0x568] sm:$0xff] }
 0x10d   :  { %3023 = vmatprep.subr.bf16.mxu0 %v6474_v62  ;;  %v6284_v59 = vcombine.high %v314_v53, %v318_v55  ;;  %v581_v62 = vld [vmem:[#allocation6 + $0xda0] sm:$0xff] }
 0x10e   :  { %3110 = vmatpush1.bf16.msra.mxu1 %v6219_v0  ;;  %v6546_v7 = vcombine.high %v577_v61, %v581_v62  ;;  %v6545_v11 = vcombine.low %v577_v61, %v581_v62 }
 0x10f   :  { %3111 = vmatprep.subr.bf16.mxu1 %v6228_v2  ;;  %v6283_v2 = vcombine.low %v314_v53, %v318_v55  ;;  %v382_v55 = vld [vmem:[#allocation6 + $0x768] sm:$0xff] }
 0x110   :  { %3024 = vmatpush1.bf16.msra.mxu0 %v6473_v1  ;;  %v326_v1 = vld [vmem:[#allocation6 + $0x5a8] sm:$0xff] }
 0x111   :  { %3025 = vmatprep.subr.bf16.mxu0 %v6482_v6  ;;  %v6292_v4 = vcombine.high %v322_v63, %v326_v1  ;;  %v589_v6 = vld [vmem:[#allocation6 + $0xde0] sm:$0xff] }
 0x112   :  { %3112 = vmatpush1.bf16.msra.mxu1 %v6227_v8  ;;  %v330_v8 = vld [vmem:[#allocation6 + $0x5c8] sm:$0xff]  ;;  %v6553_v20 = vcombine.low %v585_v5, %v589_v6 }
 0x113   :  { %3113 = vmatprep.subr.bf16.mxu1 %v6236_v10  ;;  %v6291_v10 = vcombine.low %v322_v63, %v326_v1  ;;  %v390_v1 = vld [vmem:[#allocation6 + $0x7a8] sm:$0xff] }
 0x114   :  { %3026 = vmatpush1.bf16.msra.mxu0 %v6481_v9  ;;  %v334_v9 = vld [vmem:[#allocation6 + $0x5e8] sm:$0xff] }
 0x115   :  { %3027 = vmatprep.subr.bf16.mxu0 %v6490_v15  ;;  %v6300_v12 = vcombine.high %v330_v8, %v334_v9  ;;  %v342_v15 = vld [vmem:[#allocation6 + $0x628] sm:$0xff] }
 0x116   :  { %3114 = vmatpush1.bf16.msra.mxu1 %v6235_v17  ;;  %v6554_v17 = vcombine.high %v585_v5, %v589_v6  ;;  %v6308_v22 = vcombine.high %v338_v13, %v342_v15 }
 0x117   :  { %3126 = vmatprep.subr.bf16.mxu1 %v6244_v19  ;;  %v6299_v19 = vcombine.low %v330_v8, %v334_v9  ;;  %v394_v8 = vld [vmem:[#allocation6 + $0x7c8] sm:$0xff] }
 0x118   :  { %3028 = vmatpush1.bf16.msra.mxu0 %v6489_v18  ;;  %v151_v18 = vld [vmem:[#allocation6 + $0x30] sm:$0xff]  ;;  %v398_v9 = vld [vmem:[#allocation6 + $0x7e8] sm:$0xff] }
 0x119   :  { %3040 = vmatprep.subr.bf16.mxu0 %v6498_v24  ;;  %3116 = vmatmul.mubr.bf16.vlgmr.msra.gmra.mrb[4].mxu1 %v7903_v14  ;;  %v6513_v14 = vcombine.low %v545_v30, %v549_v31  ;;  %v350_v24 = vld [vmem:[#allocation6 + $0x668] sm:$0xff]  ;;  %v6117_v30 = vcombine.low %v147_v16, %v151_v18 }
 0x11a   :  { %3127 = vmatpush1.bf16.msra.mxu1 %v6243_v27  ;;  %3158 = vmatprep.mubr.bf16.mxu1 %v7897_v60  ;;  %v573_v60 = vld [vmem:[#allocation6 + $0xd60] sm:$0xff]  ;;  %v6118_v27 = vcombine.high %v147_v16, %v151_v18  ;;  %v6316_v31 = vcombine.high %v346_v23, %v350_v24  ;;  %v6364_v16 = vcombine.high %v394_v8, %v398_v9  ;;  %v406_v18 = vld [vmem:[#allocation6 + $0x828] sm:$0xff] }
 0x11b   :  { %3030 = vmatmul.mubr.bf16.vlgmr.msra.gmra.mrb[0].mxu0 %v7015_v25  ;;  %3128 = vmatprep.subr.bf16.mxu1 %v6252_v29  ;;  %v6538_v0 = vcombine.high %v569_v52, %v573_v60  ;;  %v6537_v3 = vcombine.low %v569_v52, %v573_v60  ;;  %v155_v25 = vld [vmem:[#allocation6 + $0x50] sm:$0xff]  ;;  %v6307_v29 = vcombine.low %v338_v13, %v342_v15 }
 0x11c   :  { %3041 = vmatpush1.bf16.msra.mxu0 %v6497_v28  ;;  %3072 = vmatprep.mubr.bf16.mxu0 %v7744_v21  ;;  %v159_v28 = vld [vmem:[#allocation6 + $0x70] sm:$0xff] }
 0x11d   :  { %3042 = vmatprep.subr.bf16.mxu0 %v6506_v33  ;;  %v358_v33 = vld [vmem:[#allocation6 + $0x6a8] sm:$0xff]  ;;  %v6125_v38 = vcombine.low %v155_v25, %v159_v28 }
 0x11e   :  { %3129 = vmatpush1.bf16.msra.mxu1 %v6251_v35  ;;  %v6126_v35 = vcombine.high %v155_v25, %v159_v28  ;;  %v6324_v39 = vcombine.high %v354_v32, %v358_v33  ;;  %v6323_v45 = vcombine.low %v354_v32, %v358_v33  ;;  %v219_v28 = vld [vmem:[#allocation6 + $0x250] sm:$0xff] }
 0x11f   :  { %3130 = vmatprep.subr.bf16.mxu1 %v6260_v37  ;;  %v6315_v37 = vcombine.low %v346_v23, %v350_v24  ;;  %v6363_v23 = vcombine.low %v394_v8, %v398_v9 }
 0x120   :  { %3043 = vmatpush1.bf16.msra.mxu0 %v6505_v36  ;;  %v167_v36 = vld [vmem:[#allocation6 + $0xb0] sm:$0xff] }
 0x121   :  { %3044 = vmatprep.subr.bf16.mxu0 %v6514_v41  ;;  %v366_v41 = vld [vmem:[#allocation6 + $0x6e8] sm:$0xff]  ;;  %v6133_v46 = vcombine.low %v163_v34, %v167_v36 }
 0x122   :  { %3131 = vmatpush1.bf16.msra.mxu1 %v6259_v43  ;;  %v6134_v43 = vcombine.high %v163_v34, %v167_v36  ;;  %v6332_v47 = vcombine.high %v362_v40, %v366_v41  ;;  %v6331_v52 = vcombine.low %v362_v40, %v366_v41  ;;  %v418_v34 = vld [vmem:[#allocation6 + $0x888] sm:$0xff]  ;;  %v227_v36 = vld [vmem:[#allocation6 + $0x290] sm:$0xff]  ;;  %v7913_v41 = vld [vmem:[#allocation3 + $0x14] ss:$28 sps:$4 sm:$0xff]  }
 0x123   :  { %3132 = vmatprep.subr.bf16.mxu1 %v6268_v44  ;;  %v7505_v44 = vld [vmem:[#allocation3 + $0x4] ss:$28 sps:$4 sm:$0xff]  }
 0x124   :  { %3045 = vmatpush1.bf16.msra.mxu0 %v6513_v14  ;;  %v175_v14 = vld [vmem:[#allocation6 + $0xf0] sm:$0xff] }
 0x125   :  { %3046 = vmatprep.subr.bf16.mxu0 %v6522_v58  ;;  %v370_v58 = vld [vmem:[#allocation6 + $0x708] sm:$0xff]  ;;  %v6141_v60 = vcombine.low %v171_v42, %v175_v14 }
 0x126   :  { %3133 = vmatpush1.bf16.msra.mxu1 %v6267_v49  ;;  %v179_v49 = vld [vmem:[#allocation6 + $0x110] sm:$0xff]  ;;  %v6340_v53 = vcombine.high %v370_v58, %v374_v48  ;;  %v6339_v61 = vcombine.low %v370_v58, %v374_v48 }
 0x127   :  { %3134 = vmatprep.subr.bf16.mxu1 %v6276_v51  ;;  %v183_v51 = vld [vmem:[#allocation6 + $0x130] sm:$0xff] }
 0x128   :  { %3047 = vmatpush1.bf16.msra.mxu0 %v6521_v50  ;;  %v6142_v50 = vcombine.high %v171_v42, %v175_v14  ;;  %v6149_v62 = vcombine.low %v179_v49, %v183_v51  ;;  %v426_v14 = vld [vmem:[#allocation6 + $0x8c8] sm:$0xff] }
 0x129   :  { %3048 = vmatprep.subr.bf16.mxu0 %v6530_v54  ;;  %v378_v54 = vld [vmem:[#allocation6 + $0x748] sm:$0xff] }
 0x12a   :  { %3135 = vmatpush1.bf16.msra.mxu1 %v6275_v56  ;;  %v187_v56 = vld [vmem:[#allocation6 + $0x150] sm:$0xff]  ;;  %v6348_v63 = vcombine.high %v378_v54, %v382_v55  ;;  %v6347_v5 = vcombine.low %v378_v54, %v382_v55 }
 0x12b   :  { %3136 = vmatprep.subr.bf16.mxu1 %v6284_v59  ;;  %v191_v59 = vld [vmem:[#allocation6 + $0x170] sm:$0xff] }
 0x12c   :  { %3049 = vmatpush1.bf16.msra.mxu0 %v6529_v57  ;;  %v6150_v57 = vcombine.high %v179_v49, %v183_v51  ;;  %v6157_v6 = vcombine.low %v187_v56, %v191_v59  ;;  %v438_v51 = vld [vmem:[#allocation6 + $0x928] sm:$0xff] }
 0x12d   :  { %3050 = vmatprep.subr.bf16.mxu0 %v6538_v0  ;;  %v386_v0 = vld [vmem:[#allocation6 + $0x788] sm:$0xff] }
 0x12e   :  { %3137 = vmatpush1.bf16.msra.mxu1 %v6283_v2  ;;  %v195_v2 = vld [vmem:[#allocation6 + $0x190] sm:$0xff]  ;;  %v6355_v13 = vcombine.low %v386_v0, %v390_v1 }
 0x12f   :  { %3138 = vmatprep.subr.bf16.mxu1 %v6292_v4  ;;  %v199_v4 = vld [vmem:[#allocation6 + $0x1b0] sm:$0xff] }
 0x130   :  { %3051 = vmatpush1.bf16.msra.mxu0 %v6537_v3  ;;  %v6158_v3 = vcombine.high %v187_v56, %v191_v59  ;;  %v6165_v15 = vcombine.low %v195_v2, %v199_v4  ;;  %v446_v59 = vld [vmem:[#allocation6 + $0x968] sm:$0xff] }
 0x131   :  { %3052 = vmatprep.subr.bf16.mxu0 %v6546_v7  ;;  %v6356_v7 = vcombine.high %v386_v0, %v390_v1 }
 0x132   :  { %3139 = vmatpush1.bf16.msra.mxu1 %v6291_v10  ;;  %v203_v10 = vld [vmem:[#allocation6 + $0x1d0] sm:$0xff] }
 0x133   :  { %3140 = vmatprep.subr.bf16.mxu1 %v6300_v12  ;;  %v207_v12 = vld [vmem:[#allocation6 + $0x1f0] sm:$0xff] }
 0x134   :  { %3053 = vmatpush1.bf16.msra.mxu0 %v6545_v11  ;;  %v6166_v11 = vcombine.high %v195_v2, %v199_v4  ;;  %v6173_v24 = vcombine.low %v203_v10, %v207_v12  ;;  %v454_v4 = vld [vmem:[#allocation6 + $0x9a8] sm:$0xff] }
 0x135   :  { %3054 = vmatprep.subr.bf16.mxu0 %v6554_v17  ;;  %v402_v17 = vld [vmem:[#allocation6 + $0x808] sm:$0xff] }
 0x136   :  { %3141 = vmatpush1.bf16.msra.mxu1 %v6299_v19  ;;  %v211_v19 = vld [vmem:[#allocation6 + $0x210] sm:$0xff]  ;;  %v6372_v25 = vcombine.high %v402_v17, %v406_v18 }
 0x137   :  { %3142 = vmatprep.subr.bf16.mxu1 %v6308_v22  ;;  %v215_v22 = vld [vmem:[#allocation6 + $0x230] sm:$0xff] }
 0x138   :  { %3055 = vmatpush1.bf16.msra.mxu0 %v6553_v20  ;;  %v6174_v20 = vcombine.high %v203_v10, %v207_v12  ;;  %v6181_v32 = vcombine.low %v211_v19, %v215_v22  ;;  %v462_v12 = vld [vmem:[#allocation6 + $0x9e8] sm:$0xff] }
 0x139   :  { %3255 = vmatprep.subr.bf16.mxu0 %v6118_v27  ;;  %v414_v27 = vld [vmem:[#allocation6 + $0x868] sm:$0xff] }
 0x13a   :  { %3143 = vmatpush1.bf16.msra.mxu1 %v6307_v29  ;;  %v6182_v29 = vcombine.high %v211_v19, %v215_v22  ;;  %v470_v22 = vld [vmem:[#allocation6 + $0xa28] sm:$0xff] }
 0x13b   :  { %3073 = vmatmul.mubr.bf16.vlgmr.msra.gmra.mrb[0].mxu0 %v7016_v26  ;;  %3144 = vmatprep.subr.bf16.mxu1 %v6316_v31  ;;  %v410_v26 = vld [vmem:[#allocation6 + $0x848] sm:$0xff]  ;;  %v6371_v31 = vcombine.low %v402_v17, %v406_v18 }
 0x13c   :  { %3256 = vmatpush1.bf16.msra.mxu0 %v6117_v30  ;;  %3287 = vmatprep.mubr.bf16.mxu0 %v7505_v44  ;;  %v223_v30 = vld [vmem:[#allocation6 + $0x270] sm:$0xff]  ;;  %v6380_v33 = vcombine.high %v410_v26, %v414_v27  ;;  %v6379_v40 = vcombine.low %v410_v26, %v414_v27  ;;  %v430_v44 = vld [vmem:[#allocation6 + $0x8e8] sm:$0xff] }
 0x13d   :  { %3257 = vmatprep.subr.bf16.mxu0 %v6126_v35  ;;  %v422_v35 = vld [vmem:[#allocation6 + $0x8a8] sm:$0xff]  ;;  %v6189_v42 = vcombine.low %v219_v28, %v223_v30  ;;  %v6396_v49 = vcombine.high %v426_v14, %v430_v44  ;;  %v6395_v54 = vcombine.low %v426_v14, %v430_v44 }
 0x13e   :  { %3145 = vmatpush1.bf16.msra.mxu1 %v6315_v37  ;;  %v6190_v37 = vcombine.high %v219_v28, %v223_v30  ;;  %v6387_v58 = vcombine.low %v418_v34, %v422_v35  ;;  %v478_v30 = vld [vmem:[#allocation6 + $0xa68] sm:$0xff] }
 0x13f   :  { %3146 = vmatprep.subr.bf16.mxu1 %v6324_v39  ;;  %v7910_v39 = vld [vmem:[#allocation3 + $0x8] ss:$28 sps:$4 sm:$0xff]   ;;  %v7916_v14 = vld [vmem:[#allocation3] ss:$28 sps:$4 sm:$0xff]  }
 0x140   :  { %3258 = vmatpush1.bf16.msra.mxu0 %v6125_v38  ;;  %v231_v38 = vld [vmem:[#allocation6 + $0x2b0] sm:$0xff] }
 0x141   :  { %3259 = vmatprep.subr.bf16.mxu0 %v6134_v43  ;;  %v6388_v43 = vcombine.high %v418_v34, %v422_v35  ;;  %v6197_v48 = vcombine.low %v227_v36, %v231_v38 }
 0x142   :  { %3147 = vmatpush1.bf16.msra.mxu1 %v6323_v45  ;;  %v235_v45 = vld [vmem:[#allocation6 + $0x2d0] sm:$0xff] }
 0x143   :  { %3148 = vmatprep.subr.bf16.mxu1 %v6332_v47  ;;  %v239_v47 = vld [vmem:[#allocation6 + $0x2f0] sm:$0xff] }
 0x144   :  { %3260 = vmatpush1.bf16.msra.mxu0 %v6133_v46  ;;  %v6198_v46 = vcombine.high %v227_v36, %v231_v38  ;;  %v6205_v55 = vcombine.low %v235_v45, %v239_v47  ;;  %v486_v38 = vld [vmem:[#allocation6 + $0xaa8] sm:$0xff] }
 0x145   :  { %3261 = vmatprep.subr.bf16.mxu0 %v6142_v50  ;;  %v434_v50 = vld [vmem:[#allocation6 + $0x908] sm:$0xff] }
 0x146   :  { %3149 = vmatpush1.bf16.msra.mxu1 %v6331_v52  ;;  %v243_v52 = vld [vmem:[#allocation6 + $0x310] sm:$0xff]  ;;  %v6404_v56 = vcombine.high %v434_v50, %v438_v51  ;;  %v6403_v0 = vcombine.low %v434_v50, %v438_v51 }
 0x147   :  { %3150 = vmatprep.subr.bf16.mxu1 %v6340_v53  ;;  %v247_v53 = vld [vmem:[#allocation6 + $0x330] sm:$0xff] }
 0x148   :  { %3262 = vmatpush1.bf16.msra.mxu0 %v6141_v60  ;;  %v6206_v60 = vcombine.high %v235_v45, %v239_v47  ;;  %v6213_v1 = vcombine.low %v243_v52, %v247_v53  ;;  %v490_v47 = vld [vmem:[#allocation6 + $0xac8] sm:$0xff]  ;;  %v303_v50 = vld [vmem:[#allocation6 + $0x4f0] sm:$0xff] }
 0x149   :  { %3263 = vmatprep.subr.bf16.mxu0 %v6150_v57  ;;  %v442_v57 = vld [vmem:[#allocation6 + $0x948] sm:$0xff]  ;;  %v7919_v51 = vld [vmem:[#allocation3 + $0xc] ss:$28 sps:$4 sm:$0xff]  }
 0x14a   :  { %3151 = vmatpush1.bf16.msra.mxu1 %v6339_v61  ;;  %v251_v61 = vld [vmem:[#allocation6 + $0x350] sm:$0xff]  ;;  %v6412_v2 = vcombine.high %v442_v57, %v446_v59  ;;  %v6411_v8 = vcombine.low %v442_v57, %v446_v59 }
 0x14b   :  { %3152 = vmatprep.subr.bf16.mxu1 %v6348_v63  ;;  %v255_v63 = vld [vmem:[#allocation6 + $0x370] sm:$0xff] }
 0x14c   :  { %3264 = vmatpush1.bf16.msra.mxu0 %v6149_v62  ;;  %v6214_v62 = vcombine.high %v243_v52, %v247_v53  ;;  %v6221_v9 = vcombine.low %v251_v61, %v255_v63  ;;  %v307_v57 = vld [vmem:[#allocation6 + $0x510] sm:$0xff] }
 0x14d   :  { %3265 = vmatprep.subr.bf16.mxu0 %v6158_v3  ;;  %v450_v3 = vld [vmem:[#allocation6 + $0x988] sm:$0xff]  ;;  %v311_v59 = vld [vmem:[#allocation6 + $0x530] sm:$0xff] }
 0x14e   :  { %3153 = vmatpush1.bf16.msra.mxu1 %v6347_v5  ;;  %v259_v5 = vld [vmem:[#allocation6 + $0x390] sm:$0xff]  ;;  %v6420_v10 = vcombine.high %v450_v3, %v454_v4  ;;  %v6419_v17 = vcombine.low %v450_v3, %v454_v4 }
 0x14f   :  { %3154 = vmatprep.subr.bf16.mxu1 %v6356_v7  ;;  %v263_v7 = vld [vmem:[#allocation6 + $0x3b0] sm:$0xff] }
 0x150   :  { %3266 = vmatpush1.bf16.msra.mxu0 %v6157_v6  ;;  %v6222_v6 = vcombine.high %v251_v61, %v255_v63  ;;  %v6229_v18 = vcombine.low %v259_v5, %v263_v7  ;;  %v315_v3 = vld [vmem:[#allocation6 + $0x550] sm:$0xff] }
 0x151   :  { %3267 = vmatprep.subr.bf16.mxu0 %v6166_v11  ;;  %v458_v11 = vld [vmem:[#allocation6 + $0x9c8] sm:$0xff]  ;;  %v319_v4 = vld [vmem:[#allocation6 + $0x570] sm:$0xff] }
 0x152   :  { %3155 = vmatpush1.bf16.msra.mxu1 %v6355_v13  ;;  %v267_v13 = vld [vmem:[#allocation6 + $0x3d0] sm:$0xff]  ;;  %v6428_v19 = vcombine.high %v458_v11, %v462_v12  ;;  %v6427_v26 = vcombine.low %v458_v11, %v462_v12 }
 0x153   :  { %3156 = vmatprep.subr.bf16.mxu1 %v6364_v16  ;;  %v271_v16 = vld [vmem:[#allocation6 + $0x3f0] sm:$0xff] }
 0x154   :  { %3268 = vmatpush1.bf16.msra.mxu0 %v6165_v15  ;;  %v6230_v15 = vcombine.high %v259_v5, %v263_v7  ;;  %v6237_v27 = vcombine.low %v267_v13, %v271_v16  ;;  %v323_v11 = vld [vmem:[#allocation6 + $0x590] sm:$0xff] }
 0x155   :  { %3269 = vmatprep.subr.bf16.mxu0 %v6174_v20  ;;  %v466_v20 = vld [vmem:[#allocation6 + $0xa08] sm:$0xff]  ;;  %v327_v12 = vld [vmem:[#allocation6 + $0x5b0] sm:$0xff] }
 0x156   :  { %3157 = vmatpush1.bf16.msra.mxu1 %v6363_v23  ;;  %v275_v23 = vld [vmem:[#allocation6 + $0x410] sm:$0xff]  ;;  %v6436_v28 = vcombine.high %v466_v20, %v470_v22  ;;  %v6435_v34 = vcombine.low %v466_v20, %v470_v22 }
 0x157   :  { %3169 = vmatprep.subr.bf16.mxu1 %v6372_v25  ;;  %v279_v25 = vld [vmem:[#allocation6 + $0x430] sm:$0xff] }
 0x158   :  { %3270 = vmatpush1.bf16.msra.mxu0 %v6173_v24  ;;  %v6238_v24 = vcombine.high %v267_v13, %v271_v16  ;;  %v6245_v35 = vcombine.low %v275_v23, %v279_v25  ;;  %v331_v20 = vld [vmem:[#allocation6 + $0x5d0] sm:$0xff] }
 0x159   :  { %3271 = vmatprep.subr.bf16.mxu0 %v6182_v29  ;;  %3159 = vmatmul.mubr.bf16.vlgmr.msra.gmra.mrb[4].mxu1 %v7910_v39  ;;  %v474_v29 = vld [vmem:[#allocation6 + $0xa48] sm:$0xff]  ;;  %v335_v22 = vld [vmem:[#allocation6 + $0x5f0] sm:$0xff] }
 0x15a   :  { %3170 = vmatpush1.bf16.msra.mxu1 %v6371_v31  ;;  %3201 = vmatprep.mubr.bf16.mxu1 %v7913_v41  ;;  %v283_v31 = vld [vmem:[#allocation6 + $0x450] sm:$0xff]  ;;  %v6444_v36 = vcombine.high %v474_v29, %v478_v30  ;;  %v6443_v44 = vcombine.low %v474_v29, %v478_v30 }
 0x15b   :  { %3171 = vmatprep.subr.bf16.mxu1 %v6380_v33  ;;  %v287_v33 = vld [vmem:[#allocation6 + $0x470] sm:$0xff] }
 0x15c   :  { %3272 = vmatpush1.bf16.msra.mxu0 %v6181_v32  ;;  %v6246_v32 = vcombine.high %v275_v23, %v279_v25  ;;  %v6253_v45 = vcombine.low %v283_v31, %v287_v33  ;;  %v339_v29 = vld [vmem:[#allocation6 + $0x610] sm:$0xff] }
 0x15d   :  { %3273 = vmatprep.subr.bf16.mxu0 %v6190_v37  ;;  %v482_v37 = vld [vmem:[#allocation6 + $0xa88] sm:$0xff]  ;;  %v343_v30 = vld [vmem:[#allocation6 + $0x630] sm:$0xff] }
 0x15e   :  { %3172 = vmatpush1.bf16.msra.mxu1 %v6379_v40  ;;  %v291_v40 = vld [vmem:[#allocation6 + $0x490] sm:$0xff]  ;;  %v6451_v52 = vcombine.low %v482_v37, %v486_v38 }
 0x15f   :  { %3173 = vmatprep.subr.bf16.mxu1 %v6388_v43  ;;  %v295_v43 = vld [vmem:[#allocation6 + $0x4b0] sm:$0xff] }
 0x160   :  { %3274 = vmatpush1.bf16.msra.mxu0 %v6189_v42  ;;  %v6254_v42 = vcombine.high %v283_v31, %v287_v33 }
 0x161   :  { %3275 = vmatprep.subr.bf16.mxu0 %v6198_v46  ;;  %v6452_v46 = vcombine.high %v482_v37, %v486_v38  ;;  %v347_v37 = vld [vmem:[#allocation6 + $0x650] sm:$0xff] }
 0x162   :  { %3174 = vmatpush1.bf16.msra.mxu1 %v6387_v58  ;;  %v494_v58 = vld [vmem:[#allocation6 + $0xae8] sm:$0xff]  ;;  %v351_v38 = vld [vmem:[#allocation6 + $0x670] sm:$0xff] }
 0x163   :  { %3175 = vmatprep.subr.bf16.mxu1 %v6396_v49  ;;  %v6262_v49 = vcombine.high %v291_v40, %v295_v43  ;;  %v6460_v53 = vcombine.high %v490_v47, %v494_v58  ;;  %v6459_v61 = vcombine.low %v490_v47, %v494_v58  ;;  %v7922_v47 = vld [vmem:[#allocation3 + $0x10] ss:$28 sps:$4 sm:$0xff]  }
 0x164   :  { %3276 = vmatpush1.bf16.msra.mxu0 %v6197_v48  ;;  %v299_v48 = vld [vmem:[#allocation6 + $0x4d0] sm:$0xff] }
 0x165   :  { %3277 = vmatprep.subr.bf16.mxu0 %v6206_v60  ;;  %v6261_v60 = vcombine.low %v291_v40, %v295_v43  ;;  %v355_v58 = vld [vmem:[#allocation6 + $0x690] sm:$0xff] }
 0x166   :  { %3176 = vmatpush1.bf16.msra.mxu1 %v6395_v54  ;;  %v6270_v54 = vcombine.high %v299_v48, %v303_v50 }
 0x167   :  { %3177 = vmatprep.subr.bf16.mxu1 %v6404_v56  ;;  %v502_v56 = vld [vmem:[#allocation6 + $0xb28] sm:$0xff] }
 0x168   :  { %3278 = vmatpush1.bf16.msra.mxu0 %v6205_v55  ;;  %v498_v55 = vld [vmem:[#allocation6 + $0xb08] sm:$0xff] }
 0x169   :  { %3279 = vmatprep.subr.bf16.mxu0 %v6214_v62  ;;  %v6269_v62 = vcombine.low %v299_v48, %v303_v50  ;;  %v6468_v63 = vcombine.high %v498_v55, %v502_v56  ;;  %v6467_v5 = vcombine.low %v498_v55, %v502_v56  ;;  %v359_v48 = vld [vmem:[#allocation6 + $0x6b0] sm:$0xff]  ;;  %v6317_v50 = vcombine.low %v347_v37, %v351_v38 }
 0x16a   :  { %3178 = vmatpush1.bf16.msra.mxu1 %v6403_v0  ;;  %v6278_v0 = vcombine.high %v307_v57, %v311_v59  ;;  %v363_v55 = vld [vmem:[#allocation6 + $0x6d0] sm:$0xff] }
 0x16b   :  { %3179 = vmatprep.subr.bf16.mxu1 %v6412_v2  ;;  %v510_v2 = vld [vmem:[#allocation6 + $0xb68] sm:$0xff]  ;;  %v367_v56 = vld [vmem:[#allocation6 + $0x6f0] sm:$0xff] }
 0x16c   :  { %3280 = vmatpush1.bf16.msra.mxu0 %v6213_v1  ;;  %v506_v1 = vld [vmem:[#allocation6 + $0xb48] sm:$0xff] }
 0x16d   :  { %3281 = vmatprep.subr.bf16.mxu0 %v6222_v6  ;;  %v6277_v6 = vcombine.low %v307_v57, %v311_v59  ;;  %v6476_v7 = vcombine.high %v506_v1, %v510_v2  ;;  %v6475_v13 = vcombine.low %v506_v1, %v510_v2  ;;  %v6325_v59 = vcombine.low %v355_v58, %v359_v48  ;;  %v371_v1 = vld [vmem:[#allocation6 + $0x710] sm:$0xff] }
 0x16e   :  { %3180 = vmatpush1.bf16.msra.mxu1 %v6411_v8  ;;  %v6286_v8 = vcombine.high %v315_v3, %v319_v4  ;;  %v375_v2 = vld [vmem:[#allocation6 + $0x730] sm:$0xff] }
 0x16f   :  { %3181 = vmatprep.subr.bf16.mxu1 %v6420_v10  ;;  %v518_v10 = vld [vmem:[#allocation6 + $0xba8] sm:$0xff] }
 0x170   :  { %3282 = vmatpush1.bf16.msra.mxu0 %v6221_v9  ;;  %v514_v9 = vld [vmem:[#allocation6 + $0xb88] sm:$0xff] }
 0x171   :  { %3283 = vmatprep.subr.bf16.mxu0 %v6230_v15  ;;  %v6285_v15 = vcombine.low %v315_v3, %v319_v4  ;;  %v6484_v16 = vcombine.high %v514_v9, %v518_v10  ;;  %v6483_v23 = vcombine.low %v514_v9, %v518_v10  ;;  %v6333_v4 = vcombine.low %v363_v55, %v367_v56  ;;  %v379_v9 = vld [vmem:[#allocation6 + $0x750] sm:$0xff] }
 0x172   :  { %3182 = vmatpush1.bf16.msra.mxu1 %v6419_v17  ;;  %v6294_v17 = vcombine.high %v323_v11, %v327_v12  ;;  %v383_v10 = vld [vmem:[#allocation6 + $0x770] sm:$0xff] }
 0x173   :  { %3183 = vmatprep.subr.bf16.mxu1 %v6428_v19  ;;  %v526_v19 = vld [vmem:[#allocation6 + $0xbe8] sm:$0xff] }
 0x174   :  { %3284 = vmatpush1.bf16.msra.mxu0 %v6229_v18  ;;  %v522_v18 = vld [vmem:[#allocation6 + $0xbc8] sm:$0xff] }
 0x175   :  { %3285 = vmatprep.subr.bf16.mxu0 %v6238_v24  ;;  %v6293_v24 = vcombine.low %v323_v11, %v327_v12  ;;  %v6492_v25 = vcombine.high %v522_v18, %v526_v19  ;;  %v6491_v31 = vcombine.low %v522_v18, %v526_v19  ;;  %v6341_v12 = vcombine.low %v371_v1, %v375_v2  ;;  %v387_v18 = vld [vmem:[#allocation6 + $0x790] sm:$0xff] }
 0x176   :  { %3184 = vmatpush1.bf16.msra.mxu1 %v6427_v26  ;;  %v6302_v26 = vcombine.high %v331_v20, %v335_v22  ;;  %v391_v19 = vld [vmem:[#allocation6 + $0x7b0] sm:$0xff] }
 0x177   :  { %3185 = vmatprep.subr.bf16.mxu1 %v6436_v28  ;;  %v534_v28 = vld [vmem:[#allocation6 + $0xc28] sm:$0xff] }
 0x178   :  { %3286 = vmatpush1.bf16.msra.mxu0 %v6237_v27  ;;  %v530_v27 = vld [vmem:[#allocation6 + $0xc08] sm:$0xff] }
 0x179   :  { %3298 = vmatprep.subr.bf16.mxu0 %v6246_v32  ;;  %v6301_v32 = vcombine.low %v331_v20, %v335_v22  ;;  %v6500_v33 = vcombine.high %v530_v27, %v534_v28  ;;  %v6499_v40 = vcombine.low %v530_v27, %v534_v28  ;;  %v6349_v22 = vcombine.low %v379_v9, %v383_v10  ;;  %v590_v27 = vld [vmem:[#allocation6 + $0xde8] sm:$0xff] }
 0x17a   :  { %3186 = vmatpush1.bf16.msra.mxu1 %v6435_v34  ;;  %v6310_v34 = vcombine.high %v339_v29, %v343_v30 }
 0x17b   :  { %3288 = vmatmul.mubr.bf16.vlgmr.msra.gmra.mrb[4].mxu0 %v7916_v14  ;;  %3187 = vmatprep.subr.bf16.mxu1 %v6444_v36  ;;  %v542_v36 = vld [vmem:[#allocation6 + $0xc68] sm:$0xff] }
 0x17c   :  { %3299 = vmatpush1.bf16.msra.mxu0 %v6245_v35  ;;  %3330 = vmatprep.mubr.bf16.mxu0 %v7919_v51  ;;  %v538_v35 = vld [vmem:[#allocation6 + $0xc48] sm:$0xff] }
 0x17d   :  { %3300 = vmatprep.subr.bf16.mxu0 %v6254_v42  ;;  %v6309_v42 = vcombine.low %v339_v29, %v343_v30  ;;  %v6508_v43 = vcombine.high %v538_v35, %v542_v36  ;;  %v395_v29 = vld [vmem:[#allocation6 + $0x7d0] sm:$0xff] }
 0x17e   :  { %3188 = vmatpush1.bf16.msra.mxu1 %v6443_v44  ;;  %v6318_v44 = vcombine.high %v347_v37, %v351_v38  ;;  %v399_v30 = vld [vmem:[#allocation6 + $0x7f0] sm:$0xff]  ;;  %v148_v37 = vld [vmem:[#allocation6 + $0x18] sm:$0xff] }
 0x17f   :  { %3189 = vmatprep.subr.bf16.mxu1 %v6452_v46  ;;  %v550_v46 = vld [vmem:[#allocation6 + $0xca8] sm:$0xff]  ;;  %v152_v38 = vld [vmem:[#allocation6 + $0x38] sm:$0xff] }
 0x180   :  { %3301 = vmatpush1.bf16.msra.mxu0 %v6253_v45  ;;  %v546_v45 = vld [vmem:[#allocation6 + $0xc88] sm:$0xff] }
 0x181   :  { %3302 = vmatprep.subr.bf16.mxu0 %v6262_v49  ;;  %v6507_v49 = vcombine.low %v538_v35, %v542_v36  ;;  %v6515_v57 = vcombine.low %v546_v45, %v550_v46  ;;  %v6366_v36 = vcombine.high %v395_v29, %v399_v30 }
 0x182   :  { %3190 = vmatpush1.bf16.msra.mxu1 %v6451_v52  ;;  %v6516_v52 = vcombine.high %v546_v45, %v550_v46  ;;  %v6120_v45 = vcombine.high %v148_v37, %v152_v38 }
 0x183   :  { %3191 = vmatprep.subr.bf16.mxu1 %v6460_v53  ;;  %v554_v53 = vld [vmem:[#allocation6 + $0xcc8] sm:$0xff] }
 0x184   :  { %3303 = vmatpush1.bf16.msra.mxu0 %v6261_v60  ;;  %v6326_v60 = vcombine.high %v355_v58, %v359_v48  ;;  %v156_v58 = vld [vmem:[#allocation6 + $0x58] sm:$0xff] }
 0x185   :  { %3304 = vmatprep.subr.bf16.mxu0 %v6270_v54  ;;  %v558_v54 = vld [vmem:[#allocation6 + $0xce8] sm:$0xff]  ;;  %v160_v48 = vld [vmem:[#allocation6 + $0x78] sm:$0xff] }
 0x186   :  { %3192 = vmatpush1.bf16.msra.mxu1 %v6459_v61  ;;  %v6524_v61 = vcombine.high %v554_v53, %v558_v54  ;;  %v6523_v3 = vcombine.low %v554_v53, %v558_v54  ;;  %v6128_v53 = vcombine.high %v156_v58, %v160_v48 }
 0x187   :  { %3193 = vmatprep.subr.bf16.mxu1 %v6468_v63  ;;  %v562_v63 = vld [vmem:[#allocation6 + $0xd08] sm:$0xff] }
 0x188   :  { %3305 = vmatpush1.bf16.msra.mxu0 %v6269_v62  ;;  %v6334_v62 = vcombine.high %v363_v55, %v367_v56  ;;  %v164_v55 = vld [vmem:[#allocation6 + $0x98] sm:$0xff] }
 0x189   :  { %3306 = vmatprep.subr.bf16.mxu0 %v6278_v0  ;;  %v566_v0 = vld [vmem:[#allocation6 + $0xd28] sm:$0xff]  ;;  %v168_v56 = vld [vmem:[#allocation6 + $0xb8] sm:$0xff] }
 0x18a   :  { %3194 = vmatpush1.bf16.msra.mxu1 %v6467_v5  ;;  %v6532_v5 = vcombine.high %v562_v63, %v566_v0  ;;  %v6531_v11 = vcombine.low %v562_v63, %v566_v0  ;;  %v6136_v0 = vcombine.high %v164_v55, %v168_v56 }
 0x18b   :  { %3195 = vmatprep.subr.bf16.mxu1 %v6476_v7  ;;  %v570_v7 = vld [vmem:[#allocation6 + $0xd48] sm:$0xff] }
 0x18c   :  { %3307 = vmatpush1.bf16.msra.mxu0 %v6277_v6  ;;  %v6342_v6 = vcombine.high %v371_v1, %v375_v2  ;;  %v172_v2 = vld [vmem:[#allocation6 + $0xd8] sm:$0xff] }
 0x18d   :  { %3308 = vmatprep.subr.bf16.mxu0 %v6286_v8  ;;  %v574_v8 = vld [vmem:[#allocation6 + $0xd68] sm:$0xff] }
 0x18e   :  { %3196 = vmatpush1.bf16.msra.mxu1 %v6475_v13  ;;  %v6540_v13 = vcombine.high %v570_v7, %v574_v8  ;;  %v6539_v20 = vcombine.low %v570_v7, %v574_v8  ;;  %v6135_v7 = vcombine.low %v164_v55, %v168_v56 }
 0x18f   :  { %3197 = vmatprep.subr.bf16.mxu1 %v6484_v16  ;;  %v578_v16 = vld [vmem:[#allocation6 + $0xd88] sm:$0xff] }
 0x190   :  { %3309 = vmatpush1.bf16.msra.mxu0 %v6285_v15  ;;  %v6350_v15 = vcombine.high %v379_v9, %v383_v10  ;;  %v180_v10 = vld [vmem:[#allocation6 + $0x118] sm:$0xff] }
 0x191   :  { %3310 = vmatprep.subr.bf16.mxu0 %v6294_v17  ;;  %v582_v17 = vld [vmem:[#allocation6 + $0xda8] sm:$0xff] }
 0x192   :  { %3198 = vmatpush1.bf16.msra.mxu1 %v6483_v23  ;;  %v6548_v23 = vcombine.high %v578_v16, %v582_v17 }
 0x193   :  { %3199 = vmatprep.subr.bf16.mxu1 %v6492_v25  ;;  %v6358_v25 = vcombine.high %v387_v18, %v391_v19 }
 0x194   :  { %3311 = vmatpush1.bf16.msra.mxu0 %v6293_v24 }
 0x195   :  { %3312 = vmatprep.subr.bf16.mxu0 %v6302_v26  ;;  %v586_v26 = vld [vmem:[#allocation6 + $0xdc8] sm:$0xff] }
 0x196   :  { %3200 = vmatpush1.bf16.msra.mxu1 %v6491_v31  ;;  %v6556_v35 = vcombine.high %v586_v26, %v590_v27 }
 0x197   :  { %3212 = vmatprep.subr.bf16.mxu1 %v6500_v33 }
 0x198   :  { %3313 = vmatpush1.bf16.msra.mxu0 %v6301_v32  ;;  %v6547_v32 = vcombine.low %v578_v16, %v582_v17 }
 0x199   :  { %3314 = vmatprep.subr.bf16.mxu0 %v6310_v34  ;;  %3202 = vmatmul.mubr.bf16.vlgmr.msra.gmra.mrb[4].mxu1 %v7922_v47  ;;  %v6357_v34 = vcombine.low %v387_v18, %v391_v19  ;;  %v188_v18 = vld [vmem:[#allocation6 + $0x158] sm:$0xff] }
 0x19a   :  { %3213 = vmatpush1.bf16.msra.mxu1 %v6499_v40  ;;  %3244 = vmatprep.mubr.bf16.mxu1 %v7744_v21  ;;  %v403_v40 = vld [vmem:[#allocation6 + $0x810] sm:$0xff]  ;;  %v192_v19 = vld [vmem:[#allocation6 + $0x178] sm:$0xff] }
 0x19b   :  { %3214 = vmatprep.subr.bf16.mxu1 %v6508_v43  ;;  %v6555_v43 = vcombine.low %v586_v26, %v590_v27  ;;  %v6160_v26 = vcombine.high %v188_v18, %v192_v19 }
 0x19c   :  { %3315 = vmatpush1.bf16.msra.mxu0 %v6309_v42  ;;  %v407_v42 = vld [vmem:[#allocation6 + $0x830] sm:$0xff] }
 0x19d   :  { %3316 = vmatprep.subr.bf16.mxu0 %v6318_v44  ;;  %v6365_v44 = vcombine.low %v395_v29, %v399_v30  ;;  %v6374_v46 = vcombine.high %v403_v40, %v407_v42  ;;  %v196_v29 = vld [vmem:[#allocation6 + $0x198] sm:$0xff] }
 0x19e   :  { %3215 = vmatpush1.bf16.msra.mxu1 %v6507_v49  ;;  %v411_v49 = vld [vmem:[#allocation6 + $0x850] sm:$0xff]  ;;  %v200_v30 = vld [vmem:[#allocation6 + $0x1b8] sm:$0xff] }
 0x19f   :  { %3216 = vmatprep.subr.bf16.mxu1 %v6516_v52  ;;  %v6119_v52 = vcombine.low %v148_v37, %v152_v38  ;;  %v6168_v37 = vcombine.high %v196_v29, %v200_v30 }
 0x1a0   :  { %3317 = vmatpush1.bf16.msra.mxu0 %v6317_v50  ;;  %v415_v50 = vld [vmem:[#allocation6 + $0x870] sm:$0xff] }
 0x1a1   :  { %3318 = vmatprep.subr.bf16.mxu0 %v6326_v60  ;;  %v6373_v60 = vcombine.low %v403_v40, %v407_v42  ;;  %v6382_v54 = vcombine.high %v411_v49, %v415_v50  ;;  %v6381_v63 = vcombine.low %v411_v49, %v415_v50  ;;  %v204_v40 = vld [vmem:[#allocation6 + $0x1d8] sm:$0xff] }
 0x1a2   :  { %3217 = vmatpush1.bf16.msra.mxu1 %v6515_v57  ;;  %v7934_v57 = vld [vmem:[#allocation3 + $0x18] ss:$28 sps:$4 sm:$0xff]  }
 0x1a3   :  { %3218 = vmatprep.subr.bf16.mxu1 %v6524_v61  ;;  %v423_v61 = vld [vmem:[#allocation6 + $0x8b0] sm:$0xff]  ;;  %v208_v42 = vld [vmem:[#allocation6 + $0x1f8] sm:$0xff] }
 0x1a4   :  { %3319 = vmatpush1.bf16.msra.mxu0 %v6325_v59  ;;  %v419_v59 = vld [vmem:[#allocation6 + $0x890] sm:$0xff]  ;;  %v212_v49 = vld [vmem:[#allocation6 + $0x218] sm:$0xff] }
 0x1a5   :  { %3320 = vmatprep.subr.bf16.mxu0 %v6334_v62  ;;  %v6127_v62 = vcombine.low %v156_v58, %v160_v48  ;;  %v6390_v1 = vcombine.high %v419_v59, %v423_v61  ;;  %v6176_v58 = vcombine.high %v204_v40, %v208_v42  ;;  %v216_v50 = vld [vmem:[#allocation6 + $0x238] sm:$0xff] }
 0x1a6   :  { %3219 = vmatpush1.bf16.msra.mxu1 %v6523_v3  ;;  %v176_v3 = vld [vmem:[#allocation6 + $0xf8] sm:$0xff]  ;;  %v6184_v55 = vcombine.high %v212_v49, %v216_v50 }
 0x1a7   :  { %3220 = vmatprep.subr.bf16.mxu1 %v6532_v5  ;;  %v431_v5 = vld [vmem:[#allocation6 + $0x8f0] sm:$0xff]  ;;  %v6144_v8 = vcombine.high %v172_v2, %v176_v3 }
 0x1a8   :  { %3321 = vmatpush1.bf16.msra.mxu0 %v6333_v4  ;;  %v427_v4 = vld [vmem:[#allocation6 + $0x8d0] sm:$0xff] }
 0x1a9   :  { %3322 = vmatprep.subr.bf16.mxu0 %v6342_v6  ;;  %v7512_v6 = vld [vmem:[#allocation3 + $0x4] ss:$28 sps:$4 sm:$0xff]   ;;  %v6398_v9 = vcombine.high %v427_v4, %v431_v5 }
 0x1aa   :  { %3221 = vmatpush1.bf16.msra.mxu1 %v6531_v11  ;;  %v184_v11 = vld [vmem:[#allocation6 + $0x138] sm:$0xff] }
 0x1ab   :  { %3222 = vmatprep.subr.bf16.mxu1 %v6540_v13  ;;  %v439_v13 = vld [vmem:[#allocation6 + $0x930] sm:$0xff]  ;;  %v6152_v16 = vcombine.high %v180_v10, %v184_v11 }
 0x1ac   :  { %3323 = vmatpush1.bf16.msra.mxu0 %v6341_v12  ;;  %v7926_v24 = vpop.f32.mrb[0].mxu1  ;;  %v435_v12 = vld [vmem:[#allocation6 + $0x910] sm:$0xff] }
 0x1ad   :  { %3324 = vmatprep.subr.bf16.mxu0 %v6350_v15  ;;  %v7928_v28 = vpop.f32.mrb[1].mxu1  ;;  %v6143_v15 = vcombine.low %v172_v2, %v176_v3  ;;  %v6406_v17 = vcombine.high %v435_v12, %v439_v13 }
 0x1ae   :  { %v7930_v31 = vpop.f32.mrb[2].mxu1  ;;  %3223 = vmatpush1.bf16.msra.mxu1 %v6539_v20  ;;  %v443_v20 = vld [vmem:[#allocation6 + $0x950] sm:$0xff] }
 0x1af   :  { %v7932_v33 = vpop.f32.mrb[3].mxu1  ;;  %3224 = vmatprep.subr.bf16.mxu1 %v6548_v23  ;;  %v6151_v23 = vcombine.low %v180_v10, %v184_v11  ;;  %v236_v11 = vld [vmem:[#allocation6 + $0x2d8] sm:$0xff] }
 0x1b0   :  { %3325 = vmatpush1.bf16.msra.mxu0 %v6349_v22  ;;  %v447_v22 = vld [vmem:[#allocation6 + $0x970] sm:$0xff] }
 0x1b1   :  { %3326 = vmatprep.subr.bf16.mxu0 %v6358_v25  ;;  %v6405_v25 = vcombine.low %v435_v12, %v439_v13  ;;  %v6414_v27 = vcombine.high %v443_v20, %v447_v22  ;;  %v240_v12 = vld [vmem:[#allocation6 + $0x2f8] sm:$0xff]  ;;  %v491_v13 = vld [vmem:[#allocation6 + $0xad0] sm:$0xff] }
 0x1b2   :  { %3225 = vmatpush1.bf16.msra.mxu1 %v6547_v32  ;;  %v451_v32 = vld [vmem:[#allocation6 + $0x990] sm:$0xff] }
 0x1b3   :  { %3226 = vmatprep.subr.bf16.mxu1 %v6556_v35  ;;  %v6159_v35 = vcombine.low %v188_v18, %v192_v19  ;;  %v244_v19 = vld [vmem:[#allocation6 + $0x318] sm:$0xff] }
 0x1b4   :  { %3327 = vmatpush1.bf16.msra.mxu0 %v6357_v34  ;;  %v455_v34 = vld [vmem:[#allocation6 + $0x9b0] sm:$0xff] }
 0x1b5   :  { %3328 = vmatprep.subr.bf16.mxu0 %v6366_v36  ;;  %v6413_v36 = vcombine.low %v443_v20, %v447_v22  ;;  %v6422_v38 = vcombine.high %v451_v32, %v455_v34  ;;  %v248_v20 = vld [vmem:[#allocation6 + $0x338] sm:$0xff]  ;;  %v499_v22 = vld [vmem:[#allocation6 + $0xb10] sm:$0xff] }
 0x1b6   :  { %3227 = vmatpush1.bf16.msra.mxu1 %v6555_v43  ;;  %v459_v43 = vld [vmem:[#allocation6 + $0x9d0] sm:$0xff] }
 0x1b7   :  { %3427 = vmatprep.subr.bf16.mxu1 %v6120_v45  ;;  %v6167_v45 = vcombine.low %v196_v29, %v200_v30  ;;  %v252_v30 = vld [vmem:[#allocation6 + $0x358] sm:$0xff] }
 0x1b8   :  { %3329 = vmatpush1.bf16.msra.mxu0 %v6365_v44  ;;  %v463_v44 = vld [vmem:[#allocation6 + $0x9f0] sm:$0xff] }
 0x1b9   :  { %3341 = vmatprep.subr.bf16.mxu0 %v6374_v46  ;;  %3245 = vmatmul.mubr.bf16.vlgmr.msra.gmra.mrb[4].mxu1 %v7934_v57  ;;  %v6421_v46 = vcombine.low %v451_v32, %v455_v34  ;;  %v6430_v48 = vcombine.high %v459_v43, %v463_v44  ;;  %v256_v32 = vld [vmem:[#allocation6 + $0x378] sm:$0xff]  ;;  %v507_v34 = vld [vmem:[#allocation6 + $0xb50] sm:$0xff] }
 0x1ba   :  { %3428 = vmatpush1.bf16.msra.mxu1 %v6119_v52  ;;  %3459 = vmatprep.mubr.bf16.mxu1 %v7512_v6  ;;  %v467_v52 = vld [vmem:[#allocation6 + $0xa10] sm:$0xff] }
 0x1bb   :  { %3331 = vmatmul.mubr.bf16.vlgmr.msra.gmra.mrb[4].mxu0 %v7910_v39  ;;  %3429 = vmatprep.subr.bf16.mxu1 %v6128_v53  ;;  %v6389_v39 = vcombine.low %v419_v59, %v423_v61  ;;  %v6175_v53 = vcombine.low %v204_v40, %v208_v42  ;;  %v220_v59 = vld [vmem:[#allocation6 + $0x258] sm:$0xff]  ;;  %v483_v6 = vld [vmem:[#allocation6 + $0xa90] sm:$0xff] }
 0x1bc   :  { %3342 = vmatpush1.bf16.msra.mxu0 %v6373_v60  ;;  %3373 = vmatprep.mubr.bf16.mxu0 %v7913_v41  ;;  %v6397_v41 = vcombine.low %v427_v4, %v431_v5  ;;  %v471_v60 = vld [vmem:[#allocation6 + $0xa30] sm:$0xff]  ;;  %v224_v61 = vld [vmem:[#allocation6 + $0x278] sm:$0xff] }
 0x1bd   :  { %3343 = vmatprep.subr.bf16.mxu0 %v6382_v54  ;;  %v6429_v54 = vcombine.low %v459_v43, %v463_v44  ;;  %v6438_v56 = vcombine.high %v467_v52, %v471_v60  ;;  %v6192_v2 = vcombine.high %v220_v59, %v224_v61  ;;  %v228_v4 = vld [vmem:[#allocation6 + $0x298] sm:$0xff]  ;;  %v515_v44 = vld [vmem:[#allocation6 + $0xb90] sm:$0xff] }
 0x1be   :  { %3430 = vmatpush1.bf16.msra.mxu1 %v6127_v62  ;;  %v475_v62 = vld [vmem:[#allocation6 + $0xa50] sm:$0xff]  ;;  %v232_v5 = vld [vmem:[#allocation6 + $0x2b8] sm:$0xff] }
 0x1bf   :  { %3431 = vmatprep.subr.bf16.mxu1 %v6136_v0  ;;  %v6183_v0 = vcombine.low %v212_v49, %v216_v50  ;;  %v260_v42 = vld [vmem:[#allocation6 + $0x398] sm:$0xff] }
 0x1c0   :  { %3344 = vmatpush1.bf16.msra.mxu0 %v6381_v63  ;;  %v479_v63 = vld [vmem:[#allocation6 + $0xa70] sm:$0xff]  ;;  %v264_v43 = vld [vmem:[#allocation6 + $0x3b8] sm:$0xff] }
 0x1c1   :  { %3345 = vmatprep.subr.bf16.mxu0 %v6390_v1  ;;  %v6437_v1 = vcombine.low %v467_v52, %v471_v60  ;;  %v6446_v3 = vcombine.high %v475_v62, %v479_v63  ;;  %v268_v50 = vld [vmem:[#allocation6 + $0x3d8] sm:$0xff]  ;;  %v523_v60 = vld [vmem:[#allocation6 + $0xbd0] sm:$0xff] }
 0x1c2   :  { %3432 = vmatpush1.bf16.msra.mxu1 %v6135_v7  ;;  %v487_v7 = vld [vmem:[#allocation6 + $0xab0] sm:$0xff]  ;;  %v272_v52 = vld [vmem:[#allocation6 + $0x3f8] sm:$0xff] }
 0x1c3   :  { %3433 = vmatprep.subr.bf16.mxu1 %v6144_v8  ;;  %v6445_v8 = vcombine.low %v475_v62, %v479_v63  ;;  %v6454_v10 = vcombine.high %v483_v6, %v487_v7  ;;  %v280_v62 = vld [vmem:[#allocation6 + $0x438] sm:$0xff]  ;;  %v531_v63 = vld [vmem:[#allocation6 + $0xc10] sm:$0xff] }
 0x1c4   :  { %3346 = vmatpush1.bf16.msra.mxu0 %v6389_v39  ;;  %v6191_v39 = vcombine.low %v220_v59, %v224_v61  ;;  %v276_v61 = vld [vmem:[#allocation6 + $0x418] sm:$0xff] }
 0x1c5   :  { %3347 = vmatprep.subr.bf16.mxu0 %v6398_v9  ;;  %v6200_v9 = vcombine.high %v228_v4, %v232_v5 }
 0x1c6   :  { %3434 = vmatpush1.bf16.msra.mxu1 %v6143_v15  ;;  %v495_v15 = vld [vmem:[#allocation6 + $0xaf0] sm:$0xff] }
 0x1c7   :  { %3435 = vmatprep.subr.bf16.mxu1 %v6152_v16  ;;  %v6453_v16 = vcombine.low %v483_v6, %v487_v7  ;;  %v6462_v18 = vcombine.high %v491_v13, %v495_v15  ;;  %v288_v6 = vld [vmem:[#allocation6 + $0x478] sm:$0xff]  ;;  %v539_v7 = vld [vmem:[#allocation6 + $0xc50] sm:$0xff] }
 0x1c8   :  { %3348 = vmatpush1.bf16.msra.mxu0 %v6397_v41  ;;  %v6199_v41 = vcombine.low %v228_v4, %v232_v5  ;;  %v284_v5 = vld [vmem:[#allocation6 + $0x458] sm:$0xff] }
 0x1c9   :  { %3349 = vmatprep.subr.bf16.mxu0 %v6406_v17  ;;  %v6208_v17 = vcombine.high %v236_v11, %v240_v12 }
 0x1ca   :  { %3436 = vmatpush1.bf16.msra.mxu1 %v6151_v23  ;;  %v503_v23 = vld [vmem:[#allocation6 + $0xb30] sm:$0xff] }
 0x1cb   :  { %3437 = vmatprep.subr.bf16.mxu1 %v6160_v26  ;;  %v6461_v26 = vcombine.low %v491_v13, %v495_v15  ;;  %v6470_v29 = vcombine.high %v499_v22, %v503_v23  ;;  %v296_v13 = vld [vmem:[#allocation6 + $0x4b8] sm:$0xff]  ;;  %v547_v15 = vld [vmem:[#allocation6 + $0xc90] sm:$0xff] }
 0x1cc   :  { %3350 = vmatpush1.bf16.msra.mxu0 %v6405_v25  ;;  %v6207_v25 = vcombine.low %v236_v11, %v240_v12  ;;  %v292_v12 = vld [vmem:[#allocation6 + $0x498] sm:$0xff] }
 0x1cd   :  { %3351 = vmatprep.subr.bf16.mxu0 %v6414_v27  ;;  %v6216_v27 = vcombine.high %v244_v19, %v248_v20 }
 0x1ce   :  { %3438 = vmatpush1.bf16.msra.mxu1 %v6159_v35  ;;  %v511_v35 = vld [vmem:[#allocation6 + $0xb70] sm:$0xff] }
 0x1cf   :  { %3439 = vmatprep.subr.bf16.mxu1 %v6168_v37  ;;  %v6469_v37 = vcombine.low %v499_v22, %v503_v23  ;;  %v6478_v40 = vcombine.high %v507_v34, %v511_v35  ;;  %v300_v22 = vld [vmem:[#allocation6 + $0x4d8] sm:$0xff] }
 0x1d0   :  { %3352 = vmatpush1.bf16.msra.mxu0 %v6413_v36  ;;  %v6215_v36 = vcombine.low %v244_v19, %v248_v20  ;;  %v595_v19 = vlaneseq  ;;  %v304_v23 = vld [vmem:[#allocation6 + $0x4f8] sm:$0xff] }
 0x1d1   :  { %3353 = vmatprep.subr.bf16.mxu0 %v6422_v38  ;;  %v6224_v38 = vcombine.high %v252_v30, %v256_v32 }
 0x1d2   :  { %3440 = vmatpush1.bf16.msra.mxu1 %v6167_v45  ;;  %v519_v45 = vld [vmem:[#allocation6 + $0xbb0] sm:$0xff] }
 0x1d3   :  { %3441 = vmatprep.subr.bf16.mxu1 %v6176_v58  ;;  %v6477_v58 = vcombine.low %v507_v34, %v511_v35  ;;  %v6486_v49 = vcombine.high %v515_v44, %v519_v45  ;;  %v312_v34 = vld [vmem:[#allocation6 + $0x538] sm:$0xff]  ;;  %v563_v35 = vld [vmem:[#allocation6 + $0xd10] sm:$0xff] }
 0x1d4   :  { %3354 = vmatpush1.bf16.msra.mxu0 %v6421_v46  ;;  %v6223_v46 = vcombine.low %v252_v30, %v256_v32  ;;  %v308_v32 = vld [vmem:[#allocation6 + $0x518] sm:$0xff] }
 0x1d5   :  { %3355 = vmatprep.subr.bf16.mxu0 %v6430_v48  ;;  %v6232_v48 = vcombine.high %v260_v42, %v264_v43 }
 0x1d6   :  { %3442 = vmatpush1.bf16.msra.mxu1 %v6175_v53  ;;  %v527_v53 = vld [vmem:[#allocation6 + $0xbf0] sm:$0xff] }
 0x1d7   :  { %3443 = vmatprep.subr.bf16.mxu1 %v6184_v55  ;;  %v6485_v55 = vcombine.low %v515_v44, %v519_v45  ;;  %v6494_v59 = vcombine.high %v523_v60, %v527_v53  ;;  %v320_v44 = vld [vmem:[#allocation6 + $0x578] sm:$0xff]  ;;  %v7949_v45 = vld [vmem:[#allocation8] sm:$0xff] }
 0x1d8   :  { %3356 = vmatpush1.bf16.msra.mxu0 %v6429_v54  ;;  %v6231_v54 = vcombine.low %v260_v42, %v264_v43  ;;  %v316_v43 = vld [vmem:[#allocation6 + $0x558] sm:$0xff] }
 0x1d9   :  { %3357 = vmatprep.subr.bf16.mxu0 %v6438_v56  ;;  %v6240_v56 = vcombine.high %v268_v50, %v272_v52 }
 0x1da   :  { %3444 = vmatpush1.bf16.msra.mxu1 %v6183_v0  ;;  %v535_v0 = vld [vmem:[#allocation6 + $0xc30] sm:$0xff] }
 0x1db   :  { %3445 = vmatprep.subr.bf16.mxu1 %v6192_v2  ;;  %v6493_v2 = vcombine.low %v523_v60, %v527_v53  ;;  %v6502_v4 = vcombine.high %v531_v63, %v535_v0 }
 0x1dc   :  { %3358 = vmatpush1.bf16.msra.mxu0 %v6437_v1  ;;  %v6239_v1 = vcombine.low %v268_v50, %v272_v52  ;;  %v6288_v52 = vcombine.high %v316_v43, %v320_v44 }
 0x1dd   :  { %3359 = vmatprep.subr.bf16.mxu0 %v6446_v3  ;;  %v6248_v3 = vcombine.high %v276_v61, %v280_v62 }
 0x1de   :  { %3446 = vmatpush1.bf16.msra.mxu1 %v6191_v39  ;;  %v543_v39 = vld [vmem:[#allocation6 + $0xc70] sm:$0xff] }
 0x1df   :  { %3447 = vmatprep.subr.bf16.mxu1 %v6200_v9  ;;  %v6501_v9 = vcombine.low %v531_v63, %v535_v0  ;;  %v6510_v11 = vcombine.high %v539_v7, %v543_v39 }
 0x1e0   :  { %3360 = vmatpush1.bf16.msra.mxu0 %v6445_v8  ;;  %v6247_v8 = vcombine.low %v276_v61, %v280_v62  ;;  %v583_v61 = vld [vmem:[#allocation6 + $0xdb0] sm:$0xff]  ;;  %v6287_v62 = vcombine.low %v316_v43, %v320_v44  ;;  %v360_v43 = vld [vmem:[#allocation6 + $0x6b8] sm:$0xff] }
 0x1e1   :  { %3361 = vmatprep.subr.bf16.mxu0 %v6454_v10  ;;  %v6256_v10 = vcombine.high %v284_v5, %v288_v6 }
 0x1e2   :  { %3448 = vmatpush1.bf16.msra.mxu1 %v6199_v41  ;;  %v551_v41 = vld [vmem:[#allocation6 + $0xcb0] sm:$0xff] }
 0x1e3   :  { %3449 = vmatprep.subr.bf16.mxu1 %v6208_v17  ;;  %v6509_v17 = vcombine.low %v539_v7, %v543_v39  ;;  %v6518_v20 = vcombine.high %v547_v15, %v551_v41  ;;  %v587_v7 = vld [vmem:[#allocation6 + $0xdd0] sm:$0xff] }
 0x1e4   :  { %3362 = vmatpush1.bf16.msra.mxu0 %v6453_v16  ;;  %v6255_v16 = vcombine.low %v284_v5, %v288_v6  ;;  %v591_v39 = vld [vmem:[#allocation6 + $0xdf0] sm:$0xff] }
 0x1e5   :  { %3363 = vmatprep.subr.bf16.mxu0 %v6462_v18  ;;  %v6264_v18 = vcombine.high %v292_v12, %v296_v13 }
 0x1e6   :  { %3450 = vmatpush1.bf16.msra.mxu1 %v6207_v25  ;;  %v555_v25 = vld [vmem:[#allocation6 + $0xcd0] sm:$0xff] }
 0x1e7   :  { %3451 = vmatprep.subr.bf16.mxu1 %v6216_v27  ;;  %v6272_v27 = vcombine.high %v300_v22, %v304_v23 }
 0x1e8   :  { %3364 = vmatpush1.bf16.msra.mxu0 %v6461_v26  ;;  %v559_v26 = vld [vmem:[#allocation6 + $0xcf0] sm:$0xff] }
 0x1e9   :  { %3365 = vmatprep.subr.bf16.mxu0 %v6470_v29  ;;  %v7944_v29 = vshrl.u32 %v595_v19, 7  ;;  %v6526_v30 = vcombine.high %v555_v25, %v559_v26 }
 0x1ea   :  { %3452 = vmatpush1.bf16.msra.mxu1 %v6215_v36  ;;  %v567_v36 = vld [vmem:[#allocation6 + $0xd30] sm:$0xff] }
 0x1eb   :  { %3453 = vmatprep.subr.bf16.mxu1 %v6224_v38  ;;  %v6525_v38 = vcombine.low %v555_v25, %v559_v26  ;;  %v6534_v42 = vcombine.high %v563_v35, %v567_v36  ;;  %v6533_v50 = vcombine.low %v563_v35, %v567_v36  ;;  %v352_v35 = vld [vmem:[#allocation6 + $0x678] sm:$0xff] }
 0x1ec   :  { %3366 = vmatpush1.bf16.msra.mxu0 %v6469_v37  ;;  %v6271_v37 = vcombine.low %v300_v22, %v304_v23 }
 0x1ed   :  { %3367 = vmatprep.subr.bf16.mxu0 %v6478_v40  ;;  %v7947_v40 = vsub.s32 0, %v7944_v29 }
 0x1ee   :  { %3454 = vmatpush1.bf16.msra.mxu1 %v6223_v46  ;;  %v7952_v46 = vsub.s32 1, %v7944_v29 }
 0x1ef   :  { %3455 = vmatprep.subr.bf16.mxu1 %v6232_v48  ;;  %v575_v48 = vld [vmem:[#allocation6 + $0xd70] sm:$0xff]  ;;  %v598_v60 = vrot.slane %v7949_v45, %v7947_v40 }
 0x1f0   :  { %3368 = vmatpush1.bf16.msra.mxu0 %v6477_v58  ;;  %v571_v58 = vld [vmem:[#allocation6 + $0xd50] sm:$0xff] }
 0x1f1   :  { %3369 = vmatprep.subr.bf16.mxu0 %v6486_v49  ;;  %v6279_v49 = vcombine.low %v308_v32, %v312_v34  ;;  %v6542_v53 = vcombine.high %v571_v58, %v575_v48  ;;  %v6541_v63 = vcombine.low %v571_v58, %v575_v48  ;;  %v7020_v58 = vld [vmem:[#allocation9 + $0x20] ss:$16 sps:$4 sm:$0xff]  }
 0x1f2   :  { %3456 = vmatpush1.bf16.msra.mxu1 %v6231_v54  ;;  %v324_v54 = vld [vmem:[#allocation6 + $0x598] sm:$0xff] }
 0x1f3   :  { %3457 = vmatprep.subr.bf16.mxu1 %v6240_v56  ;;  %v602_v56 = vrot.slane %v7949_v45, %v7952_v46 }
 0x1f4   :  { %3370 = vmatpush1.bf16.msra.mxu0 %v6485_v55  ;;  %v328_v55 = vld [vmem:[#allocation6 + $0x5b8] sm:$0xff] }
 0x1f5   :  { %3371 = vmatprep.subr.bf16.mxu0 %v6494_v59  ;;  %v579_v59 = vld [vmem:[#allocation6 + $0xd90] sm:$0xff]  ;;  %v6296_v0 = vcombine.high %v324_v54, %v328_v55  ;;  %v2948_v5 = vadd.f32 %v7928_v28, %v602_v56  ;;  %v6558_v28 = vcombine.high %v587_v7, %v591_v39 }
 0x1f6   :  { %3458 = vmatpush1.bf16.msra.mxu1 %v6239_v1  ;;  %v2946_v1 = vadd.f32 %v7926_v24, %v598_v60 }
 0x1f7   :  { %3470 = vmatprep.subr.bf16.mxu1 %v6248_v3  ;;  %v332_v3 = vld [vmem:[#allocation6 + $0x5d8] sm:$0xff] }
 0x1f8   :  { %3372 = vmatpush1.bf16.msra.mxu0 %v6493_v2  ;;  %v6550_v2 = vcombine.high %v579_v59, %v583_v61 }
 0x1f9   :  { %3384 = vmatprep.subr.bf16.mxu0 %v6502_v4  ;;  %3460 = vmatmul.mubr.bf16.vlgmr.msra.gmra.mrb[8].mxu1 %v7916_v14  ;;  %v6263_v14 = vcombine.low %v292_v12, %v296_v13  ;;  %v336_v4 = vld [vmem:[#allocation6 + $0x5f8] sm:$0xff]  ;;  %v6295_v12 = vcombine.low %v324_v54, %v328_v55  ;;  %v2952_v13 = vadd.f32 %v7932_v33, %v602_v56 }
 0x1fa   :  { %3471 = vmatpush1.bf16.msra.mxu1 %v6247_v8  ;;  %3502 = vmatprep.mubr.bf16.mxu1 %v7919_v51  ;;  %v6280_v51 = vcombine.high %v308_v32, %v312_v34  ;;  %v2950_v8 = vadd.f32 %v7930_v31, %v598_v60  ;;  %v6303_v25 = vcombine.low %v332_v3, %v336_v4  ;;  %v348_v34 = vld [vmem:[#allocation6 + $0x658] sm:$0xff] }
 0x1fb   :  { %3374 = vmatmul.mubr.bf16.vlgmr.msra.gmra.mrb[4].mxu0 %v7922_v47  ;;  %3472 = vmatprep.subr.bf16.mxu1 %v6256_v10  ;;  %v6517_v47 = vcombine.low %v547_v15, %v551_v41  ;;  %v6304_v41 = vcombine.high %v332_v3, %v336_v4  ;;  %v6557_v33 = vcombine.low %v587_v7, %v591_v39  ;;  %v372_v55 = vld [vmem:[#allocation6 + $0x718] sm:$0xff] }
 0x1fc   :  { %3385 = vmatpush1.bf16.msra.mxu0 %v6501_v9  ;;  %3416 = vmatprep.mubr.bf16.mxu0 %v7744_v21  ;;  %v6319_v44 = vcombine.low %v348_v34, %v352_v35  ;;  %v376_v56 = vld [vmem:[#allocation6 + $0x738] sm:$0xff] }
 0x1fd   :  { %3386 = vmatprep.subr.bf16.mxu0 %v6510_v11  ;;  %v6549_v11 = vcombine.low %v579_v59, %v583_v61  ;;  %v7026_v61 = vld [vmem:[#allocation9 + $0x60] ss:$16 sps:$4 sm:$0xff]  }
 0x1fe   :  { %3473 = vmatpush1.bf16.msra.mxu1 %v6255_v16  ;;  %v7029_v3 = vld [vmem:[#allocation9 + $0x80] ss:$16 sps:$4 sm:$0xff]  }
 0x1ff   :  { %3474 = vmatprep.subr.bf16.mxu1 %v6264_v18  ;;  %v340_v18 = vld [vmem:[#allocation6 + $0x618] sm:$0xff] }
 0x200   :  { %3387 = vmatpush1.bf16.msra.mxu0 %v6509_v17  ;;  %v392_v7 = vld [vmem:[#allocation6 + $0x7b8] sm:$0xff] }
 0x201   :  { %3388 = vmatprep.subr.bf16.mxu0 %v6518_v20  ;;  %v344_v20 = vld [vmem:[#allocation6 + $0x638] sm:$0xff] }
 0x202   :  { %3475 = vmatpush1.bf16.msra.mxu1 %v6263_v14  ;;  %v6311_v36 = vcombine.low %v340_v18, %v344_v20 }
 0x203   :  { %3476 = vmatprep.subr.bf16.mxu1 %v6272_v27 }
 0x204   :  { %3389 = vmatpush1.bf16.msra.mxu0 %v6517_v47  ;;  %v6312_v47 = vcombine.high %v340_v18, %v344_v20  ;;  %v7038_v18 = vld [vmem:[#allocation9 + $0xe0] ss:$16 sps:$4 sm:$0xff]  }
 0x205   :  { %3390 = vmatprep.subr.bf16.mxu0 %v6526_v30  ;;  %v7019_v30 = vld [vmem:[#allocation9 + $0x4] ss:$16 sps:$4 sm:$0xff]  }
 0x206   :  { %3477 = vmatpush1.bf16.msra.mxu1 %v6271_v37  ;;  %v7017_v37 = vld [vmem:[#allocation9] ss:$16 sps:$4 sm:$0xff]  }
 0x207   :  { %3478 = vmatprep.subr.bf16.mxu1 %v6280_v51  ;;  %v7022_v51 = vld [vmem:[#allocation9 + $0x24] ss:$16 sps:$4 sm:$0xff]  }
 0x208   :  { %3391 = vmatpush1.bf16.msra.mxu0 %v6525_v38  ;;  %v6320_v38 = vcombine.high %v348_v34, %v352_v35  ;;  %v7513_v34 = vld [vmem:[#allocation3 + $0x8] ss:$28 sps:$4 sm:$0xff]  }
 0x209   :  { %3392 = vmatprep.subr.bf16.mxu0 %v6534_v42  ;;  %v356_v42 = vld [vmem:[#allocation6 + $0x698] sm:$0xff] }
 0x20a   :  { %3479 = vmatpush1.bf16.msra.mxu1 %v6279_v49  ;;  %v6328_v48 = vcombine.high %v356_v42, %v360_v43  ;;  %v7025_v49 = vld [vmem:[#allocation9 + $0x44] ss:$16 sps:$4 sm:$0xff]   ;;  %v6327_v60 = vcombine.low %v356_v42, %v360_v43 }
 0x20b   :  { %3480 = vmatprep.subr.bf16.mxu1 %v6288_v52  ;;  %v368_v52 = vld [vmem:[#allocation6 + $0x6f8] sm:$0xff] }
 0x20c   :  { %3393 = vmatpush1.bf16.msra.mxu0 %v6533_v50  ;;  %v364_v50 = vld [vmem:[#allocation6 + $0x6d8] sm:$0xff] }
 0x20d   :  { %3394 = vmatprep.subr.bf16.mxu0 %v6542_v53  ;;  %v7023_v53 = vld [vmem:[#allocation9 + $0x40] ss:$16 sps:$4 sm:$0xff]   ;;  %v6336_v54 = vcombine.high %v364_v50, %v368_v52  ;;  %v6335_v59 = vcombine.low %v364_v50, %v368_v52 }
 0x20e   :  { %v3074_v6 = vpop.f32.mrb[0].mxu0  ;;  %3481 = vmatpush1.bf16.msra.mxu1 %v6287_v62  ;;  %v6344_v62 = vcombine.high %v372_v55, %v376_v56  ;;  %v428_v42 = vld [vmem:[#allocation6 + $0x8d8] sm:$0xff] }
 0x20f   :  { %v6884_v9 = vadd.f32 %v3074_v6, %v2946_v1  ;;  %v3076_v10 = vpop.f32.mrb[1].mxu0  ;;  %3482 = vmatprep.subr.bf16.mxu1 %v6296_v0  ;;  %v380_v0 = vld [vmem:[#allocation6 + $0x758] sm:$0xff] }
 0x210   :  { %v6886_v15 = vadd.f32 %v3076_v10, %v2948_v5  ;;  %v3078_v24 = vpop.f32.mrb[2].mxu0  ;;  %3395 = vmatpush1.bf16.msra.mxu0 %v6541_v63  ;;  %v7031_v63 = vld [vmem:[#allocation9 + $0x84] ss:$16 sps:$4 sm:$0xff]  }
 0x211   :  { %v6888_v16 = vadd.f32 %v3078_v24, %v2950_v8  ;;  %v3080_v17 = vpop.f32.mrb[3].mxu0  ;;  %3396 = vmatprep.subr.bf16.mxu0 %v6550_v2  ;;  %v3599_v31 = vmax.f32 %v6884_v9, 0.0  ;;  %v384_v1 = vld [vmem:[#allocation6 + $0x778] sm:$0xff]  ;;  %v6343_v2 = vcombine.low %v372_v55, %v376_v56 }
 0x212   :  { %v6890_v22 = vadd.f32 %v3080_v17, %v2952_v13  ;;  %3483 = vmatpush1.bf16.msra.mxu1 %v6295_v12  ;;  %v3600_v26 = vmax.f32 %v6886_v15, 0.0  ;;  %v6352_v4 = vcombine.high %v380_v0, %v384_v1  ;;  %v7034_v5 = vld [vmem:[#allocation9 + $0xa4] ss:$16 sps:$4 sm:$0xff]   ;;  %v6351_v39 = vcombine.low %v380_v0, %v384_v1  ;;  %v7032_v8 = vld [vmem:[#allocation9 + $0xa0] ss:$16 sps:$4 sm:$0xff]  }
 0x213   :  { %v3607_v23 = vmax.f32 %v6888_v16, 0.0  ;;  %3484 = vmatprep.subr.bf16.mxu1 %v6304_v41  ;;  %v388_v6 = vld [vmem:[#allocation6 + $0x798] sm:$0xff] }
 0x214   :  { %v3608_v14 = vmax.f32 %v6890_v22, 0.0  ;;  %3397 = vmatpush1.bf16.msra.mxu0 %v6549_v11  ;;  %v6360_v9 = vcombine.high %v388_v6, %v392_v7  ;;  %v7037_v10 = vld [vmem:[#allocation9 + $0xc4] ss:$16 sps:$4 sm:$0xff]   ;;  %v6359_v13 = vcombine.low %v388_v6, %v392_v7  ;;  %v7035_v15 = vld [vmem:[#allocation9 + $0xc0] ss:$16 sps:$4 sm:$0xff]  }
 0x215   :  { %v7962_v27 = vpack.c.bf16 %v3607_v23, %v3599_v31  ;;  %3398 = vmatprep.subr.bf16.mxu0 %v6558_v28  ;;  %v396_v11 = vld [vmem:[#allocation6 + $0x7d8] sm:$0xff] }
 0x216   :  { %v7964_v32 = vpack.c.bf16 %v3608_v14, %v3600_v26  ;;  %3485 = vmatpush1.bf16.msra.mxu1 %v6303_v25  ;;  %v400_v12 = vld [vmem:[#allocation6 + $0x7f8] sm:$0xff] }
 0x217   :  { %3486 = vmatprep.subr.bf16.mxu1 %v6312_v47  ;;  %v6368_v24 = vcombine.high %v396_v11, %v400_v12  ;;  %v7040_v41 = vld [vmem:[#allocation9 + $0xe4] ss:$16 sps:$4 sm:$0xff]   ;;  %v6367_v28 = vcombine.low %v396_v11, %v400_v12  ;;  %v7041_v26 = vld [vmem:[#allocation9 + $0x100] ss:$16 sps:$4 sm:$0xff]  }
 0x218   :  { %3399 = vmatpush1.bf16.msra.mxu0 %v6557_v33  ;;  %v404_v16 = vld [vmem:[#allocation6 + $0x818] sm:$0xff] }
 0x219   :  { %5181 = vmatprep.subr.bf16.mxu0 %v7019_v30  ;;  %v408_v17 = vld [vmem:[#allocation6 + $0x838] sm:$0xff] }
 0x21a   :  { %3487 = vmatpush1.bf16.msra.mxu1 %v6311_v36  ;;  %v6376_v20 = vcombine.high %v404_v16, %v408_v17  ;;  %v7043_v22 = vld [vmem:[#allocation9 + $0x104] ss:$16 sps:$4 sm:$0xff]   ;;  %v6375_v25 = vcombine.low %v404_v16, %v408_v17 }
 0x21b   :  { %3417 = vmatmul.mubr.bf16.vlgmr.msra.gmra.mrb[4].mxu0 %v7934_v57  ;;  %3488 = vmatprep.subr.bf16.mxu1 %v6320_v38  ;;  %v7028_v57 = vld [vmem:[#allocation9 + $0x64] ss:$16 sps:$4 sm:$0xff]  }
 0x21c   :  { %5182 = vmatpush1.bf16.msra.mxu0 %v7017_v37  ;;  %5213 = vmatprep.mubr.bf16.mxu0 %v7964_v32  ;;  %v412_v31 = vld [vmem:[#allocation6 + $0x858] sm:$0xff] }
 0x21d   :  { %5183 = vmatprep.subr.bf16.mxu0 %v7022_v51  ;;  %v416_v23 = vld [vmem:[#allocation6 + $0x878] sm:$0xff] }
 0x21e   :  { %3489 = vmatpush1.bf16.msra.mxu1 %v6319_v44  ;;  %v6384_v14 = vcombine.high %v412_v31, %v416_v23  ;;  %v7046_v33 = vld [vmem:[#allocation9 + $0x124] ss:$16 sps:$4 sm:$0xff]   ;;  %v6383_v35 = vcombine.low %v412_v31, %v416_v23  ;;  %v7044_v37 = vld [vmem:[#allocation9 + $0x120] ss:$16 sps:$4 sm:$0xff]  }
 0x21f   :  { %3490 = vmatprep.subr.bf16.mxu1 %v6328_v48  ;;  %v420_v47 = vld [vmem:[#allocation6 + $0x898] sm:$0xff] }
 0x220   :  { %5184 = vmatpush1.bf16.msra.mxu0 %v7020_v58  ;;  %v424_v30 = vld [vmem:[#allocation6 + $0x8b8] sm:$0xff] }
 0x221   :  { %5185 = vmatprep.subr.bf16.mxu0 %v7025_v49  ;;  %v7514_v36 = vld [vmem:[#allocation3 + $0x14] ss:$28 sps:$4 sm:$0xff]   ;;  %v6392_v38 = vcombine.high %v420_v47, %v424_v30  ;;  %v6391_v44 = vcombine.low %v420_v47, %v424_v30 }
 0x222   :  { %3491 = vmatpush1.bf16.msra.mxu1 %v6327_v60  ;;  %v7049_v51 = vld [vmem:[#allocation9 + $0x144] ss:$16 sps:$4 sm:$0xff]   ;;  %v7047_v58 = vld [vmem:[#allocation9 + $0x140] ss:$16 sps:$4 sm:$0xff]  }
 0x223   :  { %3492 = vmatprep.subr.bf16.mxu1 %v6336_v54  ;;  %v432_v43 = vld [vmem:[#allocation6 + $0x8f8] sm:$0xff] }
 0x224   :  { %5186 = vmatpush1.bf16.msra.mxu0 %v7023_v53  ;;  %v6400_v48 = vcombine.high %v428_v42, %v432_v43  ;;  %v7052_v49 = vld [vmem:[#allocation9 + $0x164] ss:$16 sps:$4 sm:$0xff]   ;;  %v6399_v60 = vcombine.low %v428_v42, %v432_v43  ;;  %v7050_v53 = vld [vmem:[#allocation9 + $0x160] ss:$16 sps:$4 sm:$0xff]  }
 0x225   :  { %5187 = vmatprep.subr.bf16.mxu0 %v7028_v57  ;;  %v436_v50 = vld [vmem:[#allocation6 + $0x918] sm:$0xff] }
 0x226   :  { %3493 = vmatpush1.bf16.msra.mxu1 %v6335_v59  ;;  %v440_v52 = vld [vmem:[#allocation6 + $0x938] sm:$0xff] }
 0x227   :  { %3494 = vmatprep.subr.bf16.mxu1 %v6344_v62  ;;  %v6408_v54 = vcombine.high %v436_v50, %v440_v52  ;;  %v7055_v57 = vld [vmem:[#allocation9 + $0x184] ss:$16 sps:$4 sm:$0xff]   ;;  %v6407_v59 = vcombine.low %v436_v50, %v440_v52  ;;  %v7074_v43 = vld [vmem:[#allocation9 + $0x260] ss:$16 sps:$4 sm:$0xff]  }
 0x228   :  { %5188 = vmatpush1.bf16.msra.mxu0 %v7026_v61  ;;  %v444_v55 = vld [vmem:[#allocation6 + $0x958] sm:$0xff] }
 0x229   :  { %5189 = vmatprep.subr.bf16.mxu0 %v7031_v63  ;;  %v448_v56 = vld [vmem:[#allocation6 + $0x978] sm:$0xff] }
 0x22a   :  { %3495 = vmatpush1.bf16.msra.mxu1 %v6343_v2  ;;  %v7053_v61 = vld [vmem:[#allocation9 + $0x180] ss:$16 sps:$4 sm:$0xff]   ;;  %v6416_v62 = vcombine.high %v444_v55, %v448_v56  ;;  %v7058_v63 = vld [vmem:[#allocation9 + $0x1a4] ss:$16 sps:$4 sm:$0xff]   ;;  %v6415_v2 = vcombine.low %v444_v55, %v448_v56 }
 0x22b   :  { %3496 = vmatprep.subr.bf16.mxu1 %v6352_v4  ;;  %v452_v0 = vld [vmem:[#allocation6 + $0x998] sm:$0xff] }
 0x22c   :  { %5190 = vmatpush1.bf16.msra.mxu0 %v7029_v3  ;;  %v456_v1 = vld [vmem:[#allocation6 + $0x9b8] sm:$0xff] }
 0x22d   :  { %5191 = vmatprep.subr.bf16.mxu0 %v7034_v5  ;;  %v7056_v3 = vld [vmem:[#allocation9 + $0x1a0] ss:$16 sps:$4 sm:$0xff]   ;;  %v6424_v4 = vcombine.high %v452_v0, %v456_v1  ;;  %v7061_v5 = vld [vmem:[#allocation9 + $0x1c4] ss:$16 sps:$4 sm:$0xff]  }
 0x22e   :  { %3497 = vmatpush1.bf16.msra.mxu1 %v6351_v39  ;;  %v460_v6 = vld [vmem:[#allocation6 + $0x9d8] sm:$0xff]  ;;  %v6423_v39 = vcombine.low %v452_v0, %v456_v1 }
 0x22f   :  { %3498 = vmatprep.subr.bf16.mxu1 %v6360_v9  ;;  %v464_v7 = vld [vmem:[#allocation6 + $0x9f8] sm:$0xff] }
 0x230   :  { %5192 = vmatpush1.bf16.msra.mxu0 %v7032_v8  ;;  %v7059_v8 = vld [vmem:[#allocation9 + $0x1c0] ss:$16 sps:$4 sm:$0xff]   ;;  %v6432_v9 = vcombine.high %v460_v6, %v464_v7 }
 0x231   :  { %5193 = vmatprep.subr.bf16.mxu0 %v7037_v10  ;;  %v7064_v10 = vld [vmem:[#allocation9 + $0x1e4] ss:$16 sps:$4 sm:$0xff]   ;;  %v7077_v52 = vld [vmem:[#allocation9 + $0x280] ss:$16 sps:$4 sm:$0xff]  }
 0x232   :  { %3499 = vmatpush1.bf16.msra.mxu1 %v6359_v13  ;;  %v468_v11 = vld [vmem:[#allocation6 + $0xa18] sm:$0xff]  ;;  %v6431_v13 = vcombine.low %v460_v6, %v464_v7 }
 0x233   :  { %3500 = vmatprep.subr.bf16.mxu1 %v6368_v24  ;;  %v472_v12 = vld [vmem:[#allocation6 + $0xa38] sm:$0xff] }
 0x234   :  { %5194 = vmatpush1.bf16.msra.mxu0 %v7035_v15  ;;  %v7062_v15 = vld [vmem:[#allocation9 + $0x1e0] ss:$16 sps:$4 sm:$0xff]   ;;  %v6440_v24 = vcombine.high %v468_v11, %v472_v12 }
 0x235   :  { %5195 = vmatprep.subr.bf16.mxu0 %v7040_v41  ;;  %v7067_v41 = vld [vmem:[#allocation9 + $0x204] ss:$16 sps:$4 sm:$0xff]   ;;  %v7080_v56 = vld [vmem:[#allocation9 + $0x2a0] ss:$16 sps:$4 sm:$0xff]  }
 0x236   :  { %3501 = vmatpush1.bf16.msra.mxu1 %v6367_v28  ;;  %v476_v16 = vld [vmem:[#allocation6 + $0xa58] sm:$0xff]  ;;  %v6439_v28 = vcombine.low %v468_v11, %v472_v12 }
 0x237   :  { %3513 = vmatprep.subr.bf16.mxu1 %v6376_v20  ;;  %v480_v17 = vld [vmem:[#allocation6 + $0xa78] sm:$0xff] }
 0x238   :  { %5196 = vmatpush1.bf16.msra.mxu0 %v7038_v18  ;;  %v7065_v18 = vld [vmem:[#allocation9 + $0x200] ss:$16 sps:$4 sm:$0xff]   ;;  %v6448_v20 = vcombine.high %v476_v16, %v480_v17 }
 0x239   :  { %5197 = vmatprep.subr.bf16.mxu0 %v7043_v22  ;;  %3503 = vmatmul.mubr.bf16.vlgmr.msra.gmra.mrb[8].mxu1 %v7513_v34  ;;  %v7070_v22 = vld [vmem:[#allocation9 + $0x224] ss:$16 sps:$4 sm:$0xff]   ;;  %v7083_v1 = vld [vmem:[#allocation9 + $0x2c0] ss:$16 sps:$4 sm:$0xff]  }
 0x23a   :  { %3514 = vmatpush1.bf16.msra.mxu1 %v6375_v25  ;;  %3545 = vmatprep.mubr.bf16.mxu1 %v7514_v36  ;;  %v484_v31 = vld [vmem:[#allocation6 + $0xa98] sm:$0xff]  ;;  %v6447_v25 = vcombine.low %v476_v16, %v480_v17 }
 0x23b   :  { %3515 = vmatprep.subr.bf16.mxu1 %v6384_v14  ;;  %v488_v23 = vld [vmem:[#allocation6 + $0xab8] sm:$0xff] }
 0x23c   :  { %5198 = vmatpush1.bf16.msra.mxu0 %v7041_v26  ;;  %v7068_v26 = vld [vmem:[#allocation9 + $0x220] ss:$16 sps:$4 sm:$0xff]   ;;  %v6456_v14 = vcombine.high %v484_v31, %v488_v23  ;;  %v6455_v34 = vcombine.low %v484_v31, %v488_v23 }
 0x23d   :  { %5199 = vmatprep.subr.bf16.mxu0 %v7046_v33  ;;  %v7073_v33 = vld [vmem:[#allocation9 + $0x244] ss:$16 sps:$4 sm:$0xff]   ;;  %v7086_v7 = vld [vmem:[#allocation9 + $0x2e0] ss:$16 sps:$4 sm:$0xff]  }
 0x23e   :  { %3516 = vmatpush1.bf16.msra.mxu1 %v6383_v35  ;;  %v492_v47 = vld [vmem:[#allocation6 + $0xad8] sm:$0xff] }
 0x23f   :  { %3517 = vmatprep.subr.bf16.mxu1 %v6392_v38  ;;  %v496_v30 = vld [vmem:[#allocation6 + $0xaf8] sm:$0xff] }
 0x240   :  { %5200 = vmatpush1.bf16.msra.mxu0 %v7044_v37  ;;  %v7071_v35 = vld [vmem:[#allocation9 + $0x240] ss:$16 sps:$4 sm:$0xff]   ;;  %v6464_v36 = vcombine.high %v492_v47, %v496_v30  ;;  %v7076_v37 = vld [vmem:[#allocation9 + $0x264] ss:$16 sps:$4 sm:$0xff]   ;;  %v6463_v42 = vcombine.low %v492_v47, %v496_v30 }
 0x241   :  { %5201 = vmatprep.subr.bf16.mxu0 %v7049_v51  ;;  %v500_v38 = vld [vmem:[#allocation6 + $0xb18] sm:$0xff] }
 0x242   :  { %3518 = vmatpush1.bf16.msra.mxu1 %v6391_v44  ;;  %v504_v51 = vld [vmem:[#allocation6 + $0xb38] sm:$0xff] }
 0x243   :  { %3519 = vmatprep.subr.bf16.mxu1 %v6400_v48  ;;  %v6472_v44 = vcombine.high %v500_v38, %v504_v51  ;;  %v508_v48 = vld [vmem:[#allocation6 + $0xb58] sm:$0xff]  ;;  %v6471_v50 = vcombine.low %v500_v38, %v504_v51  ;;  %v605_v38 = vsub.s32 2, %v7944_v29 }
 0x244   :  { %5202 = vmatpush1.bf16.msra.mxu0 %v7047_v58  ;;  %v7079_v58 = vld [vmem:[#allocation9 + $0x284] ss:$16 sps:$4 sm:$0xff]   ;;  %v7089_v12 = vld [vmem:[#allocation9 + $0x300] ss:$16 sps:$4 sm:$0xff]  }
 0x245   :  { %5203 = vmatprep.subr.bf16.mxu0 %v7052_v49  ;;  %v512_v49 = vld [vmem:[#allocation6 + $0xb78] sm:$0xff] }
 0x246   :  { %3520 = vmatpush1.bf16.msra.mxu1 %v6399_v60  ;;  %v6480_v60 = vcombine.high %v508_v48, %v512_v49  ;;  %v6479_v55 = vcombine.low %v508_v48, %v512_v49  ;;  %v7515_v16 = vld [vmem:[#allocation3 + $0x10] ss:$28 sps:$4 sm:$0xff]  }
 0x247   :  { %3521 = vmatprep.subr.bf16.mxu1 %v6408_v54  ;;  %v516_v54 = vld [vmem:[#allocation6 + $0xb98] sm:$0xff] }
 0x248   :  { %5204 = vmatpush1.bf16.msra.mxu0 %v7050_v53  ;;  %v7082_v53 = vld [vmem:[#allocation9 + $0x2a4] ss:$16 sps:$4 sm:$0xff]   ;;  %v7098_v30 = vld [vmem:[#allocation9 + $0x360] ss:$16 sps:$4 sm:$0xff]  }
 0x249   :  { %5205 = vmatprep.subr.bf16.mxu0 %v7055_v57  ;;  %v520_v57 = vld [vmem:[#allocation6 + $0xbb8] sm:$0xff] }
 0x24a   :  { %3522 = vmatpush1.bf16.msra.mxu1 %v6407_v59  ;;  %v6488_v59 = vcombine.high %v516_v54, %v520_v57  ;;  %v6487_v0 = vcombine.low %v516_v54, %v520_v57  ;;  %v560_v31 = vld [vmem:[#allocation6 + $0xcf8] sm:$0xff] }
 0x24b   :  { %3523 = vmatprep.subr.bf16.mxu1 %v6416_v62  ;;  %v524_v62 = vld [vmem:[#allocation6 + $0xbd8] sm:$0xff] }
 0x24c   :  { %5206 = vmatpush1.bf16.msra.mxu0 %v7053_v61  ;;  %v7085_v61 = vld [vmem:[#allocation9 + $0x2c4] ss:$16 sps:$4 sm:$0xff]  }
 0x24d   :  { %5207 = vmatprep.subr.bf16.mxu0 %v7058_v63  ;;  %v528_v63 = vld [vmem:[#allocation6 + $0xbf8] sm:$0xff] }
 0x24e   :  { %3524 = vmatpush1.bf16.msra.mxu1 %v6415_v2  ;;  %v6496_v2 = vcombine.high %v524_v62, %v528_v63  ;;  %v6495_v6 = vcombine.low %v524_v62, %v528_v63  ;;  %v568_v47 = vld [vmem:[#allocation6 + $0xd38] sm:$0xff] }
 0x24f   :  { %3525 = vmatprep.subr.bf16.mxu1 %v6424_v4  ;;  %v532_v4 = vld [vmem:[#allocation6 + $0xc18] sm:$0xff] }
 0x250   :  { %5208 = vmatpush1.bf16.msra.mxu0 %v7056_v3  ;;  %v7088_v3 = vld [vmem:[#allocation9 + $0x2e4] ss:$16 sps:$4 sm:$0xff]  }
 0x251   :  { %5209 = vmatprep.subr.bf16.mxu0 %v7061_v5  ;;  %v536_v5 = vld [vmem:[#allocation6 + $0xc38] sm:$0xff] }
 0x252   :  { %3526 = vmatpush1.bf16.msra.mxu1 %v6423_v39  ;;  %v6504_v39 = vcombine.high %v532_v4, %v536_v5  ;;  %v6503_v11 = vcombine.low %v532_v4, %v536_v5  ;;  %v580_v48 = vld [vmem:[#allocation6 + $0xd98] sm:$0xff] }
 0x253   :  { %3527 = vmatprep.subr.bf16.mxu1 %v6432_v9  ;;  %v540_v9 = vld [vmem:[#allocation6 + $0xc58] sm:$0xff] }
 0x254   :  { %5210 = vmatpush1.bf16.msra.mxu0 %v7059_v8  ;;  %v7091_v8 = vld [vmem:[#allocation9 + $0x304] ss:$16 sps:$4 sm:$0xff]  }
 0x255   :  { %5211 = vmatprep.subr.bf16.mxu0 %v7064_v10  ;;  %v544_v10 = vld [vmem:[#allocation6 + $0xc78] sm:$0xff] }
 0x256   :  { %3528 = vmatpush1.bf16.msra.mxu1 %v6431_v13  ;;  %v6512_v13 = vcombine.high %v540_v9, %v544_v10  ;;  %v6511_v17 = vcombine.low %v540_v9, %v544_v10  ;;  %v584_v49 = vld [vmem:[#allocation6 + $0xdb8] sm:$0xff] }
 0x257   :  { %3529 = vmatprep.subr.bf16.mxu1 %v6440_v24  ;;  %v548_v24 = vld [vmem:[#allocation6 + $0xc98] sm:$0xff]  ;;  %v6552_v54 = vcombine.high %v580_v48, %v584_v49 }
 0x258   :  { %5212 = vmatpush1.bf16.msra.mxu0 %v7062_v15  ;;  %v7094_v15 = vld [vmem:[#allocation9 + $0x324] ss:$16 sps:$4 sm:$0xff]  }
 0x259   :  { %5224 = vmatprep.subr.bf16.mxu0 %v7067_v41  ;;  %v552_v41 = vld [vmem:[#allocation6 + $0xcb8] sm:$0xff] }
 0x25a   :  { %3530 = vmatpush1.bf16.msra.mxu1 %v6439_v28  ;;  %v7092_v28 = vld [vmem:[#allocation9 + $0x320] ss:$16 sps:$4 sm:$0xff]   ;;  %v6519_v23 = vcombine.low %v548_v24, %v552_v41 }
 0x25b   :  { %5214 = vmatmul.mubr.bf16.vlgmr.msra.gmra.mrb[8].mxu0 %v7962_v27  ;;  %3531 = vmatprep.subr.bf16.mxu1 %v6448_v20  ;;  %v7097_v20 = vld [vmem:[#allocation9 + $0x344] ss:$16 sps:$4 sm:$0xff]  }
 0x25c   :  { %5225 = vmatpush1.bf16.msra.mxu0 %v7065_v18  ;;  %v6520_v18 = vcombine.high %v548_v24, %v552_v41  ;;  %v7139_v24 = vld [vmem:[#allocation9 + $0x404] ss:$16 sps:$4 sm:$0xff]   ;;  %v7113_v41 = vld [vmem:[#allocation9 + $0x8] ss:$16 sps:$4 sm:$0xff]  }
 0x25d   :  { %5226 = vmatprep.subr.bf16.mxu0 %v7070_v22  ;;  %v556_v22 = vld [vmem:[#allocation6 + $0xcd8] sm:$0xff] }
 0x25e   :  { %3532 = vmatpush1.bf16.msra.mxu1 %v6447_v25  ;;  %v7095_v25 = vld [vmem:[#allocation9 + $0x340] ss:$16 sps:$4 sm:$0xff]  }
 0x25f   :  { %3533 = vmatprep.subr.bf16.mxu1 %v6456_v14  ;;  %v7100_v14 = vld [vmem:[#allocation9 + $0x364] ss:$16 sps:$4 sm:$0xff]  }
 0x260   :  { %5227 = vmatpush1.bf16.msra.mxu0 %v7068_v26  ;;  %v6528_v26 = vcombine.high %v556_v22, %v560_v31 }
 0x261   :  { %5228 = vmatprep.subr.bf16.mxu0 %v7073_v33  ;;  %v564_v33 = vld [vmem:[#allocation6 + $0xd18] sm:$0xff] }
 0x262   :  { %3534 = vmatpush1.bf16.msra.mxu1 %v6455_v34  ;;  %v6536_v34 = vcombine.high %v564_v33, %v568_v47  ;;  %v6535_v51 = vcombine.low %v564_v33, %v568_v47  ;;  %v7157_v33 = vld [vmem:[#allocation9 + $0x464] ss:$16 sps:$4 sm:$0xff]   ;;  %v7122_v47 = vld [vmem:[#allocation9 + $0x68] ss:$16 sps:$4 sm:$0xff]  }
 0x263   :  { %3535 = vmatprep.subr.bf16.mxu1 %v6464_v36  ;;  %v572_v36 = vld [vmem:[#allocation6 + $0xd58] sm:$0xff] }
 0x264   :  { %5229 = vmatpush1.bf16.msra.mxu0 %v7071_v35  ;;  %v7103_v35 = vld [vmem:[#allocation9 + $0x384] ss:$16 sps:$4 sm:$0xff]  }
 0x265   :  { %5230 = vmatprep.subr.bf16.mxu0 %v7076_v37  ;;  %v576_v37 = vld [vmem:[#allocation6 + $0xd78] sm:$0xff] }
 0x266   :  { %3536 = vmatpush1.bf16.msra.mxu1 %v6463_v42  ;;  %v609_v42 = vsub.s32 3, %v7944_v29 }
 0x267   :  { %3537 = vmatprep.subr.bf16.mxu1 %v6472_v44  ;;  %v6544_v44 = vcombine.high %v572_v36, %v576_v37 }
 0x268   :  { %5231 = vmatpush1.bf16.msra.mxu0 %v7074_v43  ;;  %v7101_v43 = vld [vmem:[#allocation9 + $0x380] ss:$16 sps:$4 sm:$0xff]  }
 0x269   :  { %5232 = vmatprep.subr.bf16.mxu0 %v7079_v58  ;;  %v7106_v58 = vld [vmem:[#allocation9 + $0x3a4] ss:$16 sps:$4 sm:$0xff]  }
 0x26a   :  { %3538 = vmatpush1.bf16.msra.mxu1 %v6471_v50  ;;  %v606_v50 = vrot.slane %v7949_v45, %v605_v38 }
 0x26b   :  { %3539 = vmatprep.subr.bf16.mxu1 %v6480_v60  ;;  %v6543_v60 = vcombine.low %v572_v36, %v576_v37  ;;  %v7161_v36 = vld [vmem:[#allocation9 + $0x480] ss:$16 sps:$4 sm:$0xff]   ;;  %v7169_v37 = vld [vmem:[#allocation9 + $0x4a4] ss:$16 sps:$4 sm:$0xff]  }
 0x26c   :  { %5233 = vmatpush1.bf16.msra.mxu0 %v7077_v52  ;;  %v610_v52 = vrot.slane %v7949_v45, %v609_v42  ;;  %v7107_v45 = vld [vmem:[#allocation9 + $0x3c0] ss:$16 sps:$4 sm:$0xff]  }
 0x26d   :  { %5234 = vmatprep.subr.bf16.mxu0 %v7082_v53  ;;  %v7104_v53 = vld [vmem:[#allocation9 + $0x3a0] ss:$16 sps:$4 sm:$0xff]  }
 0x26e   :  { %3540 = vmatpush1.bf16.msra.mxu1 %v6479_v55  ;;  %v7109_v55 = vld [vmem:[#allocation9 + $0x3c4] ss:$16 sps:$4 sm:$0xff]  }
 0x26f   :  { %3541 = vmatprep.subr.bf16.mxu1 %v6488_v59  ;;  %v592_v59 = vld [vmem:[#allocation6 + $0xdf8] sm:$0xff] }
 0x270   :  { %5235 = vmatpush1.bf16.msra.mxu0 %v7080_v56  ;;  %v588_v56 = vld [vmem:[#allocation6 + $0xdd8] sm:$0xff] }
 0x271   :  { %5236 = vmatprep.subr.bf16.mxu0 %v7085_v61  ;;  %v6560_v4 = vcombine.high %v588_v56, %v592_v59  ;;  %v6559_v10 = vcombine.low %v588_v56, %v592_v59  ;;  %v7148_v56 = vld [vmem:[#allocation9 + $0x12c] ss:$16 sps:$4 sm:$0xff]   ;;  %v7185_v59 = vld [vmem:[#allocation9 + $0x500] ss:$16 sps:$4 sm:$0xff]  }
 0x272   :  { %3542 = vmatpush1.bf16.msra.mxu1 %v6487_v0 }
 0x273   :  { %3543 = vmatprep.subr.bf16.mxu1 %v6496_v2 }
 0x274   :  { %5237 = vmatpush1.bf16.msra.mxu0 %v7083_v1  ;;  %v6551_v1 = vcombine.low %v580_v48, %v584_v49  ;;  %v7131_v48 = vld [vmem:[#allocation9 + $0xc8] ss:$16 sps:$4 sm:$0xff]   ;;  %v7136_v49 = vld [vmem:[#allocation9 + $0xec] ss:$16 sps:$4 sm:$0xff]  }
 0x275   :  { %5238 = vmatprep.subr.bf16.mxu0 %v7088_v3 }
 0x276   :  { %3544 = vmatpush1.bf16.msra.mxu1 %v6495_v6  ;;  %v7112_v6 = vld [vmem:[#allocation9 + $0x3e4] ss:$16 sps:$4 sm:$0xff]  }
 0x277   :  { %3556 = vmatprep.subr.bf16.mxu1 %v6504_v39 }
 0x278   :  { %5239 = vmatpush1.bf16.msra.mxu0 %v7086_v7 }
 0x279   :  { %5240 = vmatprep.subr.bf16.mxu0 %v7091_v8  ;;  %3546 = vmatmul.mubr.bf16.vlgmr.msra.gmra.mrb[8].mxu1 %v7515_v16  ;;  %v7118_v16 = vld [vmem:[#allocation9 + $0x2c] ss:$16 sps:$4 sm:$0xff]  }
 0x27a   :  { %3557 = vmatpush1.bf16.msra.mxu1 %v6503_v11  ;;  %3588 = vmatprep.mubr.bf16.mxu1 %v7744_v21  ;;  %v6527_v21 = vcombine.low %v556_v22, %v560_v31  ;;  %v7121_v22 = vld [vmem:[#allocation9 + $0x4c] ss:$16 sps:$4 sm:$0xff]   ;;  %v7143_v31 = vld [vmem:[#allocation9 + $0x420] ss:$16 sps:$4 sm:$0xff]  }
 0x27b   :  { %3558 = vmatprep.subr.bf16.mxu1 %v6512_v13  ;;  %v7115_v13 = vld [vmem:[#allocation9 + $0xc] ss:$16 sps:$4 sm:$0xff]  }
 0x27c   :  { %5241 = vmatpush1.bf16.msra.mxu0 %v7089_v12  ;;  %v7110_v12 = vld [vmem:[#allocation9 + $0x3e0] ss:$16 sps:$4 sm:$0xff]  }
 0x27d   :  { %5242 = vmatprep.subr.bf16.mxu0 %v7094_v15 }
 0x27e   :  { %3559 = vmatpush1.bf16.msra.mxu1 %v6511_v17  ;;  %v7137_v17 = vld [vmem:[#allocation9 + $0x400] ss:$16 sps:$4 sm:$0xff]  }
 0x27f   :  { %3560 = vmatprep.subr.bf16.mxu1 %v6520_v18  ;;  %v7145_v18 = vld [vmem:[#allocation9 + $0x424] ss:$16 sps:$4 sm:$0xff]  }
 0x280   :  { %5243 = vmatpush1.bf16.msra.mxu0 %v7092_v28  ;;  %v7516_v28 = vld [vmem:[#allocation3 + $0x18] ss:$28 sps:$4 sm:$0xff]  }
 0x281   :  { %5244 = vmatprep.subr.bf16.mxu0 %v7097_v20  ;;  %v7116_v20 = vld [vmem:[#allocation9 + $0x28] ss:$16 sps:$4 sm:$0xff]  }
 0x282   :  { %3561 = vmatpush1.bf16.msra.mxu1 %v6519_v23  ;;  %v7151_v23 = vld [vmem:[#allocation9 + $0x444] ss:$16 sps:$4 sm:$0xff]  }
 0x283   :  { %3562 = vmatprep.subr.bf16.mxu1 %v6528_v26  ;;  %v7124_v26 = vld [vmem:[#allocation9 + $0x6c] ss:$16 sps:$4 sm:$0xff]  }
 0x284   :  { %5245 = vmatpush1.bf16.msra.mxu0 %v7095_v25  ;;  %v7119_v25 = vld [vmem:[#allocation9 + $0x48] ss:$16 sps:$4 sm:$0xff]  }
 0x285   :  { %5246 = vmatprep.subr.bf16.mxu0 %v7100_v14  ;;  %v7149_v14 = vld [vmem:[#allocation9 + $0x440] ss:$16 sps:$4 sm:$0xff]  }
 0x286   :  { %3563 = vmatpush1.bf16.msra.mxu1 %v6527_v21  ;;  %v7127_v21 = vld [vmem:[#allocation9 + $0x8c] ss:$16 sps:$4 sm:$0xff]  }
 0x287   :  { %3564 = vmatprep.subr.bf16.mxu1 %v6536_v34  ;;  %v7125_v34 = vld [vmem:[#allocation9 + $0x88] ss:$16 sps:$4 sm:$0xff]  }
 0x288   :  { %5247 = vmatpush1.bf16.msra.mxu0 %v7098_v30  ;;  %v7163_v30 = vld [vmem:[#allocation9 + $0x484] ss:$16 sps:$4 sm:$0xff]  }
 0x289   :  { %5248 = vmatprep.subr.bf16.mxu0 %v7103_v35  ;;  %v7130_v35 = vld [vmem:[#allocation9 + $0xac] ss:$16 sps:$4 sm:$0xff]  }
 0x28a   :  { %3565 = vmatpush1.bf16.msra.mxu1 %v6535_v51  ;;  %v7128_v51 = vld [vmem:[#allocation9 + $0xa8] ss:$16 sps:$4 sm:$0xff]  }
 0x28b   :  { %3566 = vmatprep.subr.bf16.mxu1 %v6544_v44  ;;  %v7167_v44 = vld [vmem:[#allocation9 + $0x4a0] ss:$16 sps:$4 sm:$0xff]  }
 0x28c   :  { %5249 = vmatpush1.bf16.msra.mxu0 %v7101_v43  ;;  %v3246_v57 = vpop.f32.mrb[4].mxu1  ;;  %v7133_v43 = vld [vmem:[#allocation9 + $0xcc] ss:$16 sps:$4 sm:$0xff]  }
 0x28d   :  { %5250 = vmatprep.subr.bf16.mxu0 %v7106_v58  ;;  %v6891_v61 = vadd.f32 %v3246_v57, %v606_v50  ;;  %v3248_v62 = vpop.f32.mrb[5].mxu1  ;;  %v7175_v58 = vld [vmem:[#allocation9 + $0x4c4] ss:$16 sps:$4 sm:$0xff]  }
 0x28e   :  { %v6892_v63 = vadd.f32 %v3248_v62, %v610_v52  ;;  %v3250_v0 = vpop.f32.mrb[6].mxu1  ;;  %3567 = vmatpush1.bf16.msra.mxu1 %v6543_v60  ;;  %v7134_v60 = vld [vmem:[#allocation9 + $0xe8] ss:$16 sps:$4 sm:$0xff]   ;;  %v7187_v57 = vld [vmem:[#allocation9 + $0x504] ss:$16 sps:$4 sm:$0xff]  }
 0x28f   :  { %v6893_v2 = vadd.f32 %v3250_v0, %v606_v50  ;;  %v3252_v3 = vpop.f32.mrb[7].mxu1  ;;  %3568 = vmatprep.subr.bf16.mxu1 %v6552_v54  ;;  %v3601_v7 = vmax.f32 %v6891_v61, 0.0  ;;  %v7173_v50 = vld [vmem:[#allocation9 + $0x4c0] ss:$16 sps:$4 sm:$0xff]   ;;  %v7193_v61 = vld [vmem:[#allocation9 + $0x524] ss:$16 sps:$4 sm:$0xff]  }
 0x290   :  { %5251 = vmatpush1.bf16.msra.mxu0 %v7104_v53  ;;  %v6894_v5 = vadd.f32 %v3252_v3, %v610_v52  ;;  %v3602_v8 = vmax.f32 %v6892_v63, 0.0  ;;  %v7181_v52 = vld [vmem:[#allocation9 + $0x4e4] ss:$16 sps:$4 sm:$0xff]   ;;  %v7142_v53 = vld [vmem:[#allocation9 + $0x10c] ss:$16 sps:$4 sm:$0xff]  }
 0x291   :  { %5252 = vmatprep.subr.bf16.mxu0 %v7109_v55  ;;  %v3609_v39 = vmax.f32 %v6893_v2, 0.0  ;;  %v7179_v54 = vld [vmem:[#allocation9 + $0x4e0] ss:$16 sps:$4 sm:$0xff]   ;;  %v7140_v55 = vld [vmem:[#allocation9 + $0x108] ss:$16 sps:$4 sm:$0xff]  }
 0x292   :  { %v3610_v9 = vmax.f32 %v6894_v5, 0.0  ;;  %3569 = vmatpush1.bf16.msra.mxu1 %v6551_v1  ;;  %v7146_v62 = vld [vmem:[#allocation9 + $0x128] ss:$16 sps:$4 sm:$0xff]   ;;  %v7154_v63 = vld [vmem:[#allocation9 + $0x14c] ss:$16 sps:$4 sm:$0xff]  }
 0x293   :  { %v7978_v11 = vpack.c.bf16 %v3609_v39, %v3601_v7  ;;  %3570 = vmatprep.subr.bf16.mxu1 %v6560_v4  ;;  %v7191_v0 = vld [vmem:[#allocation9 + $0x520] ss:$16 sps:$4 sm:$0xff]   ;;  %v7199_v1 = vld [vmem:[#allocation9 + $0x544] ss:$16 sps:$4 sm:$0xff]   ;;  %v7152_v2 = vld [vmem:[#allocation9 + $0x148] ss:$16 sps:$4 sm:$0xff]  }
 0x294   :  { %5253 = vmatpush1.bf16.msra.mxu0 %v7107_v45  ;;  %v7980_v15 = vpack.c.bf16 %v3610_v9, %v3602_v8  ;;  %v7160_v3 = vld [vmem:[#allocation9 + $0x16c] ss:$16 sps:$4 sm:$0xff]   ;;  %v7197_v45 = vld [vmem:[#allocation9 + $0x540] ss:$16 sps:$4 sm:$0xff]   ;;  %v7205_v4 = vld [vmem:[#allocation9 + $0x564] ss:$16 sps:$4 sm:$0xff]  }
 0x295   :  { %5254 = vmatprep.subr.bf16.mxu0 %v7112_v6  ;;  %v7158_v5 = vld [vmem:[#allocation9 + $0x168] ss:$16 sps:$4 sm:$0xff]   ;;  %v7166_v6 = vld [vmem:[#allocation9 + $0x18c] ss:$16 sps:$4 sm:$0xff]   ;;  %v7203_v7 = vld [vmem:[#allocation9 + $0x560] ss:$16 sps:$4 sm:$0xff]  }
 0x296   :  { %3571 = vmatpush1.bf16.msra.mxu1 %v6559_v10  ;;  %5256 = vmatprep.mubr.bf16.mxu0 %v7980_v15  ;;  %v7211_v39 = vld [vmem:[#allocation9 + $0x584] ss:$16 sps:$4 sm:$0xff]   ;;  %v7164_v8 = vld [vmem:[#allocation9 + $0x188] ss:$16 sps:$4 sm:$0xff]   ;;  %v7172_v9 = vld [vmem:[#allocation9 + $0x1ac] ss:$16 sps:$4 sm:$0xff]  }
 0x297   :  { %5353 = vmatprep.subr.bf16.mxu1 %v7115_v13  ;;  %v7209_v10 = vld [vmem:[#allocation9 + $0x580] ss:$16 sps:$4 sm:$0xff]   ;;  %v7170_v13 = vld [vmem:[#allocation9 + $0x1a8] ss:$16 sps:$4 sm:$0xff]  }
 0x298   :  { %5255 = vmatpush1.bf16.msra.mxu0 %v7110_v12  ;;  %v7217_v12 = vld [vmem:[#allocation9 + $0x5a4] ss:$16 sps:$4 sm:$0xff]  }
 0x299   :  { %5267 = vmatprep.subr.bf16.mxu0 %v7139_v24  ;;  %3589 = vmatmul.mubr.bf16.vlgmr.msra.gmra.mrb[8].mxu1 %v7516_v28  ;;  %v7178_v24 = vld [vmem:[#allocation9 + $0x1cc] ss:$16 sps:$4 sm:$0xff]  }
 0x29a   :  { %5354 = vmatpush1.bf16.msra.mxu1 %v7113_v41  ;;  %5385 = vmatprep.mubr.bf16.mxu1 %v7964_v32  ;;  %v7155_v32 = vld [vmem:[#allocation9 + $0x460] ss:$16 sps:$4 sm:$0xff]   ;;  %v7184_v28 = vld [vmem:[#allocation9 + $0x1ec] ss:$16 sps:$4 sm:$0xff]  }
 0x29b   :  { %5257 = vmatmul.mubr.bf16.vlgmr.msra.gmra.mrb[8].mxu0 %v7978_v11  ;;  %5355 = vmatprep.subr.bf16.mxu1 %v7118_v16  ;;  %v7215_v41 = vld [vmem:[#allocation9 + $0x5a0] ss:$16 sps:$4 sm:$0xff]   ;;  %v7223_v16 = vld [vmem:[#allocation9 + $0x5c4] ss:$16 sps:$4 sm:$0xff]  }
 0x29c   :  { %5268 = vmatpush1.bf16.msra.mxu0 %v7137_v17  ;;  %v7176_v17 = vld [vmem:[#allocation9 + $0x1c8] ss:$16 sps:$4 sm:$0xff]  }
 0x29d   :  { %5269 = vmatprep.subr.bf16.mxu0 %v7145_v18  ;;  %v7221_v18 = vld [vmem:[#allocation9 + $0x5c0] ss:$16 sps:$4 sm:$0xff]  }
 0x29e   :  { %5356 = vmatpush1.bf16.msra.mxu1 %v7116_v20  ;;  %v7229_v20 = vld [vmem:[#allocation9 + $0x5e4] ss:$16 sps:$4 sm:$0xff]  }
 0x29f   :  { %5357 = vmatprep.subr.bf16.mxu1 %v7121_v22  ;;  %v7182_v22 = vld [vmem:[#allocation9 + $0x1e8] ss:$16 sps:$4 sm:$0xff]  }
 0x2a0   :  { %5270 = vmatpush1.bf16.msra.mxu0 %v7143_v31  ;;  %v7190_v31 = vld [vmem:[#allocation9 + $0x20c] ss:$16 sps:$4 sm:$0xff]  }
 0x2a1   :  { %5271 = vmatprep.subr.bf16.mxu0 %v7151_v23  ;;  %v7227_v23 = vld [vmem:[#allocation9 + $0x5e0] ss:$16 sps:$4 sm:$0xff]  }
 0x2a2   :  { %5358 = vmatpush1.bf16.msra.mxu1 %v7119_v25  ;;  %v7283_v25 = vld [vmem:[#allocation9 + $0x604] ss:$16 sps:$4 sm:$0xff]  }
 0x2a3   :  { %5359 = vmatprep.subr.bf16.mxu1 %v7124_v26  ;;  %v7188_v26 = vld [vmem:[#allocation9 + $0x208] ss:$16 sps:$4 sm:$0xff]  }
 0x2a4   :  { %5272 = vmatpush1.bf16.msra.mxu0 %v7149_v14  ;;  %v7196_v14 = vld [vmem:[#allocation9 + $0x22c] ss:$16 sps:$4 sm:$0xff]  }
 0x2a5   :  { %5273 = vmatprep.subr.bf16.mxu0 %v7157_v33  ;;  %v7194_v33 = vld [vmem:[#allocation9 + $0x228] ss:$16 sps:$4 sm:$0xff]  }
 0x2a6   :  { %5360 = vmatpush1.bf16.msra.mxu1 %v7122_v47  ;;  %v7202_v47 = vld [vmem:[#allocation9 + $0x24c] ss:$16 sps:$4 sm:$0xff]  }
 0x2a7   :  { %5361 = vmatprep.subr.bf16.mxu1 %v7127_v21  ;;  %v7200_v21 = vld [vmem:[#allocation9 + $0x248] ss:$16 sps:$4 sm:$0xff]  }
 0x2a8   :  { %5274 = vmatpush1.bf16.msra.mxu0 %v7155_v32  ;;  %v7208_v32 = vld [vmem:[#allocation9 + $0x26c] ss:$16 sps:$4 sm:$0xff]  }
 0x2a9   :  { %5275 = vmatprep.subr.bf16.mxu0 %v7163_v30  ;;  %v7206_v30 = vld [vmem:[#allocation9 + $0x268] ss:$16 sps:$4 sm:$0xff]  }
 0x2aa   :  { %5362 = vmatpush1.bf16.msra.mxu1 %v7125_v34  ;;  %v7214_v34 = vld [vmem:[#allocation9 + $0x28c] ss:$16 sps:$4 sm:$0xff]  }
 0x2ab   :  { %5363 = vmatprep.subr.bf16.mxu1 %v7130_v35  ;;  %v7212_v35 = vld [vmem:[#allocation9 + $0x288] ss:$16 sps:$4 sm:$0xff]  }
 0x2ac   :  { %5276 = vmatpush1.bf16.msra.mxu0 %v7161_v36  ;;  %v613_v36 = vsub.s32 4, %v7944_v29 }
 0x2ad   :  { %5277 = vmatprep.subr.bf16.mxu0 %v7169_v37  ;;  %v7220_v37 = vld [vmem:[#allocation9 + $0x2ac] ss:$16 sps:$4 sm:$0xff]  }
 0x2ae   :  { %5364 = vmatpush1.bf16.msra.mxu1 %v7128_v51 }
 0x2af   :  { %5365 = vmatprep.subr.bf16.mxu1 %v7133_v43  ;;  %v7218_v43 = vld [vmem:[#allocation9 + $0x2a8] ss:$16 sps:$4 sm:$0xff]  }
 0x2b0   :  { %5278 = vmatpush1.bf16.msra.mxu0 %v7167_v44 }
 0x2b1   :  { %5279 = vmatprep.subr.bf16.mxu0 %v7175_v58  ;;  %v7226_v58 = vld [vmem:[#allocation9 + $0x2cc] ss:$16 sps:$4 sm:$0xff]  }
 0x2b2   :  { %5366 = vmatpush1.bf16.msra.mxu1 %v7131_v48 }
 0x2b3   :  { %5367 = vmatprep.subr.bf16.mxu1 %v7136_v49 }
 0x2b4   :  { %5280 = vmatpush1.bf16.msra.mxu0 %v7173_v50 }
 0x2b5   :  { %5281 = vmatprep.subr.bf16.mxu0 %v7181_v52  ;;  %v7224_v52 = vld [vmem:[#allocation9 + $0x2c8] ss:$16 sps:$4 sm:$0xff]  }
 0x2b6   :  { %5368 = vmatpush1.bf16.msra.mxu1 %v7134_v60 }
 0x2b7   :  { %5369 = vmatprep.subr.bf16.mxu1 %v7142_v53 }
 0x2b8   :  { %5282 = vmatpush1.bf16.msra.mxu0 %v7179_v54  ;;  %v7232_v54 = vld [vmem:[#allocation9 + $0x2ec] ss:$16 sps:$4 sm:$0xff]  }
 0x2b9   :  { %5283 = vmatprep.subr.bf16.mxu0 %v7187_v57 }
 0x2ba   :  { %5370 = vmatpush1.bf16.msra.mxu1 %v7140_v55 }
 0x2bb   :  { %5371 = vmatprep.subr.bf16.mxu1 %v7148_v56 }
 0x2bc   :  { %5284 = vmatpush1.bf16.msra.mxu0 %v7185_v59 }
 0x2bd   :  { %5285 = vmatprep.subr.bf16.mxu0 %v7193_v61 }
 0x2be   :  { %5372 = vmatpush1.bf16.msra.mxu1 %v7146_v62  ;;  %v7230_v62 = vld [vmem:[#allocation9 + $0x2e8] ss:$16 sps:$4 sm:$0xff]  }
 0x2bf   :  { %5373 = vmatprep.subr.bf16.mxu1 %v7154_v63 }
 0x2c0   :  { %5286 = vmatpush1.bf16.msra.mxu0 %v7191_v0 }
 0x2c1   :  { %5287 = vmatprep.subr.bf16.mxu0 %v7199_v1  ;;  %v7235_v1 = vld [vmem:[#allocation9 + $0x30c] ss:$16 sps:$4 sm:$0xff]  }
 0x2c2   :  { %5374 = vmatpush1.bf16.msra.mxu1 %v7152_v2 }
 0x2c3   :  { %5375 = vmatprep.subr.bf16.mxu1 %v7160_v3 }
 0x2c4   :  { %5288 = vmatpush1.bf16.msra.mxu0 %v7197_v45  ;;  %v7281_v45 = vld [vmem:[#allocation9 + $0x600] ss:$16 sps:$4 sm:$0xff]  }
 0x2c5   :  { %5289 = vmatprep.subr.bf16.mxu0 %v7205_v4  ;;  %v7233_v4 = vld [vmem:[#allocation9 + $0x308] ss:$16 sps:$4 sm:$0xff]  }
 0x2c6   :  { %5376 = vmatpush1.bf16.msra.mxu1 %v7158_v5  ;;  %v7289_v5 = vld [vmem:[#allocation9 + $0x624] ss:$16 sps:$4 sm:$0xff]  }
 0x2c7   :  { %5377 = vmatprep.subr.bf16.mxu1 %v7166_v6  ;;  %v7238_v6 = vld [vmem:[#allocation9 + $0x32c] ss:$16 sps:$4 sm:$0xff]  }
 0x2c8   :  { %5290 = vmatpush1.bf16.msra.mxu0 %v7203_v7  ;;  %v7287_v7 = vld [vmem:[#allocation9 + $0x620] ss:$16 sps:$4 sm:$0xff]  }
 0x2c9   :  { %5291 = vmatprep.subr.bf16.mxu0 %v7211_v39  ;;  %v7236_v39 = vld [vmem:[#allocation9 + $0x328] ss:$16 sps:$4 sm:$0xff]  }
 0x2ca   :  { %5378 = vmatpush1.bf16.msra.mxu1 %v7164_v8  ;;  %v7295_v8 = vld [vmem:[#allocation9 + $0x644] ss:$16 sps:$4 sm:$0xff]  }
 0x2cb   :  { %5379 = vmatprep.subr.bf16.mxu1 %v7172_v9  ;;  %v7241_v9 = vld [vmem:[#allocation9 + $0x34c] ss:$16 sps:$4 sm:$0xff]  }
 0x2cc   :  { %5292 = vmatpush1.bf16.msra.mxu0 %v7209_v10  ;;  %v7293_v10 = vld [vmem:[#allocation9 + $0x640] ss:$16 sps:$4 sm:$0xff]  }
 0x2cd   :  { %5293 = vmatprep.subr.bf16.mxu0 %v7217_v12  ;;  %v7239_v12 = vld [vmem:[#allocation9 + $0x348] ss:$16 sps:$4 sm:$0xff]  }
 0x2ce   :  { %5380 = vmatpush1.bf16.msra.mxu1 %v7170_v13  ;;  %v7301_v13 = vld [vmem:[#allocation9 + $0x664] ss:$16 sps:$4 sm:$0xff]  }
 0x2cf   :  { %5381 = vmatprep.subr.bf16.mxu1 %v7178_v24  ;;  %v7244_v24 = vld [vmem:[#allocation9 + $0x36c] ss:$16 sps:$4 sm:$0xff]  }
 0x2d0   :  { %5294 = vmatpush1.bf16.msra.mxu0 %v7215_v41  ;;  %v7299_v41 = vld [vmem:[#allocation9 + $0x660] ss:$16 sps:$4 sm:$0xff]  }
 0x2d1   :  { %5295 = vmatprep.subr.bf16.mxu0 %v7223_v16  ;;  %v7242_v16 = vld [vmem:[#allocation9 + $0x368] ss:$16 sps:$4 sm:$0xff]  }
 0x2d2   :  { %5382 = vmatpush1.bf16.msra.mxu1 %v7176_v17  ;;  %v7307_v17 = vld [vmem:[#allocation9 + $0x684] ss:$16 sps:$4 sm:$0xff]  }
 0x2d3   :  { %5383 = vmatprep.subr.bf16.mxu1 %v7184_v28  ;;  %v7247_v28 = vld [vmem:[#allocation9 + $0x38c] ss:$16 sps:$4 sm:$0xff]  }
 0x2d4   :  { %5296 = vmatpush1.bf16.msra.mxu0 %v7221_v18  ;;  %v7305_v18 = vld [vmem:[#allocation9 + $0x680] ss:$16 sps:$4 sm:$0xff]  }
 0x2d5   :  { %5297 = vmatprep.subr.bf16.mxu0 %v7229_v20  ;;  %v7245_v20 = vld [vmem:[#allocation9 + $0x388] ss:$16 sps:$4 sm:$0xff]  }
 0x2d6   :  { %5384 = vmatpush1.bf16.msra.mxu1 %v7182_v22  ;;  %v7313_v22 = vld [vmem:[#allocation9 + $0x6a4] ss:$16 sps:$4 sm:$0xff]  }
 0x2d7   :  { %5396 = vmatprep.subr.bf16.mxu1 %v7190_v31  ;;  %v7250_v31 = vld [vmem:[#allocation9 + $0x3ac] ss:$16 sps:$4 sm:$0xff]  }
 0x2d8   :  { %5298 = vmatpush1.bf16.msra.mxu0 %v7227_v23  ;;  %v7311_v23 = vld [vmem:[#allocation9 + $0x6a0] ss:$16 sps:$4 sm:$0xff]  }
 0x2d9   :  { %5386 = vmatmul.mubr.bf16.vlgmr.msra.gmra.mrb[12].mxu1 %v7962_v27  ;;  %5310 = vmatprep.subr.bf16.mxu0 %v7283_v25  ;;  %v617_v27 = vsub.s32 5, %v7944_v29  ;;  %v7248_v25 = vld [vmem:[#allocation9 + $0x3a8] ss:$16 sps:$4 sm:$0xff]  }
 0x2da   :  { %5397 = vmatpush1.bf16.msra.mxu1 %v7188_v26  ;;  %5428 = vmatprep.mubr.bf16.mxu1 %v7980_v15  ;;  %v7989_v15 = vld [vmem:[#allocation8] sm:$0xff]  ;;  %v7319_v26 = vld [vmem:[#allocation9 + $0x6c4] ss:$16 sps:$4 sm:$0xff]  }
 0x2db   :  { %5398 = vmatprep.subr.bf16.mxu1 %v7196_v14  ;;  %v614_v51 = vrot.slane %v7989_v15, %v613_v36  ;;  %v618_v44 = vrot.slane %v7989_v15, %v617_v27  ;;  %v7253_v14 = vld [vmem:[#allocation9 + $0x3cc] ss:$16 sps:$4 sm:$0xff]   ;;  %v7329_v27 = vld [vmem:[#allocation9 + $0x700] ss:$16 sps:$4 sm:$0xff]  }
 0x2dc   :  { %v7259_v36 = vld [vmem:[#allocation9 + $0x40c] ss:$16 sps:$4 sm:$0xff]  }
 0x2de   :  { %5399 = vmatpush1.bf16.msra.mxu1 %v7194_v33  ;;  %v7317_v33 = vld [vmem:[#allocation9 + $0x6c0] ss:$16 sps:$4 sm:$0xff]  }
 0x2df   :  { %5400 = vmatprep.subr.bf16.mxu1 %v7202_v47  ;;  %v7251_v47 = vld [vmem:[#allocation9 + $0x3c8] ss:$16 sps:$4 sm:$0xff]  }
 0x2e2   :  { %5401 = vmatpush1.bf16.msra.mxu1 %v7200_v21  ;;  %v7325_v21 = vld [vmem:[#allocation9 + $0x6e4] ss:$16 sps:$4 sm:$0xff]  }
 0x2e3   :  { %5402 = vmatprep.subr.bf16.mxu1 %v7208_v32  ;;  %v7256_v32 = vld [vmem:[#allocation9 + $0x3ec] ss:$16 sps:$4 sm:$0xff]  }
 0x2e6   :  { %5403 = vmatpush1.bf16.msra.mxu1 %v7206_v30  ;;  %v7323_v30 = vld [vmem:[#allocation9 + $0x6e0] ss:$16 sps:$4 sm:$0xff]  }
 0x2e7   :  { %5404 = vmatprep.subr.bf16.mxu1 %v7214_v34  ;;  %v7254_v34 = vld [vmem:[#allocation9 + $0x3e8] ss:$16 sps:$4 sm:$0xff]  }
 0x2ea   :  { %5405 = vmatpush1.bf16.msra.mxu1 %v7212_v35  ;;  %v7331_v35 = vld [vmem:[#allocation9 + $0x704] ss:$16 sps:$4 sm:$0xff]  }
 0x2eb   :  { %5406 = vmatprep.subr.bf16.mxu1 %v7220_v37  ;;  %v7257_v37 = vld [vmem:[#allocation9 + $0x408] ss:$16 sps:$4 sm:$0xff]  }
 0x2ee   :  { %v3418_v48 = vpop.f32.mrb[4].mxu0  ;;  %5407 = vmatpush1.bf16.msra.mxu1 %v7218_v43  ;;  %v7337_v43 = vld [vmem:[#allocation9 + $0x724] ss:$16 sps:$4 sm:$0xff]  }
 0x2ef   :  { %v6895_v49 = vadd.f32 %v3418_v48, %v614_v51  ;;  %v3420_v50 = vpop.f32.mrb[5].mxu0  ;;  %5408 = vmatprep.subr.bf16.mxu1 %v7226_v58  ;;  %v7260_v58 = vld [vmem:[#allocation9 + $0x428] ss:$16 sps:$4 sm:$0xff]   ;;  %v7343_v48 = vld [vmem:[#allocation9 + $0x744] ss:$16 sps:$4 sm:$0xff]  }
 0x2f0   :  { %v6896_v60 = vadd.f32 %v3420_v50, %v618_v44  ;;  %v3422_v53 = vpop.f32.mrb[6].mxu0  ;;  %v7341_v50 = vld [vmem:[#allocation9 + $0x740] ss:$16 sps:$4 sm:$0xff]  }
 0x2f1   :  { %v6897_v57 = vadd.f32 %v3422_v53, %v614_v51  ;;  %v3424_v55 = vpop.f32.mrb[7].mxu0  ;;  %v3603_v59 = vmax.f32 %v6895_v49, 0.0  ;;  %v7262_v51 = vld [vmem:[#allocation9 + $0x42c] ss:$16 sps:$4 sm:$0xff]  }
 0x2f2   :  { %v6898_v56 = vadd.f32 %v3424_v55, %v618_v44  ;;  %5409 = vmatpush1.bf16.msra.mxu1 %v7224_v52  ;;  %v3604_v63 = vmax.f32 %v6896_v60, 0.0  ;;  %v7335_v44 = vld [vmem:[#allocation9 + $0x720] ss:$16 sps:$4 sm:$0xff]   ;;  %v7265_v49 = vld [vmem:[#allocation9 + $0x44c] ss:$16 sps:$4 sm:$0xff]  }
 0x2f3   :  { %v3611_v61 = vmax.f32 %v6897_v57, 0.0  ;;  %5410 = vmatprep.subr.bf16.mxu1 %v7232_v54  ;;  %v7263_v52 = vld [vmem:[#allocation9 + $0x448] ss:$16 sps:$4 sm:$0xff]   ;;  %v7349_v60 = vld [vmem:[#allocation9 + $0x764] ss:$16 sps:$4 sm:$0xff]  }
 0x2f4   :  { %v3612_v0 = vmax.f32 %v6898_v56, 0.0  ;;  %v7268_v53 = vld [vmem:[#allocation9 + $0x46c] ss:$16 sps:$4 sm:$0xff]   ;;  %v7266_v54 = vld [vmem:[#allocation9 + $0x468] ss:$16 sps:$4 sm:$0xff]  }
 0x2f5   :  { %v7993_v2 = vpack.c.bf16 %v3611_v61, %v3603_v59  ;;  %v7355_v57 = vld [vmem:[#allocation9 + $0x784] ss:$16 sps:$4 sm:$0xff]   ;;  %v7271_v55 = vld [vmem:[#allocation9 + $0x48c] ss:$16 sps:$4 sm:$0xff]   ;;  %v7353_v56 = vld [vmem:[#allocation9 + $0x780] ss:$16 sps:$4 sm:$0xff]  }
 0x2f6   :  { %v7995_v3 = vpack.c.bf16 %v3612_v0, %v3604_v63  ;;  %5411 = vmatpush1.bf16.msra.mxu1 %v7230_v62  ;;  %v7269_v59 = vld [vmem:[#allocation9 + $0x488] ss:$16 sps:$4 sm:$0xff]   ;;  %v7361_v61 = vld [vmem:[#allocation9 + $0x7a4] ss:$16 sps:$4 sm:$0xff]   ;;  %v7274_v62 = vld [vmem:[#allocation9 + $0x4ac] ss:$16 sps:$4 sm:$0xff]  }
 0x2f7   :  { %5412 = vmatprep.subr.bf16.mxu1 %v7235_v1  ;;  %v7359_v63 = vld [vmem:[#allocation9 + $0x7a0] ss:$16 sps:$4 sm:$0xff]   ;;  %v7272_v0 = vld [vmem:[#allocation9 + $0x4a8] ss:$16 sps:$4 sm:$0xff]   ;;  %v7367_v1 = vld [vmem:[#allocation9 + $0x7c4] ss:$16 sps:$4 sm:$0xff]  }
 0x2f8   :  { %5299 = vmatprep.mubr.bf16.mxu0 %v7995_v3 }
 0x2f9   :  { %5300 = vmatmul.mubr.bf16.vlgmr.msra.gmra.mrb[8].mxu0 %v7993_v2 }
 0x2fa   :  { %5311 = vmatpush1.bf16.msra.mxu0 %v7281_v45  ;;  %5413 = vmatpush1.bf16.msra.mxu1 %v7233_v4  ;;  %v7365_v45 = vld [vmem:[#allocation9 + $0x7c0] ss:$16 sps:$4 sm:$0xff]   ;;  %v7275_v4 = vld [vmem:[#allocation9 + $0x4c8] ss:$16 sps:$4 sm:$0xff]  }
 0x2fb   :  { %5312 = vmatprep.subr.bf16.mxu0 %v7289_v5  ;;  %5414 = vmatprep.subr.bf16.mxu1 %v7238_v6  ;;  %v7373_v5 = vld [vmem:[#allocation9 + $0x7e4] ss:$16 sps:$4 sm:$0xff]   ;;  %v7280_v6 = vld [vmem:[#allocation9 + $0x4ec] ss:$16 sps:$4 sm:$0xff]  }
 0x2fe   :  { %5313 = vmatpush1.bf16.msra.mxu0 %v7287_v7  ;;  %5415 = vmatpush1.bf16.msra.mxu1 %v7236_v39  ;;  %v7371_v7 = vld [vmem:[#allocation9 + $0x7e0] ss:$16 sps:$4 sm:$0xff]   ;;  %v7278_v39 = vld [vmem:[#allocation9 + $0x4e8] ss:$16 sps:$4 sm:$0xff]  }
 0x2ff   :  { %5314 = vmatprep.subr.bf16.mxu0 %v7295_v8  ;;  %5416 = vmatprep.subr.bf16.mxu1 %v7241_v9  ;;  %v7403_v8 = vld [vmem:[#allocation12 + $0x4] ss:$8 sps:$4 sm:$0xff]   ;;  %v7286_v9 = vld [vmem:[#allocation9 + $0x50c] ss:$16 sps:$4 sm:$0xff]  }
 0x302   :  { %5315 = vmatpush1.bf16.msra.mxu0 %v7293_v10  ;;  %5417 = vmatpush1.bf16.msra.mxu1 %v7239_v12  ;;  %v7284_v10 = vld [vmem:[#allocation9 + $0x508] ss:$16 sps:$4 sm:$0xff]   ;;  %v7292_v12 = vld [vmem:[#allocation9 + $0x52c] ss:$16 sps:$4 sm:$0xff]  }
 0x303   :  { %5316 = vmatprep.subr.bf16.mxu0 %v7301_v13  ;;  %5418 = vmatprep.subr.bf16.mxu1 %v7244_v24  ;;  %v7290_v13 = vld [vmem:[#allocation9 + $0x528] ss:$16 sps:$4 sm:$0xff]   ;;  %v7298_v24 = vld [vmem:[#allocation9 + $0x54c] ss:$16 sps:$4 sm:$0xff]  }
 0x306   :  { %5317 = vmatpush1.bf16.msra.mxu0 %v7299_v41  ;;  %5419 = vmatpush1.bf16.msra.mxu1 %v7242_v16  ;;  %v7296_v41 = vld [vmem:[#allocation9 + $0x548] ss:$16 sps:$4 sm:$0xff]   ;;  %v7304_v16 = vld [vmem:[#allocation9 + $0x56c] ss:$16 sps:$4 sm:$0xff]  }
 0x307   :  { %5318 = vmatprep.subr.bf16.mxu0 %v7307_v17  ;;  %5420 = vmatprep.subr.bf16.mxu1 %v7247_v28  ;;  %v7302_v17 = vld [vmem:[#allocation9 + $0x568] ss:$16 sps:$4 sm:$0xff]   ;;  %v7310_v28 = vld [vmem:[#allocation9 + $0x58c] ss:$16 sps:$4 sm:$0xff]  }
 0x30a   :  { %5319 = vmatpush1.bf16.msra.mxu0 %v7305_v18  ;;  %5421 = vmatpush1.bf16.msra.mxu1 %v7245_v20  ;;  %v7308_v18 = vld [vmem:[#allocation9 + $0x588] ss:$16 sps:$4 sm:$0xff]   ;;  %v7316_v20 = vld [vmem:[#allocation9 + $0x5ac] ss:$16 sps:$4 sm:$0xff]  }
 0x30b   :  { %5320 = vmatprep.subr.bf16.mxu0 %v7313_v22  ;;  %5422 = vmatprep.subr.bf16.mxu1 %v7250_v31  ;;  %v7314_v22 = vld [vmem:[#allocation9 + $0x5a8] ss:$16 sps:$4 sm:$0xff]   ;;  %v7322_v31 = vld [vmem:[#allocation9 + $0x5cc] ss:$16 sps:$4 sm:$0xff]  }
 0x30e   :  { %5321 = vmatpush1.bf16.msra.mxu0 %v7311_v23  ;;  %5423 = vmatpush1.bf16.msra.mxu1 %v7248_v25  ;;  %v7320_v23 = vld [vmem:[#allocation9 + $0x5c8] ss:$16 sps:$4 sm:$0xff]   ;;  %v7328_v25 = vld [vmem:[#allocation9 + $0x5ec] ss:$16 sps:$4 sm:$0xff]  }
 0x30f   :  { %5322 = vmatprep.subr.bf16.mxu0 %v7319_v26  ;;  %5424 = vmatprep.subr.bf16.mxu1 %v7253_v14  ;;  %v7326_v26 = vld [vmem:[#allocation9 + $0x5e8] ss:$16 sps:$4 sm:$0xff]   ;;  %v7334_v14 = vld [vmem:[#allocation9 + $0x60c] ss:$16 sps:$4 sm:$0xff]  }
 0x312   :  { %5323 = vmatpush1.bf16.msra.mxu0 %v7317_v33  ;;  %5425 = vmatpush1.bf16.msra.mxu1 %v7251_v47  ;;  %v7332_v33 = vld [vmem:[#allocation9 + $0x608] ss:$16 sps:$4 sm:$0xff]   ;;  %v7340_v47 = vld [vmem:[#allocation9 + $0x62c] ss:$16 sps:$4 sm:$0xff]  }
 0x313   :  { %5324 = vmatprep.subr.bf16.mxu0 %v7325_v21  ;;  %5426 = vmatprep.subr.bf16.mxu1 %v7256_v32  ;;  %v7338_v21 = vld [vmem:[#allocation9 + $0x628] ss:$16 sps:$4 sm:$0xff]   ;;  %v7346_v32 = vld [vmem:[#allocation9 + $0x64c] ss:$16 sps:$4 sm:$0xff]  }
 0x316   :  { %5325 = vmatpush1.bf16.msra.mxu0 %v7323_v30  ;;  %5427 = vmatpush1.bf16.msra.mxu1 %v7254_v34  ;;  %v7344_v30 = vld [vmem:[#allocation9 + $0x648] ss:$16 sps:$4 sm:$0xff]   ;;  %v7352_v34 = vld [vmem:[#allocation9 + $0x66c] ss:$16 sps:$4 sm:$0xff]  }
 0x317   :  { %5326 = vmatprep.subr.bf16.mxu0 %v7331_v35  ;;  %5439 = vmatprep.subr.bf16.mxu1 %v7259_v36  ;;  %v7350_v35 = vld [vmem:[#allocation9 + $0x668] ss:$16 sps:$4 sm:$0xff]   ;;  %v7358_v36 = vld [vmem:[#allocation9 + $0x68c] ss:$16 sps:$4 sm:$0xff]  }
 0x319   :  { %5429 = vmatmul.mubr.bf16.vlgmr.msra.gmra.mrb[12].mxu1 %v7978_v11  ;;  %v7347_v11 = vld [vmem:[#allocation9 + $0x760] ss:$16 sps:$4 sm:$0xff]  }
 0x31a   :  { %5327 = vmatpush1.bf16.msra.mxu0 %v7329_v27  ;;  %5440 = vmatpush1.bf16.msra.mxu1 %v7257_v37  ;;  %v621_v27 = vsub.s32 6, %v7944_v29  ;;  %v7356_v37 = vld [vmem:[#allocation9 + $0x688] ss:$16 sps:$4 sm:$0xff]  }
 0x31b   :  { %5471 = vmatprep.mubr.bf16.mxu1 %v7995_v3  ;;  %5441 = vmatprep.subr.bf16.mxu1 %v7262_v51  ;;  %v7277_v3 = vld [vmem:[#allocation9 + $0x4cc] ss:$16 sps:$4 sm:$0xff]   ;;  %v625_v51 = vsub.s32 7, %v7944_v29 }
 0x31c   :  { %5328 = vmatprep.subr.bf16.mxu0 %v7337_v43  ;;  %v622_v43 = vrot.slane %v7989_v15, %v621_v27  ;;  %v7430_v27 = vld [vmem:[#allocation12 + $0x94] ss:$8 sps:$4 sm:$0xff]  }
 0x31e   :  { %5329 = vmatpush1.bf16.msra.mxu0 %v7335_v44  ;;  %5442 = vmatpush1.bf16.msra.mxu1 %v7260_v58  ;;  %v626_v44 = vrot.slane %v7989_v15, %v625_v51  ;;  %v7362_v58 = vld [vmem:[#allocation9 + $0x6a8] ss:$16 sps:$4 sm:$0xff]  }
 0x31f   :  { %5330 = vmatprep.subr.bf16.mxu0 %v7343_v48  ;;  %5443 = vmatprep.subr.bf16.mxu1 %v7265_v49  ;;  %v7370_v48 = vld [vmem:[#allocation9 + $0x6cc] ss:$16 sps:$4 sm:$0xff]   ;;  %v7374_v15 = vld [vmem:[#allocation9 + $0x6e8] ss:$16 sps:$4 sm:$0xff]  }
 0x320   :  { %v7433_v51 = vld [vmem:[#allocation12 + $0xa4] ss:$8 sps:$4 sm:$0xff]  }
 0x322   :  { %5331 = vmatpush1.bf16.msra.mxu0 %v7341_v50  ;;  %5444 = vmatpush1.bf16.msra.mxu1 %v7263_v52 }
 0x323   :  { %5332 = vmatprep.subr.bf16.mxu0 %v7349_v60  ;;  %5445 = vmatprep.subr.bf16.mxu1 %v7268_v53 }
 0x326   :  { %5333 = vmatpush1.bf16.msra.mxu0 %v7347_v11  ;;  %5446 = vmatpush1.bf16.msra.mxu1 %v7266_v54  ;;  %v7368_v11 = vld [vmem:[#allocation9 + $0x6c8] ss:$16 sps:$4 sm:$0xff]  }
 0x327   :  { %5334 = vmatprep.subr.bf16.mxu0 %v7355_v57  ;;  %5447 = vmatprep.subr.bf16.mxu1 %v7271_v55  ;;  %v7376_v55 = vld [vmem:[#allocation9 + $0x6ec] ss:$16 sps:$4 sm:$0xff]  }
 0x32a   :  { %5335 = vmatpush1.bf16.msra.mxu0 %v7353_v56  ;;  %5448 = vmatpush1.bf16.msra.mxu1 %v7269_v59 }
 0x32b   :  { %5336 = vmatprep.subr.bf16.mxu0 %v7361_v61  ;;  %5449 = vmatprep.subr.bf16.mxu1 %v7274_v62 }
 0x32e   :  { %5337 = vmatpush1.bf16.msra.mxu0 %v7359_v63  ;;  %5450 = vmatpush1.bf16.msra.mxu1 %v7272_v0 }
 0x32f   :  { %5338 = vmatprep.subr.bf16.mxu0 %v7367_v1  ;;  %5451 = vmatprep.subr.bf16.mxu1 %v7277_v3  ;;  %v7379_v3 = vld [vmem:[#allocation9 + $0x70c] ss:$16 sps:$4 sm:$0xff]  }
 0x332   :  { %5339 = vmatpush1.bf16.msra.mxu0 %v7365_v45  ;;  %5452 = vmatpush1.bf16.msra.mxu1 %v7275_v4  ;;  %v7401_v45 = vld [vmem:[#allocation12] ss:$8 sps:$4 sm:$0xff]   ;;  %v7406_v4 = vld [vmem:[#allocation12 + $0x14] ss:$8 sps:$4 sm:$0xff]  }
 0x333   :  { %5340 = vmatprep.subr.bf16.mxu0 %v7373_v5  ;;  %5453 = vmatprep.subr.bf16.mxu1 %v7280_v6  ;;  %v7377_v5 = vld [vmem:[#allocation9 + $0x708] ss:$16 sps:$4 sm:$0xff]   ;;  %v7382_v6 = vld [vmem:[#allocation9 + $0x72c] ss:$16 sps:$4 sm:$0xff]  }
 0x336   :  { %5341 = vmatpush1.bf16.msra.mxu0 %v7371_v7  ;;  %5454 = vmatpush1.bf16.msra.mxu1 %v7278_v39  ;;  %v7404_v7 = vld [vmem:[#allocation12 + $0x10] ss:$8 sps:$4 sm:$0xff]   ;;  %v7409_v39 = vld [vmem:[#allocation12 + $0x24] ss:$8 sps:$4 sm:$0xff]  }
 0x337   :  { %5933 = vmatprep.subr.bf16.mxu0 %v7403_v8  ;;  %5455 = vmatprep.subr.bf16.mxu1 %v7286_v9  ;;  %v7380_v8 = vld [vmem:[#allocation9 + $0x728] ss:$16 sps:$4 sm:$0xff]   ;;  %v7385_v9 = vld [vmem:[#allocation9 + $0x74c] ss:$16 sps:$4 sm:$0xff]  }
 0x33a   :  { %5456 = vmatpush1.bf16.msra.mxu1 %v7284_v10  ;;  %v7407_v10 = vld [vmem:[#allocation12 + $0x20] ss:$8 sps:$4 sm:$0xff]  }
 0x33b   :  { %5457 = vmatprep.subr.bf16.mxu1 %v7292_v12  ;;  %v7412_v12 = vld [vmem:[#allocation12 + $0x34] ss:$8 sps:$4 sm:$0xff]  }
 0x33e   :  { %5458 = vmatpush1.bf16.msra.mxu1 %v7290_v13  ;;  %v7383_v13 = vld [vmem:[#allocation9 + $0x748] ss:$16 sps:$4 sm:$0xff]  }
 0x33f   :  { %5459 = vmatprep.subr.bf16.mxu1 %v7298_v24  ;;  %v7388_v24 = vld [vmem:[#allocation9 + $0x76c] ss:$16 sps:$4 sm:$0xff]  }
 0x342   :  { %5460 = vmatpush1.bf16.msra.mxu1 %v7296_v41  ;;  %v7410_v41 = vld [vmem:[#allocation12 + $0x30] ss:$8 sps:$4 sm:$0xff]  }
 0x343   :  { %5461 = vmatprep.subr.bf16.mxu1 %v7304_v16  ;;  %v7415_v16 = vld [vmem:[#allocation12 + $0x44] ss:$8 sps:$4 sm:$0xff]  }
 0x346   :  { %5462 = vmatpush1.bf16.msra.mxu1 %v7302_v17  ;;  %v7386_v17 = vld [vmem:[#allocation9 + $0x768] ss:$16 sps:$4 sm:$0xff]  }
 0x347   :  { %5463 = vmatprep.subr.bf16.mxu1 %v7310_v28  ;;  %v7391_v28 = vld [vmem:[#allocation9 + $0x78c] ss:$16 sps:$4 sm:$0xff]  }
 0x34a   :  { %5464 = vmatpush1.bf16.msra.mxu1 %v7308_v18  ;;  %v7413_v18 = vld [vmem:[#allocation12 + $0x40] ss:$8 sps:$4 sm:$0xff]  }
 0x34b   :  { %5465 = vmatprep.subr.bf16.mxu1 %v7316_v20  ;;  %v7418_v20 = vld [vmem:[#allocation12 + $0x54] ss:$8 sps:$4 sm:$0xff]  }
 0x34e   :  { %5466 = vmatpush1.bf16.msra.mxu1 %v7314_v22  ;;  %v7389_v22 = vld [vmem:[#allocation9 + $0x788] ss:$16 sps:$4 sm:$0xff]  }
 0x34f   :  { %5467 = vmatprep.subr.bf16.mxu1 %v7322_v31  ;;  %v7394_v31 = vld [vmem:[#allocation9 + $0x7ac] ss:$16 sps:$4 sm:$0xff]  }
 0x352   :  { %5468 = vmatpush1.bf16.msra.mxu1 %v7320_v23  ;;  %v7416_v23 = vld [vmem:[#allocation12 + $0x50] ss:$8 sps:$4 sm:$0xff]  }
 0x353   :  { %5469 = vmatprep.subr.bf16.mxu1 %v7328_v25  ;;  %v7421_v25 = vld [vmem:[#allocation12 + $0x64] ss:$8 sps:$4 sm:$0xff]  }
 0x356   :  { %5470 = vmatpush1.bf16.msra.mxu1 %v7326_v26  ;;  %v7392_v26 = vld [vmem:[#allocation9 + $0x7a8] ss:$16 sps:$4 sm:$0xff]  }
 0x357   :  { %5482 = vmatprep.subr.bf16.mxu1 %v7334_v14  ;;  %v7397_v14 = vld [vmem:[#allocation9 + $0x7cc] ss:$16 sps:$4 sm:$0xff]  }
 0x359   :  { %5472 = vmatmul.mubr.bf16.vlgmr.msra.gmra.mrb[12].mxu1 %v7993_v2  ;;  %v7364_v2 = vld [vmem:[#allocation9 + $0x6ac] ss:$16 sps:$4 sm:$0xff]  }
 0x35a   :  { %5483 = vmatpush1.bf16.msra.mxu1 %v7332_v33  ;;  %v7419_v33 = vld [vmem:[#allocation12 + $0x60] ss:$8 sps:$4 sm:$0xff]  }
 0x35b   :  { %5484 = vmatprep.subr.bf16.mxu1 %v7340_v47  ;;  %v7424_v47 = vld [vmem:[#allocation12 + $0x74] ss:$8 sps:$4 sm:$0xff]  }
 0x35e   :  { %5485 = vmatpush1.bf16.msra.mxu1 %v7338_v21  ;;  %v7395_v21 = vld [vmem:[#allocation9 + $0x7c8] ss:$16 sps:$4 sm:$0xff]  }
 0x35f   :  { %5486 = vmatprep.subr.bf16.mxu1 %v7346_v32  ;;  %v7400_v32 = vld [vmem:[#allocation9 + $0x7ec] ss:$16 sps:$4 sm:$0xff]  }
 0x362   :  { %5487 = vmatpush1.bf16.msra.mxu1 %v7344_v30  ;;  %v7422_v30 = vld [vmem:[#allocation12 + $0x70] ss:$8 sps:$4 sm:$0xff]  }
 0x363   :  { %5488 = vmatprep.subr.bf16.mxu1 %v7352_v34  ;;  %v7427_v34 = vld [vmem:[#allocation12 + $0x84] ss:$8 sps:$4 sm:$0xff]  }
 0x366   :  { %5489 = vmatpush1.bf16.msra.mxu1 %v7350_v35  ;;  %v7398_v35 = vld [vmem:[#allocation9 + $0x7e8] ss:$16 sps:$4 sm:$0xff]  }
 0x367   :  { %5490 = vmatprep.subr.bf16.mxu1 %v7358_v36  ;;  %v7425_v36 = vld [vmem:[#allocation12 + $0x80] ss:$8 sps:$4 sm:$0xff]  }
 0x36a   :  { %5491 = vmatpush1.bf16.msra.mxu1 %v7356_v37  ;;  %v7428_v37 = vld [vmem:[#allocation12 + $0x90] ss:$8 sps:$4 sm:$0xff]  }
 0x36b   :  { %5492 = vmatprep.subr.bf16.mxu1 %v7364_v2  ;;  %v7431_v2 = vld [vmem:[#allocation12 + $0xa0] ss:$8 sps:$4 sm:$0xff]  }
 0x36c   :  { %v3590_v49 = vpop.f32.mrb[8].mxu1 }
 0x36d   :  { %v6899_v50 = vadd.f32 %v3590_v49, %v622_v43  ;;  %v3592_v52 = vpop.f32.mrb[9].mxu1  ;;  %v7442_v49 = vld [vmem:[#allocation12 + $0xd4] ss:$8 sps:$4 sm:$0xff]  }
 0x36e   :  { %v6900_v60 = vadd.f32 %v3592_v52, %v626_v44  ;;  %v3594_v53 = vpop.f32.mrb[10].mxu1  ;;  %5493 = vmatpush1.bf16.msra.mxu1 %v7362_v58  ;;  %v7439_v58 = vld [vmem:[#allocation12 + $0xc4] ss:$8 sps:$4 sm:$0xff]  }
 0x36f   :  { %v6901_v54 = vadd.f32 %v3594_v53, %v622_v43  ;;  %v3596_v57 = vpop.f32.mrb[11].mxu1  ;;  %5494 = vmatprep.subr.bf16.mxu1 %v7370_v48  ;;  %v3605_v59 = vmax.f32 %v6899_v50, 0.0  ;;  %v7436_v43 = vld [vmem:[#allocation12 + $0xb4] ss:$8 sps:$4 sm:$0xff]   ;;  %v7437_v48 = vld [vmem:[#allocation12 + $0xc0] ss:$8 sps:$4 sm:$0xff]  }
 0x370   :  { %v6902_v56 = vadd.f32 %v3596_v57, %v626_v44  ;;  %v3606_v62 = vmax.f32 %v6900_v60, 0.0  ;;  %v7434_v44 = vld [vmem:[#allocation12 + $0xb0] ss:$8 sps:$4 sm:$0xff]   ;;  %v7445_v52 = vld [vmem:[#allocation12 + $0xe4] ss:$8 sps:$4 sm:$0xff]  }
 0x371   :  { %v3613_v61 = vmax.f32 %v6901_v54, 0.0  ;;  %v7440_v50 = vld [vmem:[#allocation12 + $0xd0] ss:$8 sps:$4 sm:$0xff]   ;;  %v7443_v60 = vld [vmem:[#allocation12 + $0xe0] ss:$8 sps:$4 sm:$0xff]  }
 0x372   :  { %v3614_v63 = vmax.f32 %v6902_v56, 0.0  ;;  %5495 = vmatpush1.bf16.msra.mxu1 %v7368_v11  ;;  %v7448_v53 = vld [vmem:[#allocation12 + $0xf4] ss:$8 sps:$4 sm:$0xff]   ;;  %v7446_v11 = vld [vmem:[#allocation12 + $0xf0] ss:$8 sps:$4 sm:$0xff]  }
 0x373   :  { %v8006_v0 = vpack.c.bf16 %v3613_v61, %v3605_v59  ;;  %5496 = vmatprep.subr.bf16.mxu1 %v7376_v55  ;;  %v7451_v54 = vld [vmem:[#allocation12 + $0x104] ss:$8 sps:$4 sm:$0xff]   ;;  %v3879_v57 = vld [vmem:[#allocation11] sm:$0xf] }
 0x374   :  { %v3622_v1 = vpack.c.bf16 %v3614_v63, %v3606_v62  ;;  %v3884_v55 = vrot.slane %v3879_v57, %v7947_v40  ;;  %v3888_v56 = vrot.slane %v3879_v57, %v7952_v46 }
 0x376   :  { %5342 = vmatprep.mubr.bf16.mxu0 %v3622_v1  ;;  %5497 = vmatpush1.bf16.msra.mxu1 %v7374_v15 }
 0x377   :  { %5514 = vmatprep.mubr.bf16.mxu1 %v3622_v1  ;;  %5343 = vmatmul.mubr.bf16.vlgmr.msra.gmra.mrb[8].mxu0 %v8006_v0 }
 0x378   :  { %5498 = vmatprep.subr.bf16.mxu1 %v7379_v3  ;;  %5934 = vmatpush1.bf16.msra.mxu0 %v7401_v45 }
 0x379   :  { %5935 = vmatprep.subr.bf16.mxu0 %v7406_v4 }
 0x37a   :  { %5499 = vmatpush1.bf16.msra.mxu1 %v7377_v5 }
 0x37b   :  { %5500 = vmatprep.subr.bf16.mxu1 %v7382_v6 }
 0x37c   :  { %5936 = vmatpush1.bf16.msra.mxu0 %v7404_v7 }
 0x37d   :  { %5937 = vmatprep.subr.bf16.mxu0 %v7409_v39 }
 0x37e   :  { %5501 = vmatpush1.bf16.msra.mxu1 %v7380_v8  ;;  %v7449_v8 = vld [vmem:[#allocation12 + $0x100] ss:$8 sps:$4 sm:$0xff]  }
 0x37f   :  { %5502 = vmatprep.subr.bf16.mxu1 %v7385_v9  ;;  %v7454_v9 = vld [vmem:[#allocation12 + $0x114] ss:$8 sps:$4 sm:$0xff]  }
 0x380   :  { %5938 = vmatpush1.bf16.msra.mxu0 %v7407_v10  ;;  %v7452_v10 = vld [vmem:[#allocation12 + $0x110] ss:$8 sps:$4 sm:$0xff]  }
 0x381   :  { %5939 = vmatprep.subr.bf16.mxu0 %v7412_v12  ;;  %v7457_v12 = vld [vmem:[#allocation12 + $0x124] ss:$8 sps:$4 sm:$0xff]  }
 0x382   :  { %5503 = vmatpush1.bf16.msra.mxu1 %v7383_v13  ;;  %v7455_v13 = vld [vmem:[#allocation12 + $0x120] ss:$8 sps:$4 sm:$0xff]  }
 0x383   :  { %5504 = vmatprep.subr.bf16.mxu1 %v7388_v24  ;;  %v7460_v24 = vld [vmem:[#allocation12 + $0x134] ss:$8 sps:$4 sm:$0xff]  }
 0x384   :  { %5940 = vmatpush1.bf16.msra.mxu0 %v7410_v41  ;;  %v7458_v41 = vld [vmem:[#allocation12 + $0x130] ss:$8 sps:$4 sm:$0xff]  }
 0x385   :  { %5941 = vmatprep.subr.bf16.mxu0 %v7415_v16  ;;  %v7463_v16 = vld [vmem:[#allocation12 + $0x144] ss:$8 sps:$4 sm:$0xff]  }
 0x386   :  { %5505 = vmatpush1.bf16.msra.mxu1 %v7386_v17  ;;  %v7461_v17 = vld [vmem:[#allocation12 + $0x140] ss:$8 sps:$4 sm:$0xff]  }
 0x387   :  { %5506 = vmatprep.subr.bf16.mxu1 %v7391_v28  ;;  %v7466_v28 = vld [vmem:[#allocation12 + $0x154] ss:$8 sps:$4 sm:$0xff]  }
 0x388   :  { %5942 = vmatpush1.bf16.msra.mxu0 %v7413_v18  ;;  %v7464_v18 = vld [vmem:[#allocation12 + $0x150] ss:$8 sps:$4 sm:$0xff]  }
 0x389   :  { %5943 = vmatprep.subr.bf16.mxu0 %v7418_v20  ;;  %v7469_v20 = vld [vmem:[#allocation12 + $0x164] ss:$8 sps:$4 sm:$0xff]  }
 0x38a   :  { %5507 = vmatpush1.bf16.msra.mxu1 %v7389_v22  ;;  %v3892_v22 = vrot.slane %v3879_v57, %v605_v38 }
 0x38b   :  { %5508 = vmatprep.subr.bf16.mxu1 %v7394_v31  ;;  %v7467_v31 = vld [vmem:[#allocation12 + $0x160] ss:$8 sps:$4 sm:$0xff]  }
 0x38c   :  { %5944 = vmatpush1.bf16.msra.mxu0 %v7416_v23  ;;  %v3896_v23 = vrot.slane %v3879_v57, %v609_v42  ;;  %v7473_v42 = vld [vmem:[#allocation12 + $0x180] ss:$8 sps:$4 sm:$0xff]   ;;  %v7493_v57 = vld [vmem:[#allocation12 + $0x1e4] ss:$8 sps:$4 sm:$0xff]  }
 0x38d   :  { %5945 = vmatprep.subr.bf16.mxu0 %v7421_v25  ;;  %v7472_v25 = vld [vmem:[#allocation12 + $0x174] ss:$8 sps:$4 sm:$0xff]  }
 0x38e   :  { %5509 = vmatpush1.bf16.msra.mxu1 %v7392_v26 }
 0x38f   :  { %5510 = vmatprep.subr.bf16.mxu1 %v7397_v14 }
 0x390   :  { %5946 = vmatpush1.bf16.msra.mxu0 %v7419_v33 }
 0x391   :  { %5947 = vmatprep.subr.bf16.mxu0 %v7424_v47 }
 0x392   :  { %5511 = vmatpush1.bf16.msra.mxu1 %v7395_v21 }
 0x393   :  { %5512 = vmatprep.subr.bf16.mxu1 %v7400_v32  ;;  %v7470_v32 = vld [vmem:[#allocation12 + $0x170] ss:$8 sps:$4 sm:$0xff]  }
 0x394   :  { %5948 = vmatpush1.bf16.msra.mxu0 %v7422_v30 }
 0x395   :  { %5949 = vmatprep.subr.bf16.mxu0 %v7427_v34 }
 0x396   :  { %5513 = vmatpush1.bf16.msra.mxu1 %v7398_v35  ;;  %v7475_v35 = vld [vmem:[#allocation12 + $0x184] ss:$8 sps:$4 sm:$0xff]  }
 0x398   :  { %5950 = vmatpush1.bf16.msra.mxu0 %v7425_v36 }
 0x399   :  { %5515 = vmatmul.mubr.bf16.vlgmr.msra.gmra.mrb[12].mxu1 %v8006_v0  ;;  %5951 = vmatprep.subr.bf16.mxu0 %v7430_v27 }
 0x39c   :  { %5952 = vmatpush1.bf16.msra.mxu0 %v7428_v37 }
 0x39d   :  { %5953 = vmatprep.subr.bf16.mxu0 %v7433_v51 }
 0x3a0   :  { %5954 = vmatpush1.bf16.msra.mxu0 %v7431_v2 }
 0x3a1   :  { %5955 = vmatprep.subr.bf16.mxu0 %v7436_v43  ;;  %v7478_v43 = vld [vmem:[#allocation12 + $0x194] ss:$8 sps:$4 sm:$0xff]  }
 0x3a4   :  { %5956 = vmatpush1.bf16.msra.mxu0 %v7434_v44 }
 0x3a5   :  { %5957 = vmatprep.subr.bf16.mxu0 %v7439_v58  ;;  %v7476_v58 = vld [vmem:[#allocation12 + $0x190] ss:$8 sps:$4 sm:$0xff]  }
 0x3a8   :  { %5958 = vmatpush1.bf16.msra.mxu0 %v7437_v48  ;;  %v7481_v48 = vld [vmem:[#allocation12 + $0x1a4] ss:$8 sps:$4 sm:$0xff]  }
 0x3a9   :  { %5959 = vmatprep.subr.bf16.mxu0 %v7442_v49  ;;  %v7479_v49 = vld [vmem:[#allocation12 + $0x1a0] ss:$8 sps:$4 sm:$0xff]  }
 0x3ac   :  { %5960 = vmatpush1.bf16.msra.mxu0 %v7440_v50  ;;  %v7484_v50 = vld [vmem:[#allocation12 + $0x1b4] ss:$8 sps:$4 sm:$0xff]  }
 0x3ad   :  { %5961 = vmatprep.subr.bf16.mxu0 %v7445_v52  ;;  %v7482_v52 = vld [vmem:[#allocation12 + $0x1b0] ss:$8 sps:$4 sm:$0xff]  }
 0x3b0   :  { %5962 = vmatpush1.bf16.msra.mxu0 %v7443_v60  ;;  %v7487_v60 = vld [vmem:[#allocation12 + $0x1c4] ss:$8 sps:$4 sm:$0xff]  }
 0x3b1   :  { %5963 = vmatprep.subr.bf16.mxu0 %v7448_v53  ;;  %v7485_v53 = vld [vmem:[#allocation12 + $0x1c0] ss:$8 sps:$4 sm:$0xff]  }
 0x3b4   :  { %5964 = vmatpush1.bf16.msra.mxu0 %v7446_v11  ;;  %v7490_v11 = vld [vmem:[#allocation12 + $0x1d4] ss:$8 sps:$4 sm:$0xff]  }
 0x3b5   :  { %5976 = vmatprep.subr.bf16.mxu0 %v7451_v54  ;;  %v7488_v54 = vld [vmem:[#allocation12 + $0x1d0] ss:$8 sps:$4 sm:$0xff]  }
 0x44a   :  { %v5344_v59 = vpop.f32.mrb[8].mxu0 }
 0x44b   :  { %v6903_v61 = vadd.f32 %v5344_v59, %v3884_v55  ;;  %v5346_v62 = vpop.f32.mrb[9].mxu0  ;;  %v7494_v59 = vld [vmem:[#allocation12 + $0x1f0] ss:$8 sps:$4 sm:$0xff]  }
 0x44c   :  { %v6904_v63 = vadd.f32 %v5346_v62, %v3888_v56  ;;  %v5348_v15 = vpop.f32.mrb[10].mxu0  ;;  %v5601_v62 = vld [vmem:[#allocation14] sm:$0x3] }
 0x44d   :  { %v6905_v0 = vadd.f32 %v5348_v15, %v3884_v55  ;;  %v5350_v1 = vpop.f32.mrb[11].mxu0  ;;  %v5525_v45 = vmax.f32 %v6903_v61, 0.0  ;;  %v7491_v55 = vld [vmem:[#allocation12 + $0x1e0] ss:$8 sps:$4 sm:$0xff]   ;;  %v6045_v61 = vld [vmem:[#allocation2] sm:$0x1]  ;;  %v5610_v15 = vrot.slane %v5601_v62, %v7952_v46 }
 0x44e   :  { %v6906_v3 = vadd.f32 %v5350_v1, %v3888_v56  ;;  %v5526_v5 = vmax.f32 %v6904_v63, 0.0  ;;  %v7496_v56 = vld [vmem:[#allocation12 + $0x1f4] ss:$8 sps:$4 sm:$0xff]   ;;  %6048 = vperm.xlu1 %7005, %v6045_v61   ;;  %v5606_v63 = vrot.slane %v5601_v62, %v7947_v40 }
 0x44f   :  { %v5529_v4 = vmax.f32 %v6905_v0, 0.0  ;;  %v6023_v0 = vld [vmem:[#allocation15] sm:$0x3] }
 0x450   :  { %v5530_v6 = vmax.f32 %v6906_v3, 0.0 }
 0x451   :  { %v5533_v7 = vpack.c.bf16 %v5529_v4, %v5525_v45  ;;  %v6028_v4 = vrot.slane %v6023_v0, %v7947_v40 }
 0x452   :  { %v5534_v39 = vpack.c.bf16 %v5530_v6, %v5526_v5 }
 0x454   :  { %5965 = vmatprep.mubr.bf16.mxu0 %v5534_v39 }
 0x455   :  { %5966 = vmatmul.mubr.bf16.vlgmr.msra.gmra.mrb[12].mxu0 %v5533_v7  ;;  %v6032_v7 = vrot.slane %v6023_v0, %v7952_v46 }
 0x456   :  { %5977 = vmatpush1.bf16.msra.mxu0 %v7449_v8 }
 0x457   :  { %5978 = vmatprep.subr.bf16.mxu0 %v7454_v9 }
 0x45a   :  { %5979 = vmatpush1.bf16.msra.mxu0 %v7452_v10 }
 0x45b   :  { %5980 = vmatprep.subr.bf16.mxu0 %v7457_v12 }
 0x45e   :  { %5981 = vmatpush1.bf16.msra.mxu0 %v7455_v13 }
 0x45f   :  { %5982 = vmatprep.subr.bf16.mxu0 %v7460_v24 }
 0x462   :  { %5983 = vmatpush1.bf16.msra.mxu0 %v7458_v41 }
 0x463   :  { %5984 = vmatprep.subr.bf16.mxu0 %v7463_v16 }
 0x466   :  { %5985 = vmatpush1.bf16.msra.mxu0 %v7461_v17 }
 0x467   :  { %5986 = vmatprep.subr.bf16.mxu0 %v7466_v28 }
 0x46a   :  { %5987 = vmatpush1.bf16.msra.mxu0 %v7464_v18 }
 0x46b   :  { %5988 = vmatprep.subr.bf16.mxu0 %v7469_v20 }
 0x46c   :  { %v5516_v26 = vpop.f32.mrb[12].mxu1 }
 0x46d   :  { %v6907_v14 = vadd.f32 %v5516_v26, %v3892_v22  ;;  %v5518_v33 = vpop.f32.mrb[13].mxu1 }
 0x46e   :  { %v6908_v47 = vadd.f32 %v5518_v33, %v3896_v23  ;;  %5989 = vmatpush1.bf16.msra.mxu0 %v7467_v31  ;;  %v5520_v21 = vpop.f32.mrb[14].mxu1 }
 0x46f   :  { %v6909_v30 = vadd.f32 %v5520_v21, %v3892_v22  ;;  %v5522_v34 = vpop.f32.mrb[15].mxu1  ;;  %5990 = vmatprep.subr.bf16.mxu0 %v7472_v25  ;;  %v5527_v38 = vmax.f32 %v6907_v14, 0.0 }
 0x470   :  { %v6910_v36 = vadd.f32 %v5522_v34, %v3896_v23  ;;  %v5528_v37 = vmax.f32 %v6908_v47, 0.0  ;;  %v6072_v34 = vand.u32 127, %v595_v19 }
 0x471   :  { %v5531_v27 = vmax.f32 %v6909_v30, 0.0 }
 0x472   :  { %v5532_v51 = vmax.f32 %v6910_v36, 0.0  ;;  %5991 = vmatpush1.bf16.msra.mxu0 %v7470_v32  ;;  %v6075_v36 = vsub.s32 %v6072_v34, %v7944_v29 }
 0x473   :  { %v5535_v2 = vpack.c.bf16 %v5531_v27, %v5527_v38  ;;  %5992 = vmatprep.subr.bf16.mxu0 %v7475_v35  ;;  %v6077_v35 = vadd.s32 4294967288, %v6072_v34 }
 0x474   :  { %v5536_v44 = vpack.c.bf16 %v5532_v51, %v5528_v37 }
 0x476   :  { %5993 = vmatpush1.bf16.msra.mxu0 %v7473_v42  ;;  %6008 = vmatprep.mubr.bf16.mxu0 %v5536_v44 }
 0x477   :  { %5994 = vmatprep.subr.bf16.mxu0 %v7478_v43 }
 0x47a   :  { %5995 = vmatpush1.bf16.msra.mxu0 %v7476_v58 }
 0x47b   :  { %5996 = vmatprep.subr.bf16.mxu0 %v7481_v48 }
 0x47e   :  { %5997 = vmatpush1.bf16.msra.mxu0 %v7479_v49 }
 0x47f   :  { %5998 = vmatprep.subr.bf16.mxu0 %v7484_v50 }
 0x482   :  { %5999 = vmatpush1.bf16.msra.mxu0 %v7482_v52 }
 0x483   :  { %6000 = vmatprep.subr.bf16.mxu0 %v7487_v60 }
 0x486   :  { %6001 = vmatpush1.bf16.msra.mxu0 %v7485_v53 }
 0x487   :  { %6002 = vmatprep.subr.bf16.mxu0 %v7490_v11 }
 0x48a   :  { %6003 = vmatpush1.bf16.msra.mxu0 %v7488_v54 }
 0x48b   :  { %6004 = vmatprep.subr.bf16.mxu0 %v7493_v57 }
 0x48e   :  { %6005 = vmatpush1.bf16.msra.mxu0 %v7491_v55 }
 0x48f   :  { %6006 = vmatprep.subr.bf16.mxu0 %v7496_v56 }
 0x492   :  { %6007 = vmatpush1.bf16.msra.mxu0 %v7494_v59 }
 0x495   :  { %6009 = vmatmul.mubr.bf16.vlgmr.msra.gmra.mrb[12].mxu0 %v5535_v2 }
 0x4cd   :  { %v6049_v22 = vpop.permute.xlu1 %6048 }
 0x4ce   :  { %v6054_v31 = vrot.slane %v6049_v22, %v7947_v40  ;;  %v6080_v40 = vsub.s32 %v6077_v35, %v7944_v29 }
 0x568   :  { %v6010_v1 = vpop.f32.mrb[12].mxu0 }
 0x569   :  { %v6911_v3 = vadd.f32 %v6010_v1, %v5606_v63  ;;  %v6012_v45 = vpop.f32.mrb[13].mxu0 }
 0x56a   :  { %v6912_v5 = vadd.f32 %v6012_v45, %v5610_v15  ;;  %v6014_v6 = vpop.f32.mrb[14].mxu0 }
 0x56b   :  { %v6019_v39 = vmax.f32 %v6911_v3, 0.0  ;;  %v6913_v8 = vadd.f32 %v6014_v6, %v5606_v63  ;;  %v6016_v9 = vpop.f32.mrb[15].mxu0 }
 0x56c   :  { %v6020_v10 = vmax.f32 %v6912_v5, 0.0  ;;  %v6914_v12 = vadd.f32 %v6016_v9, %v5610_v15 }
 0x56d   :  { %v6021_v13 = vmax.f32 %v6913_v8, 0.0  ;;  %v6035_v24 = vmul.f32 %v6028_v4, %v6019_v39 }
 0x56e   :  { %v6022_v41 = vmax.f32 %v6914_v12, 0.0  ;;  %v6036_v16 = vmul.f32 %v6032_v7, %v6020_v10 }
 0x56f   :  { %v6037_v17 = vmul.f32 %v6028_v4, %v6021_v13 }
 0x570   :  { %v6038_v28 = vmul.f32 %v6032_v7, %v6022_v41  ;;  %v6039_v18 = vadd.f32 %v6036_v16, %v6035_v24 }
 0x572   :  { %6040 = vadd.xlane.f32.xlu0 %v6039_v18  ;;  %v6042_v20 = vadd.f32 %v6038_v28, %v6037_v17 }
 0x576   :  { %6043 = vadd.xlane.f32.xlu0 %v6042_v20 }
 0x5ff   :  { %v6041_v23 = vpop.xlane.xlu0 %6040 }
 0x600   :  { %v6055_v46 = vadd.f32 %v6054_v31, %v6041_v23 }
 0x602   :  { %v6881_v25 = vmul.f32 -1.442695, %v6055_v46 }
 0x603   :  { %v6044_v26 = vpop.xlane.xlu0 %6043 }
 0x604   :  { %7497 = vpow2.f32 %v6881_v25  ;;  %v6056_v14 = vadd.f32 %v6054_v31, %v6044_v26 }
 0x606   :  { %v6882_v33 = vmul.f32 -1.442695, %v6056_v14 }
 0x608   :  { %7499 = vpow2.f32 %v6882_v33 }
 0x60e   :  { %v7498_v47 = vpop.eup %7497 }
 0x60f   :  { %v6063_v21 = vadd.f32 1.0, %v7498_v47 }
 0x611   :  { %7501 = vrcp.f32 %v6063_v21 }
 0x612   :  { %v7500_v32 = vpop.eup %7499 }
 0x613   :  { %v6064_v30 = vadd.f32 1.0, %v7500_v32 }
 0x615   :  { %7503 = vrcp.f32 %v6064_v30 }
 0x61b   :  { %v7502_v38 = vpop.eup %7501 }
 0x61c   :  { %v6076_v37 = vrot.slane %v7502_v38, %v6075_v36 }
 0x61f   :  { %v7504_v27 = vpop.eup %7503 }
 0x620   :  { %v6081_v51 = vrot.slane %v7504_v27, %v6080_v40 }
 0x622   :  { %v6083_v42 = vsel %vm6082_vm0, %v6081_v51, %v6076_v37 }
 0x623   :  { %6086 = vst.msk [vmem:[#allocation17] sm:$0x1] %vm6085_vm1, %v6083_v42 }
 0x624   :  { %7705 = shalt.err (!%p7702_p12)
}
 0x625   :  { %s7706_s16 = scalar_lea.hbm %s8045_s9, 16 }
 0x626   :  { %p7707_p13 = scmp.ne.s32.totalorder %s8045_s9, %s7706_s16  ;;  %p7710_p0 = scmp.lt.u32.totalorder %s7706_s16, %s8045_s9 }
 0x628   :  { %p7712_p1 = pnand %p7710_p0, %p7707_p13 }
 0x62a   :  { %7715 = shalt.err (!%p7712_p1)
}
 0x62b   :  { %6096 = dma.vmem_to_hbm [thread:$0]  %s6094_s12, 16, %s8045_s9, [#allocation5]  }
 0x62c   :  { %7726 = dma.done.wait [#allocation5], 16  }
 0x62d   :  { %7727 = vsyncadd [#allocation5], 4294967280 }
 0x62e   :  { %6100 = vsyncpa [#allocation4], 1 }
 0x62f   :  { %6101 = vsyncpa [#allocation7], 1 }
 0x630   :  { %6102 = vsyncpa [#allocation10], 1 }
 0x631   :  { %6103 = vsyncpa [#allocation13], 1 }
 0x632   :  { %6104 = vsyncpa [#allocation16], 1 }
 0x633   :  { %6105 = vsyncpa [#allocation5], 1 }

</bundles_post_ra>
